<compile_context>
chip_gen: v5e
topology: v5e:2x2
jax: 0.10.0
libtpu: 0.0.40
codegen_flags: <defaults>
</compile_context>

<pallas_src>
import functools

import jax
import jax.numpy as jnp
from jax.experimental import pallas as pl
from jax.experimental.pallas import tpu as pltpu


def _conv3x3_kernel(w_ref, b_ref, x_ref, o_ref, xpad_ref, *,
                    H, W, Cin, Cout, TH, use_refl):
    """One grid step: batch element n (grid axis 0), row tile h (grid axis 1).

    w_ref   : (Cout*Cin*9,) f32  SMEM   flattened OIHW conv weight
    b_ref   : (Cout,)       f32  SMEM   bias
    x_ref   : (1, Cin, H, W)     VMEM   full image of this batch element
    o_ref   : (1, Cout, TH, W)   VMEM   output row tile
    xpad_ref: (Cin, TH+2, W+2)   VMEM   scratch: row tile + fused padding halo
    """
    r0 = pl.program_id(1) * TH
    if TH % 8 == 0:
        r0 = pl.multiple_of(r0, 8)          # aligned sublane slice
    is_first = r0 == 0
    is_last = (r0 + TH) == H

    # ---- Build the padded row tile in VMEM (fused ReflectionPad2d/ZeroPad2d).
    xpad_ref[:, 1:TH + 1, 1:W + 1] = x_ref[0, :, pl.ds(r0, TH), :]

    if use_refl:
        # Halo rows: true neighbor rows inside the image; reflected rows
        # (row 1 / row H-2) only at the image border.
        top_idx = jnp.where(is_first, 1, r0 - 1)
        bot_idx = jnp.where(is_last, H - 2, r0 + TH)
        xpad_ref[:, 0:1, 1:W + 1] = x_ref[0, :, pl.ds(top_idx, 1), :]
        xpad_ref[:, TH + 1:TH + 2, 1:W + 1] = x_ref[0, :, pl.ds(bot_idx, 1), :]
        # Halo columns (written after the halo rows so the corners are right).
        xpad_ref[:, :, 0:1] = xpad_ref[:, :, 2:3]
        xpad_ref[:, :, W + 1:W + 2] = xpad_ref[:, :, W - 1:W]
    else:
        top_idx = jnp.maximum(r0 - 1, 0)
        bot_idx = jnp.minimum(r0 + TH, H - 1)
        top = x_ref[0, :, pl.ds(top_idx, 1), :]
        bot = x_ref[0, :, pl.ds(bot_idx, 1), :]
        xpad_ref[:, 0:1, 1:W + 1] = jnp.where(is_first, jnp.zeros_like(top), top)
        xpad_ref[:, TH + 1:TH + 2, 1:W + 1] = jnp.where(is_last, jnp.zeros_like(bot), bot)
        zcol = jnp.zeros((Cin, TH + 2, 1), dtype=xpad_ref.dtype)
        xpad_ref[:, :, 0:1] = zcol
        xpad_ref[:, :, W + 1:W + 2] = zcol

    # ---- 3x3 conv as VPU broadcast-FMA:
    #      out[co] = b[co] + sum_{ci,dy,dx} w[co,ci,dy,dx] * xpad[ci, dy:, dx:]
    accs = [jnp.zeros((TH, W), jnp.float32) + b_ref[co] for co in range(Cout)]
    for ci in range(Cin):
        taps = [
            xpad_ref[ci, dy:dy + TH, dx:dx + W].astype(jnp.float32)
            for dy in range(3) for dx in range(3)
        ]
        for co in range(Cout):
            acc = accs[co]
            base = (co * Cin + ci) * 9
            for t in range(9):
                acc = acc + taps[t] * w_ref[base + t]
            accs[co] = acc

    for co in range(Cout):
        o_ref[0, co] = accs[co].astype(o_ref.dtype)


def conv3x3(x, weight, bias, *, use_refl=True, tile_h=None):
    """Pallas TPU equivalent of Conv3x3.forward.

    x:      (N, Cin, H, W)    NCHW (PyTorch layout)
    weight: (Cout, Cin, 3, 3) OIHW (PyTorch nn.Conv2d layout)
    bias:   (Cout,)
    returns (N, Cout, H, W)
    """
    N, Cin, H, W = x.shape
    Cout = weight.shape[0]
    assert weight.shape == (Cout, Cin, 3, 3), weight.shape
    assert bias.shape == (Cout,), bias.shape
    assert H >= 2 and W >= 2, "padding of 1 needs H, W >= 2"

    if tile_h is None:
        tile_h = H
        if H % 8 == 0:
            tile_h = 8
            for th in range(8, min(H, 64) + 1, 8):
                if H % th == 0:
                    tile_h = th
    TH = int(tile_h)
    assert H % TH == 0 and (TH % 8 == 0 or TH == H), (H, TH)

    w_flat = weight.astype(jnp.float32).reshape(-1)   # (Cout*Cin*9,) -> SMEM
    b_flat = bias.astype(jnp.float32).reshape(-1)     # (Cout,)       -> SMEM

    kernel = functools.partial(
        _conv3x3_kernel,
        H=H, W=W, Cin=Cin, Cout=Cout, TH=TH, use_refl=bool(use_refl))

    smem = pltpu.MemorySpace.SMEM
    return pl.pallas_call(
        kernel,
        out_shape=jax.ShapeDtypeStruct((N, Cout, H, W), x.dtype),
        grid_spec=pltpu.PrefetchScalarGridSpec(
            num_scalar_prefetch=0,
            grid=(N, H // TH),
            in_specs=[
                pl.BlockSpec(memory_space=smem),   # flattened weights
                pl.BlockSpec(memory_space=smem),   # bias
                # Full image per batch element; block index only depends on n,
                # so it stays resident in VMEM across the row-tile axis.
                pl.BlockSpec((1, Cin, H, W), lambda n, h: (n, 0, 0, 0)),
            ],
            out_specs=pl.BlockSpec((1, Cout, TH, W), lambda n, h: (n, 0, h, 0)),
            scratch_shapes=[pltpu.VMEM((Cin, TH + 2, W + 2), x.dtype)],
        ),
        compiler_params=pltpu.CompilerParams(
            dimension_semantics=("parallel", "parallel"),
            vmem_limit_bytes=32 * 1024 * 1024,
        ),
    )(w_flat, b_flat, x)


def _reference_conv3x3(x, weight, bias, *, use_refl=True):
    """Pure-JAX reference (lax conv) for correctness check."""
    mode = "reflect" if use_refl else "constant"
    xp = jnp.pad(x, ((0, 0), (0, 0), (1, 1), (1, 1)), mode=mode)
    out = jax.lax.conv_general_dilated(
        xp, weight, window_strides=(1, 1), padding="VALID",
        dimension_numbers=("NCHW", "OIHW", "NCHW"),
        precision=jax.lax.Precision.HIGHEST)
    return out + bias.reshape(1, -1, 1, 1)


if __name__ == "__main__":
    key = jax.random.PRNGKey(0)

    # Test 1: module-default small shapes; 2 row tiles exercise both the
    # reflected image border and the true-neighbor halo at the tile seam.
    k_x, k_w, k_b = jax.random.split(jax.random.fold_in(key, 0), 3)
    N, Cin, H, W, Cout = 2, 4, 16, 16, 8
    x = jax.random.normal(k_x, (N, Cin, H, W), dtype=jnp.float32)
    weight = jax.random.normal(k_w, (Cout, Cin, 3, 3), dtype=jnp.float32) * 0.1
    bias = jax.random.normal(k_b, (Cout,), dtype=jnp.float32) * 0.1

    out = jax.block_until_ready(conv3x3(x, weight, bias, use_refl=True, tile_h=8))
    ref = _reference_conv3x3(x, weight, bias, use_refl=True)
    assert out.shape == (N, Cout, H, W), out.shape
    assert jnp.allclose(out, ref, atol=1e-3, rtol=1e-3), \
        float(jnp.max(jnp.abs(out - ref)))

    # Test 2: odd channel counts / non-square image; 3 row tiles so the middle
    # tile has true-neighbor halos on both sides.
    k_x, k_w, k_b = jax.random.split(jax.random.fold_in(key, 1), 3)
    N, Cin, H, W, Cout = 1, 3, 24, 20, 5
    x = jax.random.normal(k_x, (N, Cin, H, W), dtype=jnp.float32)
    weight = jax.random.normal(k_w, (Cout, Cin, 3, 3), dtype=jnp.float32) * 0.1
    bias = jax.random.normal(k_b, (Cout,), dtype=jnp.float32) * 0.1

    out = jax.block_until_ready(conv3x3(x, weight, bias, use_refl=True, tile_h=8))
    ref = _reference_conv3x3(x, weight, bias, use_refl=True)
    assert out.shape == (N, Cout, H, W), out.shape
    assert jnp.allclose(out, ref, atol=1e-3, rtol=1e-3), \
        float(jnp.max(jnp.abs(out - ref)))

    print("KERNEL_OK")
</pallas_src>

<mosaic_0001>
module attributes {stable_mosaic.version = 11 : i64} {
  func.func @_conv3x3_kernel(%arg0: i32, %arg1: i32, %arg2: memref<288xf32, #tpu.memory_space<smem>>, %arg3: memref<8xf32, #tpu.memory_space<smem>>, %arg4: memref<1x4x16x16xf32, #tpu.memory_space<vmem>>, %arg5: memref<1x8x8x16xf32, #tpu.memory_space<vmem>>, %arg6: memref<4x10x18xf32, #tpu.memory_space<vmem>>) attributes {dimension_semantics = [#tpu.dimension_semantics<parallel>, #tpu.dimension_semantics<parallel>], iteration_bounds = array<i64: 2, 2>, scalar_prefetch = 0 : i64, scratch_operands = 1 : i64, tpu.core_type = #tpu.core_type<tc>, window_params = [{transform_indices = @transform_0, window_bounds = array<i64: 288>}, {transform_indices = @transform_1, window_bounds = array<i64: 8>}, {transform_indices = @transform_2, window_bounds = array<i64: 1, 4, 16, 16>}, {transform_indices = @transform_3, window_bounds = array<i64: 1, 8, 8, 16>}]} {
    %c8_i32 = arith.constant 8 : i32
    %0 = arith.muli %arg1, %c8_i32 : i32
    %1 = tpu.assume_multiple %0, 8 : i32
    %c0_i32 = arith.constant 0 : i32
    %2 = arith.cmpi eq, %1, %c0_i32 : i32
    %c8_i32_0 = arith.constant 8 : i32
    %3 = arith.addi %1, %c8_i32_0 : i32
    %c16_i32 = arith.constant 16 : i32
    %4 = arith.cmpi eq, %3, %c16_i32 : i32
    %c0 = arith.constant 0 : index
    %c0_1 = arith.constant 0 : index
    %5 = arith.index_cast %1 : i32 to index
    %c0_2 = arith.constant 0 : index
    %6 = vector.load %arg4[%c0, %c0_1, %5, %c0_2] : memref<1x4x16x16xf32, #tpu.memory_space<vmem>>, vector<1x4x8x16xf32>
    %7 = vector.shape_cast %6 : vector<1x4x8x16xf32> to vector<4x8x16xf32>
    %c0_3 = arith.constant 0 : index
    %c1 = arith.constant 1 : index
    %c1_4 = arith.constant 1 : index
    %8 = vector.load %arg6[%c0_3, %c1, %c1_4] : memref<4x10x18xf32, #tpu.memory_space<vmem>>, vector<4x8x16xf32>
    tpu.vector_store %arg6[%c0_3, %c1, %c1_4], %7 {strides = array<i32>} : memref<4x10x18xf32, #tpu.memory_space<vmem>>, vector<4x8x16xf32>,
    %c1_i32 = arith.constant 1 : i32
    %9 = arith.subi %1, %c1_i32 : i32
    %c1_i32_5 = arith.constant 1 : i32
    %10 = arith.select %2, %c1_i32_5, %9 : i32
    %c8_i32_6 = arith.constant 8 : i32
    %11 = arith.addi %1, %c8_i32_6 : i32
    %c14_i32 = arith.constant 14 : i32
    %12 = arith.select %4, %c14_i32, %11 : i32
    %c0_7 = arith.constant 0 : index
    %c0_8 = arith.constant 0 : index
    %13 = arith.index_cast %10 : i32 to index
    %c0_9 = arith.constant 0 : index
    %14 = vector.load %arg4[%c0_7, %c0_8, %13, %c0_9] : memref<1x4x16x16xf32, #tpu.memory_space<vmem>>, vector<1x4x1x16xf32>
    %15 = vector.shape_cast %14 : vector<1x4x1x16xf32> to vector<4x1x16xf32>
    %c0_10 = arith.constant 0 : index
    %c0_11 = arith.constant 0 : index
    %c1_12 = arith.constant 1 : index
    %16 = vector.load %arg6[%c0_10, %c0_11, %c1_12] : memref<4x10x18xf32, #tpu.memory_space<vmem>>, vector<4x1x16xf32>
    tpu.vector_store %arg6[%c0_10, %c0_11, %c1_12], %15 {strides = array<i32>} : memref<4x10x18xf32, #tpu.memory_space<vmem>>, vector<4x1x16xf32>,
    %c0_13 = arith.constant 0 : index
    %c0_14 = arith.constant 0 : index
    %17 = arith.index_cast %12 : i32 to index
    %c0_15 = arith.constant 0 : index
    %18 = vector.load %arg4[%c0_13, %c0_14, %17, %c0_15] : memref<1x4x16x16xf32, #tpu.memory_space<vmem>>, vector<1x4x1x16xf32>
    %19 = vector.shape_cast %18 : vector<1x4x1x16xf32> to vector<4x1x16xf32>
    %c0_16 = arith.constant 0 : index
    %c9 = arith.constant 9 : index
    %c1_17 = arith.constant 1 : index
    %20 = vector.load %arg6[%c0_16, %c9, %c1_17] : memref<4x10x18xf32, #tpu.memory_space<vmem>>, vector<4x1x16xf32>
    tpu.vector_store %arg6[%c0_16, %c9, %c1_17], %19 {strides = array<i32>} : memref<4x10x18xf32, #tpu.memory_space<vmem>>, vector<4x1x16xf32>,
    %c0_18 = arith.constant 0 : index
    %c0_19 = arith.constant 0 : index
    %c2 = arith.constant 2 : index
    %21 = vector.load %arg6[%c0_18, %c0_19, %c2] : memref<4x10x18xf32, #tpu.memory_space<vmem>>, vector<4x10x1xf32>
    %c0_20 = arith.constant 0 : index
    %c0_21 = arith.constant 0 : index
    %c0_22 = arith.constant 0 : index
    %22 = vector.load %arg6[%c0_20, %c0_21, %c0_22] : memref<4x10x18xf32, #tpu.memory_space<vmem>>, vector<4x10x1xf32>
    tpu.vector_store %arg6[%c0_20, %c0_21, %c0_22], %21 {strides = array<i32>} : memref<4x10x18xf32, #tpu.memory_space<vmem>>, vector<4x10x1xf32>,
    %c0_23 = arith.constant 0 : index
    %c0_24 = arith.constant 0 : index
    %c15 = arith.constant 15 : index
    %23 = vector.load %arg6[%c0_23, %c0_24, %c15] : memref<4x10x18xf32, #tpu.memory_space<vmem>>, vector<4x10x1xf32>
    %c0_25 = arith.constant 0 : index
    %c0_26 = arith.constant 0 : index
    %c17 = arith.constant 17 : index
    %24 = vector.load %arg6[%c0_25, %c0_26, %c17] : memref<4x10x18xf32, #tpu.memory_space<vmem>>, vector<4x10x1xf32>
    tpu.vector_store %arg6[%c0_25, %c0_26, %c17], %23 {strides = array<i32>} : memref<4x10x18xf32, #tpu.memory_space<vmem>>, vector<4x10x1xf32>,
    %cst = arith.constant 0.000000e+00 : f32
    %25 = vector.broadcast %cst : f32 to vector<8x16xf32>
    %c0_27 = arith.constant 0 : index
    %26 = memref.load %arg3[%c0_27] : memref<8xf32, #tpu.memory_space<smem>>
    %27 = vector.broadcast %26 : f32 to vector<8x16xf32>
    %28 = arith.addf %25, %27 : vector<8x16xf32>
    %cst_28 = arith.constant 0.000000e+00 : f32
    %29 = vector.broadcast %cst_28 : f32 to vector<8x16xf32>
    %c1_29 = arith.constant 1 : index
    %30 = memref.load %arg3[%c1_29] : memref<8xf32, #tpu.memory_space<smem>>
    %31 = vector.broadcast %30 : f32 to vector<8x16xf32>
    %32 = arith.addf %29, %31 : vector<8x16xf32>
    %cst_30 = arith.constant 0.000000e+00 : f32
    %33 = vector.broadcast %cst_30 : f32 to vector<8x16xf32>
    %c2_31 = arith.constant 2 : index
    %34 = memref.load %arg3[%c2_31] : memref<8xf32, #tpu.memory_space<smem>>
    %35 = vector.broadcast %34 : f32 to vector<8x16xf32>
    %36 = arith.addf %33, %35 : vector<8x16xf32>
    %cst_32 = arith.constant 0.000000e+00 : f32
    %37 = vector.broadcast %cst_32 : f32 to vector<8x16xf32>
    %c3 = arith.constant 3 : index
    %38 = memref.load %arg3[%c3] : memref<8xf32, #tpu.memory_space<smem>>
    %39 = vector.broadcast %38 : f32 to vector<8x16xf32>
    %40 = arith.addf %37, %39 : vector<8x16xf32>
    %cst_33 = arith.constant 0.000000e+00 : f32
    %41 = vector.broadcast %cst_33 : f32 to vector<8x16xf32>
    %c4 = arith.constant 4 : index
    %42 = memref.load %arg3[%c4] : memref<8xf32, #tpu.memory_space<smem>>
    %43 = vector.broadcast %42 : f32 to vector<8x16xf32>
    %44 = arith.addf %41, %43 : vector<8x16xf32>
    %cst_34 = arith.constant 0.000000e+00 : f32
    %45 = vector.broadcast %cst_34 : f32 to vector<8x16xf32>
    %c5 = arith.constant 5 : index
    %46 = memref.load %arg3[%c5] : memref<8xf32, #tpu.memory_space<smem>>
    %47 = vector.broadcast %46 : f32 to vector<8x16xf32>
    %48 = arith.addf %45, %47 : vector<8x16xf32>
    %cst_35 = arith.constant 0.000000e+00 : f32
    %49 = vector.broadcast %cst_35 : f32 to vector<8x16xf32>
    %c6 = arith.constant 6 : index
    %50 = memref.load %arg3[%c6] : memref<8xf32, #tpu.memory_space<smem>>
    %51 = vector.broadcast %50 : f32 to vector<8x16xf32>
    %52 = arith.addf %49, %51 : vector<8x16xf32>
    %cst_36 = arith.constant 0.000000e+00 : f32
    %53 = vector.broadcast %cst_36 : f32 to vector<8x16xf32>
    %c7 = arith.constant 7 : index
    %54 = memref.load %arg3[%c7] : memref<8xf32, #tpu.memory_space<smem>>
    %55 = vector.broadcast %54 : f32 to vector<8x16xf32>
    %56 = arith.addf %53, %55 : vector<8x16xf32>
    %c0_37 = arith.constant 0 : index
    %c0_38 = arith.constant 0 : index
    %c0_39 = arith.constant 0 : index
    %57 = vector.load %arg6[%c0_37, %c0_38, %c0_39] : memref<4x10x18xf32, #tpu.memory_space<vmem>>, vector<1x8x16xf32>
    %58 = vector.shape_cast %57 : vector<1x8x16xf32> to vector<8x16xf32>
    %c0_40 = arith.constant 0 : index
    %c0_41 = arith.constant 0 : index
    %c1_42 = arith.constant 1 : index
    %59 = vector.load %arg6[%c0_40, %c0_41, %c1_42] : memref<4x10x18xf32, #tpu.memory_space<vmem>>, vector<1x8x16xf32>
    %60 = vector.shape_cast %59 : vector<1x8x16xf32> to vector<8x16xf32>
    %c0_43 = arith.constant 0 : index
    %c0_44 = arith.constant 0 : index
    %c2_45 = arith.constant 2 : index
    %61 = vector.load %arg6[%c0_43, %c0_44, %c2_45] : memref<4x10x18xf32, #tpu.memory_space<vmem>>, vector<1x8x16xf32>
    %62 = vector.shape_cast %61 : vector<1x8x16xf32> to vector<8x16xf32>
    %c0_46 = arith.constant 0 : index
    %c1_47 = arith.constant 1 : index
    %c0_48 = arith.constant 0 : index
    %63 = vector.load %arg6[%c0_46, %c1_47, %c0_48] : memref<4x10x18xf32, #tpu.memory_space<vmem>>, vector<1x8x16xf32>
    %64 = vector.shape_cast %63 : vector<1x8x16xf32> to vector<8x16xf32>
    %c0_49 = arith.constant 0 : index
    %c1_50 = arith.constant 1 : index
    %c1_51 = arith.constant 1 : index
    %65 = vector.load %arg6[%c0_49, %c1_50, %c1_51] : memref<4x10x18xf32, #tpu.memory_space<vmem>>, vector<1x8x16xf32>
    %66 = vector.shape_cast %65 : vector<1x8x16xf32> to vector<8x16xf32>
    %c0_52 = arith.constant 0 : index
    %c1_53 = arith.constant 1 : index
    %c2_54 = arith.constant 2 : index
    %67 = vector.load %arg6[%c0_52, %c1_53, %c2_54] : memref<4x10x18xf32, #tpu.memory_space<vmem>>, vector<1x8x16xf32>
    %68 = vector.shape_cast %67 : vector<1x8x16xf32> to vector<8x16xf32>
    %c0_55 = arith.constant 0 : index
    %c2_56 = arith.constant 2 : index
    %c0_57 = arith.constant 0 : index
    %69 = vector.load %arg6[%c0_55, %c2_56, %c0_57] : memref<4x10x18xf32, #tpu.memory_space<vmem>>, vector<1x8x16xf32>
    %70 = vector.shape_cast %69 : vector<1x8x16xf32> to vector<8x16xf32>
    %c0_58 = arith.constant 0 : index
    %c2_59 = arith.constant 2 : index
    %c1_60 = arith.constant 1 : index
    %71 = vector.load %arg6[%c0_58, %c2_59, %c1_60] : memref<4x10x18xf32, #tpu.memory_space<vmem>>, vector<1x8x16xf32>
    %72 = vector.shape_cast %71 : vector<1x8x16xf32> to vector<8x16xf32>
    %c0_61 = arith.constant 0 : index
    %c2_62 = arith.constant 2 : index
    %c2_63 = arith.constant 2 : index
    %73 = vector.load %arg6[%c0_61, %c2_62, %c2_63] : memref<4x10x18xf32, #tpu.memory_space<vmem>>, vector<1x8x16xf32>
    %74 = vector.shape_cast %73 : vector<1x8x16xf32> to vector<8x16xf32>
    %c0_64 = arith.constant 0 : index
    %75 = memref.load %arg2[%c0_64] : memref<288xf32, #tpu.memory_space<smem>>
    %76 = vector.broadcast %75 : f32 to vector<8x16xf32>
    %77 = arith.mulf %58, %76 : vector<8x16xf32>
    %78 = arith.addf %28, %77 : vector<8x16xf32>
    %c1_65 = arith.constant 1 : index
    %79 = memref.load %arg2[%c1_65] : memref<288xf32, #tpu.memory_space<smem>>
    %80 = vector.broadcast %79 : f32 to vector<8x16xf32>
    %81 = arith.mulf %60, %80 : vector<8x16xf32>
    %82 = arith.addf %78, %81 : vector<8x16xf32>
    %c2_66 = arith.constant 2 : index
    %83 = memref.load %arg2[%c2_66] : memref<288xf32, #tpu.memory_space<smem>>
    %84 = vector.broadcast %83 : f32 to vector<8x16xf32>
    %85 = arith.mulf %62, %84 : vector<8x16xf32>
    %86 = arith.addf %82, %85 : vector<8x16xf32>
    %c3_67 = arith.constant 3 : index
    %87 = memref.load %arg2[%c3_67] : memref<288xf32, #tpu.memory_space<smem>>
    %88 = vector.broadcast %87 : f32 to vector<8x16xf32>
    %89 = arith.mulf %64, %88 : vector<8x16xf32>
    %90 = arith.addf %86, %89 : vector<8x16xf32>
    %c4_68 = arith.constant 4 : index
    %91 = memref.load %arg2[%c4_68] : memref<288xf32, #tpu.memory_space<smem>>
    %92 = vector.broadcast %91 : f32 to vector<8x16xf32>
    %93 = arith.mulf %66, %92 : vector<8x16xf32>
    %94 = arith.addf %90, %93 : vector<8x16xf32>
    %c5_69 = arith.constant 5 : index
    %95 = memref.load %arg2[%c5_69] : memref<288xf32, #tpu.memory_space<smem>>
    %96 = vector.broadcast %95 : f32 to vector<8x16xf32>
    %97 = arith.mulf %68, %96 : vector<8x16xf32>
    %98 = arith.addf %94, %97 : vector<8x16xf32>
    %c6_70 = arith.constant 6 : index
    %99 = memref.load %arg2[%c6_70] : memref<288xf32, #tpu.memory_space<smem>>
    %100 = vector.broadcast %99 : f32 to vector<8x16xf32>
    %101 = arith.mulf %70, %100 : vector<8x16xf32>
    %102 = arith.addf %98, %101 : vector<8x16xf32>
    %c7_71 = arith.constant 7 : index
    %103 = memref.load %arg2[%c7_71] : memref<288xf32, #tpu.memory_space<smem>>
    %104 = vector.broadcast %103 : f32 to vector<8x16xf32>
    %105 = arith.mulf %72, %104 : vector<8x16xf32>
    %106 = arith.addf %102, %105 : vector<8x16xf32>
    %c8 = arith.constant 8 : index
    %107 = memref.load %arg2[%c8] : memref<288xf32, #tpu.memory_space<smem>>
    %108 = vector.broadcast %107 : f32 to vector<8x16xf32>
    %109 = arith.mulf %74, %108 : vector<8x16xf32>
    %110 = arith.addf %106, %109 : vector<8x16xf32>
    %c36 = arith.constant 36 : index
    %111 = memref.load %arg2[%c36] : memref<288xf32, #tpu.memory_space<smem>>
    %112 = vector.broadcast %111 : f32 to vector<8x16xf32>
    %113 = arith.mulf %58, %112 : vector<8x16xf32>
    %114 = arith.addf %32, %113 : vector<8x16xf32>
    %c37 = arith.constant 37 : index
    %115 = memref.load %arg2[%c37] : memref<288xf32, #tpu.memory_space<smem>>
    %116 = vector.broadcast %115 : f32 to vector<8x16xf32>
    %117 = arith.mulf %60, %116 : vector<8x16xf32>
    %118 = arith.addf %114, %117 : vector<8x16xf32>
    %c38 = arith.constant 38 : index
    %119 = memref.load %arg2[%c38] : memref<288xf32, #tpu.memory_space<smem>>
    %120 = vector.broadcast %119 : f32 to vector<8x16xf32>
    %121 = arith.mulf %62, %120 : vector<8x16xf32>
    %122 = arith.addf %118, %121 : vector<8x16xf32>
    %c39 = arith.constant 39 : index
    %123 = memref.load %arg2[%c39] : memref<288xf32, #tpu.memory_space<smem>>
    %124 = vector.broadcast %123 : f32 to vector<8x16xf32>
    %125 = arith.mulf %64, %124 : vector<8x16xf32>
    %126 = arith.addf %122, %125 : vector<8x16xf32>
    %c40 = arith.constant 40 : index
    %127 = memref.load %arg2[%c40] : memref<288xf32, #tpu.memory_space<smem>>
    %128 = vector.broadcast %127 : f32 to vector<8x16xf32>
    %129 = arith.mulf %66, %128 : vector<8x16xf32>
    %130 = arith.addf %126, %129 : vector<8x16xf32>
    %c41 = arith.constant 41 : index
    %131 = memref.load %arg2[%c41] : memref<288xf32, #tpu.memory_space<smem>>
    %132 = vector.broadcast %131 : f32 to vector<8x16xf32>
    %133 = arith.mulf %68, %132 : vector<8x16xf32>
    %134 = arith.addf %130, %133 : vector<8x16xf32>
    %c42 = arith.constant 42 : index
    %135 = memref.load %arg2[%c42] : memref<288xf32, #tpu.memory_space<smem>>
    %136 = vector.broadcast %135 : f32 to vector<8x16xf32>
    %137 = arith.mulf %70, %136 : vector<8x16xf32>
    %138 = arith.addf %134, %137 : vector<8x16xf32>
    %c43 = arith.constant 43 : index
    %139 = memref.load %arg2[%c43] : memref<288xf32, #tpu.memory_space<smem>>
    %140 = vector.broadcast %139 : f32 to vector<8x16xf32>
    %141 = arith.mulf %72, %140 : vector<8x16xf32>
    %142 = arith.addf %138, %141 : vector<8x16xf32>
    %c44 = arith.constant 44 : index
    %143 = memref.load %arg2[%c44] : memref<288xf32, #tpu.memory_space<smem>>
    %144 = vector.broadcast %143 : f32 to vector<8x16xf32>
    %145 = arith.mulf %74, %144 : vector<8x16xf32>
    %146 = arith.addf %142, %145 : vector<8x16xf32>
    %c72 = arith.constant 72 : index
    %147 = memref.load %arg2[%c72] : memref<288xf32, #tpu.memory_space<smem>>
    %148 = vector.broadcast %147 : f32 to vector<8x16xf32>
    %149 = arith.mulf %58, %148 : vector<8x16xf32>
    %150 = arith.addf %36, %149 : vector<8x16xf32>
    %c73 = arith.constant 73 : index
    %151 = memref.load %arg2[%c73] : memref<288xf32, #tpu.memory_space<smem>>
    %152 = vector.broadcast %151 : f32 to vector<8x16xf32>
    %153 = arith.mulf %60, %152 : vector<8x16xf32>
    %154 = arith.addf %150, %153 : vector<8x16xf32>
    %c74 = arith.constant 74 : index
    %155 = memref.load %arg2[%c74] : memref<288xf32, #tpu.memory_space<smem>>
    %156 = vector.broadcast %155 : f32 to vector<8x16xf32>
    %157 = arith.mulf %62, %156 : vector<8x16xf32>
    %158 = arith.addf %154, %157 : vector<8x16xf32>
    %c75 = arith.constant 75 : index
    %159 = memref.load %arg2[%c75] : memref<288xf32, #tpu.memory_space<smem>>
    %160 = vector.broadcast %159 : f32 to vector<8x16xf32>
    %161 = arith.mulf %64, %160 : vector<8x16xf32>
    %162 = arith.addf %158, %161 : vector<8x16xf32>
    %c76 = arith.constant 76 : index
    %163 = memref.load %arg2[%c76] : memref<288xf32, #tpu.memory_space<smem>>
    %164 = vector.broadcast %163 : f32 to vector<8x16xf32>
    %165 = arith.mulf %66, %164 : vector<8x16xf32>
    %166 = arith.addf %162, %165 : vector<8x16xf32>
    %c77 = arith.constant 77 : index
    %167 = memref.load %arg2[%c77] : memref<288xf32, #tpu.memory_space<smem>>
    %168 = vector.broadcast %167 : f32 to vector<8x16xf32>
    %169 = arith.mulf %68, %168 : vector<8x16xf32>
    %170 = arith.addf %166, %169 : vector<8x16xf32>
    %c78 = arith.constant 78 : index
    %171 = memref.load %arg2[%c78] : memref<288xf32, #tpu.memory_space<smem>>
    %172 = vector.broadcast %171 : f32 to vector<8x16xf32>
    %173 = arith.mulf %70, %172 : vector<8x16xf32>
    %174 = arith.addf %170, %173 : vector<8x16xf32>
    %c79 = arith.constant 79 : index
    %175 = memref.load %arg2[%c79] : memref<288xf32, #tpu.memory_space<smem>>
    %176 = vector.broadcast %175 : f32 to vector<8x16xf32>
    %177 = arith.mulf %72, %176 : vector<8x16xf32>
    %178 = arith.addf %174, %177 : vector<8x16xf32>
    %c80 = arith.constant 80 : index
    %179 = memref.load %arg2[%c80] : memref<288xf32, #tpu.memory_space<smem>>
    %180 = vector.broadcast %179 : f32 to vector<8x16xf32>
    %181 = arith.mulf %74, %180 : vector<8x16xf32>
    %182 = arith.addf %178, %181 : vector<8x16xf32>
    %c108 = arith.constant 108 : index
    %183 = memref.load %arg2[%c108] : memref<288xf32, #tpu.memory_space<smem>>
    %184 = vector.broadcast %183 : f32 to vector<8x16xf32>
    %185 = arith.mulf %58, %184 : vector<8x16xf32>
    %186 = arith.addf %40, %185 : vector<8x16xf32>
    %c109 = arith.constant 109 : index
    %187 = memref.load %arg2[%c109] : memref<288xf32, #tpu.memory_space<smem>>
    %188 = vector.broadcast %187 : f32 to vector<8x16xf32>
    %189 = arith.mulf %60, %188 : vector<8x16xf32>
    %190 = arith.addf %186, %189 : vector<8x16xf32>
    %c110 = arith.constant 110 : index
    %191 = memref.load %arg2[%c110] : memref<288xf32, #tpu.memory_space<smem>>
    %192 = vector.broadcast %191 : f32 to vector<8x16xf32>
    %193 = arith.mulf %62, %192 : vector<8x16xf32>
    %194 = arith.addf %190, %193 : vector<8x16xf32>
    %c111 = arith.constant 111 : index
    %195 = memref.load %arg2[%c111] : memref<288xf32, #tpu.memory_space<smem>>
    %196 = vector.broadcast %195 : f32 to vector<8x16xf32>
    %197 = arith.mulf %64, %196 : vector<8x16xf32>
    %198 = arith.addf %194, %197 : vector<8x16xf32>
    %c112 = arith.constant 112 : index
    %199 = memref.load %arg2[%c112] : memref<288xf32, #tpu.memory_space<smem>>
    %200 = vector.broadcast %199 : f32 to vector<8x16xf32>
    %201 = arith.mulf %66, %200 : vector<8x16xf32>
    %202 = arith.addf %198, %201 : vector<8x16xf32>
    %c113 = arith.constant 113 : index
    %203 = memref.load %arg2[%c113] : memref<288xf32, #tpu.memory_space<smem>>
    %204 = vector.broadcast %203 : f32 to vector<8x16xf32>
    %205 = arith.mulf %68, %204 : vector<8x16xf32>
    %206 = arith.addf %202, %205 : vector<8x16xf32>
    %c114 = arith.constant 114 : index
    %207 = memref.load %arg2[%c114] : memref<288xf32, #tpu.memory_space<smem>>
    %208 = vector.broadcast %207 : f32 to vector<8x16xf32>
    %209 = arith.mulf %70, %208 : vector<8x16xf32>
    %210 = arith.addf %206, %209 : vector<8x16xf32>
    %c115 = arith.constant 115 : index
    %211 = memref.load %arg2[%c115] : memref<288xf32, #tpu.memory_space<smem>>
    %212 = vector.broadcast %211 : f32 to vector<8x16xf32>
    %213 = arith.mulf %72, %212 : vector<8x16xf32>
    %214 = arith.addf %210, %213 : vector<8x16xf32>
    %c116 = arith.constant 116 : index
    %215 = memref.load %arg2[%c116] : memref<288xf32, #tpu.memory_space<smem>>
    %216 = vector.broadcast %215 : f32 to vector<8x16xf32>
    %217 = arith.mulf %74, %216 : vector<8x16xf32>
    %218 = arith.addf %214, %217 : vector<8x16xf32>
    %c144 = arith.constant 144 : index
    %219 = memref.load %arg2[%c144] : memref<288xf32, #tpu.memory_space<smem>>
    %220 = vector.broadcast %219 : f32 to vector<8x16xf32>
    %221 = arith.mulf %58, %220 : vector<8x16xf32>
    %222 = arith.addf %44, %221 : vector<8x16xf32>
    %c145 = arith.constant 145 : index
    %223 = memref.load %arg2[%c145] : memref<288xf32, #tpu.memory_space<smem>>
    %224 = vector.broadcast %223 : f32 to vector<8x16xf32>
    %225 = arith.mulf %60, %224 : vector<8x16xf32>
    %226 = arith.addf %222, %225 : vector<8x16xf32>
    %c146 = arith.constant 146 : index
    %227 = memref.load %arg2[%c146] : memref<288xf32, #tpu.memory_space<smem>>
    %228 = vector.broadcast %227 : f32 to vector<8x16xf32>
    %229 = arith.mulf %62, %228 : vector<8x16xf32>
    %230 = arith.addf %226, %229 : vector<8x16xf32>
    %c147 = arith.constant 147 : index
    %231 = memref.load %arg2[%c147] : memref<288xf32, #tpu.memory_space<smem>>
    %232 = vector.broadcast %231 : f32 to vector<8x16xf32>
    %233 = arith.mulf %64, %232 : vector<8x16xf32>
    %234 = arith.addf %230, %233 : vector<8x16xf32>
    %c148 = arith.constant 148 : index
    %235 = memref.load %arg2[%c148] : memref<288xf32, #tpu.memory_space<smem>>
    %236 = vector.broadcast %235 : f32 to vector<8x16xf32>
    %237 = arith.mulf %66, %236 : vector<8x16xf32>
    %238 = arith.addf %234, %237 : vector<8x16xf32>
    %c149 = arith.constant 149 : index
    %239 = memref.load %arg2[%c149] : memref<288xf32, #tpu.memory_space<smem>>
    %240 = vector.broadcast %239 : f32 to vector<8x16xf32>
    %241 = arith.mulf %68, %240 : vector<8x16xf32>
    %242 = arith.addf %238, %241 : vector<8x16xf32>
    %c150 = arith.constant 150 : index
    %243 = memref.load %arg2[%c150] : memref<288xf32, #tpu.memory_space<smem>>
    %244 = vector.broadcast %243 : f32 to vector<8x16xf32>
    %245 = arith.mulf %70, %244 : vector<8x16xf32>
    %246 = arith.addf %242, %245 : vector<8x16xf32>
    %c151 = arith.constant 151 : index
    %247 = memref.load %arg2[%c151] : memref<288xf32, #tpu.memory_space<smem>>
    %248 = vector.broadcast %247 : f32 to vector<8x16xf32>
    %249 = arith.mulf %72, %248 : vector<8x16xf32>
    %250 = arith.addf %246, %249 : vector<8x16xf32>
    %c152 = arith.constant 152 : index
    %251 = memref.load %arg2[%c152] : memref<288xf32, #tpu.memory_space<smem>>
    %252 = vector.broadcast %251 : f32 to vector<8x16xf32>
    %253 = arith.mulf %74, %252 : vector<8x16xf32>
    %254 = arith.addf %250, %253 : vector<8x16xf32>
    %c180 = arith.constant 180 : index
    %255 = memref.load %arg2[%c180] : memref<288xf32, #tpu.memory_space<smem>>
    %256 = vector.broadcast %255 : f32 to vector<8x16xf32>
    %257 = arith.mulf %58, %256 : vector<8x16xf32>
    %258 = arith.addf %48, %257 : vector<8x16xf32>
    %c181 = arith.constant 181 : index
    %259 = memref.load %arg2[%c181] : memref<288xf32, #tpu.memory_space<smem>>
    %260 = vector.broadcast %259 : f32 to vector<8x16xf32>
    %261 = arith.mulf %60, %260 : vector<8x16xf32>
    %262 = arith.addf %258, %261 : vector<8x16xf32>
    %c182 = arith.constant 182 : index
    %263 = memref.load %arg2[%c182] : memref<288xf32, #tpu.memory_space<smem>>
    %264 = vector.broadcast %263 : f32 to vector<8x16xf32>
    %265 = arith.mulf %62, %264 : vector<8x16xf32>
    %266 = arith.addf %262, %265 : vector<8x16xf32>
    %c183 = arith.constant 183 : index
    %267 = memref.load %arg2[%c183] : memref<288xf32, #tpu.memory_space<smem>>
    %268 = vector.broadcast %267 : f32 to vector<8x16xf32>
    %269 = arith.mulf %64, %268 : vector<8x16xf32>
    %270 = arith.addf %266, %269 : vector<8x16xf32>
    %c184 = arith.constant 184 : index
    %271 = memref.load %arg2[%c184] : memref<288xf32, #tpu.memory_space<smem>>
    %272 = vector.broadcast %271 : f32 to vector<8x16xf32>
    %273 = arith.mulf %66, %272 : vector<8x16xf32>
    %274 = arith.addf %270, %273 : vector<8x16xf32>
    %c185 = arith.constant 185 : index
    %275 = memref.load %arg2[%c185] : memref<288xf32, #tpu.memory_space<smem>>
    %276 = vector.broadcast %275 : f32 to vector<8x16xf32>
    %277 = arith.mulf %68, %276 : vector<8x16xf32>
    %278 = arith.addf %274, %277 : vector<8x16xf32>
    %c186 = arith.constant 186 : index
    %279 = memref.load %arg2[%c186] : memref<288xf32, #tpu.memory_space<smem>>
    %280 = vector.broadcast %279 : f32 to vector<8x16xf32>
    %281 = arith.mulf %70, %280 : vector<8x16xf32>
    %282 = arith.addf %278, %281 : vector<8x16xf32>
    %c187 = arith.constant 187 : index
    %283 = memref.load %arg2[%c187] : memref<288xf32, #tpu.memory_space<smem>>
    %284 = vector.broadcast %283 : f32 to vector<8x16xf32>
    %285 = arith.mulf %72, %284 : vector<8x16xf32>
    %286 = arith.addf %282, %285 : vector<8x16xf32>
    %c188 = arith.constant 188 : index
    %287 = memref.load %arg2[%c188] : memref<288xf32, #tpu.memory_space<smem>>
    %288 = vector.broadcast %287 : f32 to vector<8x16xf32>
    %289 = arith.mulf %74, %288 : vector<8x16xf32>
    %290 = arith.addf %286, %289 : vector<8x16xf32>
    %c216 = arith.constant 216 : index
    %291 = memref.load %arg2[%c216] : memref<288xf32, #tpu.memory_space<smem>>
    %292 = vector.broadcast %291 : f32 to vector<8x16xf32>
    %293 = arith.mulf %58, %292 : vector<8x16xf32>
    %294 = arith.addf %52, %293 : vector<8x16xf32>
    %c217 = arith.constant 217 : index
    %295 = memref.load %arg2[%c217] : memref<288xf32, #tpu.memory_space<smem>>
    %296 = vector.broadcast %295 : f32 to vector<8x16xf32>
    %297 = arith.mulf %60, %296 : vector<8x16xf32>
    %298 = arith.addf %294, %297 : vector<8x16xf32>
    %c218 = arith.constant 218 : index
    %299 = memref.load %arg2[%c218] : memref<288xf32, #tpu.memory_space<smem>>
    %300 = vector.broadcast %299 : f32 to vector<8x16xf32>
    %301 = arith.mulf %62, %300 : vector<8x16xf32>
    %302 = arith.addf %298, %301 : vector<8x16xf32>
    %c219 = arith.constant 219 : index
    %303 = memref.load %arg2[%c219] : memref<288xf32, #tpu.memory_space<smem>>
    %304 = vector.broadcast %303 : f32 to vector<8x16xf32>
    %305 = arith.mulf %64, %304 : vector<8x16xf32>
    %306 = arith.addf %302, %305 : vector<8x16xf32>
    %c220 = arith.constant 220 : index
    %307 = memref.load %arg2[%c220] : memref<288xf32, #tpu.memory_space<smem>>
    %308 = vector.broadcast %307 : f32 to vector<8x16xf32>
    %309 = arith.mulf %66, %308 : vector<8x16xf32>
    %310 = arith.addf %306, %309 : vector<8x16xf32>
    %c221 = arith.constant 221 : index
    %311 = memref.load %arg2[%c221] : memref<288xf32, #tpu.memory_space<smem>>
    %312 = vector.broadcast %311 : f32 to vector<8x16xf32>
    %313 = arith.mulf %68, %312 : vector<8x16xf32>
    %314 = arith.addf %310, %313 : vector<8x16xf32>
    %c222 = arith.constant 222 : index
    %315 = memref.load %arg2[%c222] : memref<288xf32, #tpu.memory_space<smem>>
    %316 = vector.broadcast %315 : f32 to vector<8x16xf32>
    %317 = arith.mulf %70, %316 : vector<8x16xf32>
    %318 = arith.addf %314, %317 : vector<8x16xf32>
    %c223 = arith.constant 223 : index
    %319 = memref.load %arg2[%c223] : memref<288xf32, #tpu.memory_space<smem>>
    %320 = vector.broadcast %319 : f32 to vector<8x16xf32>
    %321 = arith.mulf %72, %320 : vector<8x16xf32>
    %322 = arith.addf %318, %321 : vector<8x16xf32>
    %c224 = arith.constant 224 : index
    %323 = memref.load %arg2[%c224] : memref<288xf32, #tpu.memory_space<smem>>
    %324 = vector.broadcast %323 : f32 to vector<8x16xf32>
    %325 = arith.mulf %74, %324 : vector<8x16xf32>
    %326 = arith.addf %322, %325 : vector<8x16xf32>
    %c252 = arith.constant 252 : index
    %327 = memref.load %arg2[%c252] : memref<288xf32, #tpu.memory_space<smem>>
    %328 = vector.broadcast %327 : f32 to vector<8x16xf32>
    %329 = arith.mulf %58, %328 : vector<8x16xf32>
    %330 = arith.addf %56, %329 : vector<8x16xf32>
    %c253 = arith.constant 253 : index
    %331 = memref.load %arg2[%c253] : memref<288xf32, #tpu.memory_space<smem>>
    %332 = vector.broadcast %331 : f32 to vector<8x16xf32>
    %333 = arith.mulf %60, %332 : vector<8x16xf32>
    %334 = arith.addf %330, %333 : vector<8x16xf32>
    %c254 = arith.constant 254 : index
    %335 = memref.load %arg2[%c254] : memref<288xf32, #tpu.memory_space<smem>>
    %336 = vector.broadcast %335 : f32 to vector<8x16xf32>
    %337 = arith.mulf %62, %336 : vector<8x16xf32>
    %338 = arith.addf %334, %337 : vector<8x16xf32>
    %c255 = arith.constant 255 : index
    %339 = memref.load %arg2[%c255] : memref<288xf32, #tpu.memory_space<smem>>
    %340 = vector.broadcast %339 : f32 to vector<8x16xf32>
    %341 = arith.mulf %64, %340 : vector<8x16xf32>
    %342 = arith.addf %338, %341 : vector<8x16xf32>
    %c256 = arith.constant 256 : index
    %343 = memref.load %arg2[%c256] : memref<288xf32, #tpu.memory_space<smem>>
    %344 = vector.broadcast %343 : f32 to vector<8x16xf32>
    %345 = arith.mulf %66, %344 : vector<8x16xf32>
    %346 = arith.addf %342, %345 : vector<8x16xf32>
    %c257 = arith.constant 257 : index
    %347 = memref.load %arg2[%c257] : memref<288xf32, #tpu.memory_space<smem>>
    %348 = vector.broadcast %347 : f32 to vector<8x16xf32>
    %349 = arith.mulf %68, %348 : vector<8x16xf32>
    %350 = arith.addf %346, %349 : vector<8x16xf32>
    %c258 = arith.constant 258 : index
    %351 = memref.load %arg2[%c258] : memref<288xf32, #tpu.memory_space<smem>>
    %352 = vector.broadcast %351 : f32 to vector<8x16xf32>
    %353 = arith.mulf %70, %352 : vector<8x16xf32>
    %354 = arith.addf %350, %353 : vector<8x16xf32>
    %c259 = arith.constant 259 : index
    %355 = memref.load %arg2[%c259] : memref<288xf32, #tpu.memory_space<smem>>
    %356 = vector.broadcast %355 : f32 to vector<8x16xf32>
    %357 = arith.mulf %72, %356 : vector<8x16xf32>
    %358 = arith.addf %354, %357 : vector<8x16xf32>
    %c260 = arith.constant 260 : index
    %359 = memref.load %arg2[%c260] : memref<288xf32, #tpu.memory_space<smem>>
    %360 = vector.broadcast %359 : f32 to vector<8x16xf32>
    %361 = arith.mulf %74, %360 : vector<8x16xf32>
    %362 = arith.addf %358, %361 : vector<8x16xf32>
    %c1_72 = arith.constant 1 : index
    %c0_73 = arith.constant 0 : index
    %c0_74 = arith.constant 0 : index
    %363 = vector.load %arg6[%c1_72, %c0_73, %c0_74] : memref<4x10x18xf32, #tpu.memory_space<vmem>>, vector<1x8x16xf32>
    %364 = vector.shape_cast %363 : vector<1x8x16xf32> to vector<8x16xf32>
    %c1_75 = arith.constant 1 : index
    %c0_76 = arith.constant 0 : index
    %c1_77 = arith.constant 1 : index
    %365 = vector.load %arg6[%c1_75, %c0_76, %c1_77] : memref<4x10x18xf32, #tpu.memory_space<vmem>>, vector<1x8x16xf32>
    %366 = vector.shape_cast %365 : vector<1x8x16xf32> to vector<8x16xf32>
    %c1_78 = arith.constant 1 : index
    %c0_79 = arith.constant 0 : index
    %c2_80 = arith.constant 2 : index
    %367 = vector.load %arg6[%c1_78, %c0_79, %c2_80] : memref<4x10x18xf32, #tpu.memory_space<vmem>>, vector<1x8x16xf32>
    %368 = vector.shape_cast %367 : vector<1x8x16xf32> to vector<8x16xf32>
    %c1_81 = arith.constant 1 : index
    %c1_82 = arith.constant 1 : index
    %c0_83 = arith.constant 0 : index
    %369 = vector.load %arg6[%c1_81, %c1_82, %c0_83] : memref<4x10x18xf32, #tpu.memory_space<vmem>>, vector<1x8x16xf32>
    %370 = vector.shape_cast %369 : vector<1x8x16xf32> to vector<8x16xf32>
    %c1_84 = arith.constant 1 : index
    %c1_85 = arith.constant 1 : index
    %c1_86 = arith.constant 1 : index
    %371 = vector.load %arg6[%c1_84, %c1_85, %c1_86] : memref<4x10x18xf32, #tpu.memory_space<vmem>>, vector<1x8x16xf32>
    %372 = vector.shape_cast %371 : vector<1x8x16xf32> to vector<8x16xf32>
    %c1_87 = arith.constant 1 : index
    %c1_88 = arith.constant 1 : index
    %c2_89 = arith.constant 2 : index
    %373 = vector.load %arg6[%c1_87, %c1_88, %c2_89] : memref<4x10x18xf32, #tpu.memory_space<vmem>>, vector<1x8x16xf32>
    %374 = vector.shape_cast %373 : vector<1x8x16xf32> to vector<8x16xf32>
    %c1_90 = arith.constant 1 : index
    %c2_91 = arith.constant 2 : index
    %c0_92 = arith.constant 0 : index
    %375 = vector.load %arg6[%c1_90, %c2_91, %c0_92] : memref<4x10x18xf32, #tpu.memory_space<vmem>>, vector<1x8x16xf32>
    %376 = vector.shape_cast %375 : vector<1x8x16xf32> to vector<8x16xf32>
    %c1_93 = arith.constant 1 : index
    %c2_94 = arith.constant 2 : index
    %c1_95 = arith.constant 1 : index
    %377 = vector.load %arg6[%c1_93, %c2_94, %c1_95] : memref<4x10x18xf32, #tpu.memory_space<vmem>>, vector<1x8x16xf32>
    %378 = vector.shape_cast %377 : vector<1x8x16xf32> to vector<8x16xf32>
    %c1_96 = arith.constant 1 : index
    %c2_97 = arith.constant 2 : index
    %c2_98 = arith.constant 2 : index
    %379 = vector.load %arg6[%c1_96, %c2_97, %c2_98] : memref<4x10x18xf32, #tpu.memory_space<vmem>>, vector<1x8x16xf32>
    %380 = vector.shape_cast %379 : vector<1x8x16xf32> to vector<8x16xf32>
    %c9_99 = arith.constant 9 : index
    %381 = memref.load %arg2[%c9_99] : memref<288xf32, #tpu.memory_space<smem>>
    %382 = vector.broadcast %381 : f32 to vector<8x16xf32>
    %383 = arith.mulf %364, %382 : vector<8x16xf32>
    %384 = arith.addf %110, %383 : vector<8x16xf32>
    %c10 = arith.constant 10 : index
    %385 = memref.load %arg2[%c10] : memref<288xf32, #tpu.memory_space<smem>>
    %386 = vector.broadcast %385 : f32 to vector<8x16xf32>
    %387 = arith.mulf %366, %386 : vector<8x16xf32>
    %388 = arith.addf %384, %387 : vector<8x16xf32>
    %c11 = arith.constant 11 : index
    %389 = memref.load %arg2[%c11] : memref<288xf32, #tpu.memory_space<smem>>
    %390 = vector.broadcast %389 : f32 to vector<8x16xf32>
    %391 = arith.mulf %368, %390 : vector<8x16xf32>
    %392 = arith.addf %388, %391 : vector<8x16xf32>
    %c12 = arith.constant 12 : index
    %393 = memref.load %arg2[%c12] : memref<288xf32, #tpu.memory_space<smem>>
    %394 = vector.broadcast %393 : f32 to vector<8x16xf32>
    %395 = arith.mulf %370, %394 : vector<8x16xf32>
    %396 = arith.addf %392, %395 : vector<8x16xf32>
    %c13 = arith.constant 13 : index
    %397 = memref.load %arg2[%c13] : memref<288xf32, #tpu.memory_space<smem>>
    %398 = vector.broadcast %397 : f32 to vector<8x16xf32>
    %399 = arith.mulf %372, %398 : vector<8x16xf32>
    %400 = arith.addf %396, %399 : vector<8x16xf32>
    %c14 = arith.constant 14 : index
    %401 = memref.load %arg2[%c14] : memref<288xf32, #tpu.memory_space<smem>>
    %402 = vector.broadcast %401 : f32 to vector<8x16xf32>
    %403 = arith.mulf %374, %402 : vector<8x16xf32>
    %404 = arith.addf %400, %403 : vector<8x16xf32>
    %c15_100 = arith.constant 15 : index
    %405 = memref.load %arg2[%c15_100] : memref<288xf32, #tpu.memory_space<smem>>
    %406 = vector.broadcast %405 : f32 to vector<8x16xf32>
    %407 = arith.mulf %376, %406 : vector<8x16xf32>
    %408 = arith.addf %404, %407 : vector<8x16xf32>
    %c16 = arith.constant 16 : index
    %409 = memref.load %arg2[%c16] : memref<288xf32, #tpu.memory_space<smem>>
    %410 = vector.broadcast %409 : f32 to vector<8x16xf32>
    %411 = arith.mulf %378, %410 : vector<8x16xf32>
    %412 = arith.addf %408, %411 : vector<8x16xf32>
    %c17_101 = arith.constant 17 : index
    %413 = memref.load %arg2[%c17_101] : memref<288xf32, #tpu.memory_space<smem>>
    %414 = vector.broadcast %413 : f32 to vector<8x16xf32>
    %415 = arith.mulf %380, %414 : vector<8x16xf32>
    %416 = arith.addf %412, %415 : vector<8x16xf32>
    %c45 = arith.constant 45 : index
    %417 = memref.load %arg2[%c45] : memref<288xf32, #tpu.memory_space<smem>>
    %418 = vector.broadcast %417 : f32 to vector<8x16xf32>
    %419 = arith.mulf %364, %418 : vector<8x16xf32>
    %420 = arith.addf %146, %419 : vector<8x16xf32>
    %c46 = arith.constant 46 : index
    %421 = memref.load %arg2[%c46] : memref<288xf32, #tpu.memory_space<smem>>
    %422 = vector.broadcast %421 : f32 to vector<8x16xf32>
    %423 = arith.mulf %366, %422 : vector<8x16xf32>
    %424 = arith.addf %420, %423 : vector<8x16xf32>
    %c47 = arith.constant 47 : index
    %425 = memref.load %arg2[%c47] : memref<288xf32, #tpu.memory_space<smem>>
    %426 = vector.broadcast %425 : f32 to vector<8x16xf32>
    %427 = arith.mulf %368, %426 : vector<8x16xf32>
    %428 = arith.addf %424, %427 : vector<8x16xf32>
    %c48 = arith.constant 48 : index
    %429 = memref.load %arg2[%c48] : memref<288xf32, #tpu.memory_space<smem>>
    %430 = vector.broadcast %429 : f32 to vector<8x16xf32>
    %431 = arith.mulf %370, %430 : vector<8x16xf32>
    %432 = arith.addf %428, %431 : vector<8x16xf32>
    %c49 = arith.constant 49 : index
    %433 = memref.load %arg2[%c49] : memref<288xf32, #tpu.memory_space<smem>>
    %434 = vector.broadcast %433 : f32 to vector<8x16xf32>
    %435 = arith.mulf %372, %434 : vector<8x16xf32>
    %436 = arith.addf %432, %435 : vector<8x16xf32>
    %c50 = arith.constant 50 : index
    %437 = memref.load %arg2[%c50] : memref<288xf32, #tpu.memory_space<smem>>
    %438 = vector.broadcast %437 : f32 to vector<8x16xf32>
    %439 = arith.mulf %374, %438 : vector<8x16xf32>
    %440 = arith.addf %436, %439 : vector<8x16xf32>
    %c51 = arith.constant 51 : index
    %441 = memref.load %arg2[%c51] : memref<288xf32, #tpu.memory_space<smem>>
    %442 = vector.broadcast %441 : f32 to vector<8x16xf32>
    %443 = arith.mulf %376, %442 : vector<8x16xf32>
    %444 = arith.addf %440, %443 : vector<8x16xf32>
    %c52 = arith.constant 52 : index
    %445 = memref.load %arg2[%c52] : memref<288xf32, #tpu.memory_space<smem>>
    %446 = vector.broadcast %445 : f32 to vector<8x16xf32>
    %447 = arith.mulf %378, %446 : vector<8x16xf32>
    %448 = arith.addf %444, %447 : vector<8x16xf32>
    %c53 = arith.constant 53 : index
    %449 = memref.load %arg2[%c53] : memref<288xf32, #tpu.memory_space<smem>>
    %450 = vector.broadcast %449 : f32 to vector<8x16xf32>
    %451 = arith.mulf %380, %450 : vector<8x16xf32>
    %452 = arith.addf %448, %451 : vector<8x16xf32>
    %c81 = arith.constant 81 : index
    %453 = memref.load %arg2[%c81] : memref<288xf32, #tpu.memory_space<smem>>
    %454 = vector.broadcast %453 : f32 to vector<8x16xf32>
    %455 = arith.mulf %364, %454 : vector<8x16xf32>
    %456 = arith.addf %182, %455 : vector<8x16xf32>
    %c82 = arith.constant 82 : index
    %457 = memref.load %arg2[%c82] : memref<288xf32, #tpu.memory_space<smem>>
    %458 = vector.broadcast %457 : f32 to vector<8x16xf32>
    %459 = arith.mulf %366, %458 : vector<8x16xf32>
    %460 = arith.addf %456, %459 : vector<8x16xf32>
    %c83 = arith.constant 83 : index
    %461 = memref.load %arg2[%c83] : memref<288xf32, #tpu.memory_space<smem>>
    %462 = vector.broadcast %461 : f32 to vector<8x16xf32>
    %463 = arith.mulf %368, %462 : vector<8x16xf32>
    %464 = arith.addf %460, %463 : vector<8x16xf32>
    %c84 = arith.constant 84 : index
    %465 = memref.load %arg2[%c84] : memref<288xf32, #tpu.memory_space<smem>>
    %466 = vector.broadcast %465 : f32 to vector<8x16xf32>
    %467 = arith.mulf %370, %466 : vector<8x16xf32>
    %468 = arith.addf %464, %467 : vector<8x16xf32>
    %c85 = arith.constant 85 : index
    %469 = memref.load %arg2[%c85] : memref<288xf32, #tpu.memory_space<smem>>
    %470 = vector.broadcast %469 : f32 to vector<8x16xf32>
    %471 = arith.mulf %372, %470 : vector<8x16xf32>
    %472 = arith.addf %468, %471 : vector<8x16xf32>
    %c86 = arith.constant 86 : index
    %473 = memref.load %arg2[%c86] : memref<288xf32, #tpu.memory_space<smem>>
    %474 = vector.broadcast %473 : f32 to vector<8x16xf32>
    %475 = arith.mulf %374, %474 : vector<8x16xf32>
    %476 = arith.addf %472, %475 : vector<8x16xf32>
    %c87 = arith.constant 87 : index
    %477 = memref.load %arg2[%c87] : memref<288xf32, #tpu.memory_space<smem>>
    %478 = vector.broadcast %477 : f32 to vector<8x16xf32>
    %479 = arith.mulf %376, %478 : vector<8x16xf32>
    %480 = arith.addf %476, %479 : vector<8x16xf32>
    %c88 = arith.constant 88 : index
    %481 = memref.load %arg2[%c88] : memref<288xf32, #tpu.memory_space<smem>>
    %482 = vector.broadcast %481 : f32 to vector<8x16xf32>
    %483 = arith.mulf %378, %482 : vector<8x16xf32>
    %484 = arith.addf %480, %483 : vector<8x16xf32>
    %c89 = arith.constant 89 : index
    %485 = memref.load %arg2[%c89] : memref<288xf32, #tpu.memory_space<smem>>
    %486 = vector.broadcast %485 : f32 to vector<8x16xf32>
    %487 = arith.mulf %380, %486 : vector<8x16xf32>
    %488 = arith.addf %484, %487 : vector<8x16xf32>
    %c117 = arith.constant 117 : index
    %489 = memref.load %arg2[%c117] : memref<288xf32, #tpu.memory_space<smem>>
    %490 = vector.broadcast %489 : f32 to vector<8x16xf32>
    %491 = arith.mulf %364, %490 : vector<8x16xf32>
    %492 = arith.addf %218, %491 : vector<8x16xf32>
    %c118 = arith.constant 118 : index
    %493 = memref.load %arg2[%c118] : memref<288xf32, #tpu.memory_space<smem>>
    %494 = vector.broadcast %493 : f32 to vector<8x16xf32>
    %495 = arith.mulf %366, %494 : vector<8x16xf32>
    %496 = arith.addf %492, %495 : vector<8x16xf32>
    %c119 = arith.constant 119 : index
    %497 = memref.load %arg2[%c119] : memref<288xf32, #tpu.memory_space<smem>>
    %498 = vector.broadcast %497 : f32 to vector<8x16xf32>
    %499 = arith.mulf %368, %498 : vector<8x16xf32>
    %500 = arith.addf %496, %499 : vector<8x16xf32>
    %c120 = arith.constant 120 : index
    %501 = memref.load %arg2[%c120] : memref<288xf32, #tpu.memory_space<smem>>
    %502 = vector.broadcast %501 : f32 to vector<8x16xf32>
    %503 = arith.mulf %370, %502 : vector<8x16xf32>
    %504 = arith.addf %500, %503 : vector<8x16xf32>
    %c121 = arith.constant 121 : index
    %505 = memref.load %arg2[%c121] : memref<288xf32, #tpu.memory_space<smem>>
    %506 = vector.broadcast %505 : f32 to vector<8x16xf32>
    %507 = arith.mulf %372, %506 : vector<8x16xf32>
    %508 = arith.addf %504, %507 : vector<8x16xf32>
    %c122 = arith.constant 122 : index
    %509 = memref.load %arg2[%c122] : memref<288xf32, #tpu.memory_space<smem>>
    %510 = vector.broadcast %509 : f32 to vector<8x16xf32>
    %511 = arith.mulf %374, %510 : vector<8x16xf32>
    %512 = arith.addf %508, %511 : vector<8x16xf32>
    %c123 = arith.constant 123 : index
    %513 = memref.load %arg2[%c123] : memref<288xf32, #tpu.memory_space<smem>>
    %514 = vector.broadcast %513 : f32 to vector<8x16xf32>
    %515 = arith.mulf %376, %514 : vector<8x16xf32>
    %516 = arith.addf %512, %515 : vector<8x16xf32>
    %c124 = arith.constant 124 : index
    %517 = memref.load %arg2[%c124] : memref<288xf32, #tpu.memory_space<smem>>
    %518 = vector.broadcast %517 : f32 to vector<8x16xf32>
    %519 = arith.mulf %378, %518 : vector<8x16xf32>
    %520 = arith.addf %516, %519 : vector<8x16xf32>
    %c125 = arith.constant 125 : index
    %521 = memref.load %arg2[%c125] : memref<288xf32, #tpu.memory_space<smem>>
    %522 = vector.broadcast %521 : f32 to vector<8x16xf32>
    %523 = arith.mulf %380, %522 : vector<8x16xf32>
    %524 = arith.addf %520, %523 : vector<8x16xf32>
    %c153 = arith.constant 153 : index
    %525 = memref.load %arg2[%c153] : memref<288xf32, #tpu.memory_space<smem>>
    %526 = vector.broadcast %525 : f32 to vector<8x16xf32>
    %527 = arith.mulf %364, %526 : vector<8x16xf32>
    %528 = arith.addf %254, %527 : vector<8x16xf32>
    %c154 = arith.constant 154 : index
    %529 = memref.load %arg2[%c154] : memref<288xf32, #tpu.memory_space<smem>>
    %530 = vector.broadcast %529 : f32 to vector<8x16xf32>
    %531 = arith.mulf %366, %530 : vector<8x16xf32>
    %532 = arith.addf %528, %531 : vector<8x16xf32>
    %c155 = arith.constant 155 : index
    %533 = memref.load %arg2[%c155] : memref<288xf32, #tpu.memory_space<smem>>
    %534 = vector.broadcast %533 : f32 to vector<8x16xf32>
    %535 = arith.mulf %368, %534 : vector<8x16xf32>
    %536 = arith.addf %532, %535 : vector<8x16xf32>
    %c156 = arith.constant 156 : index
    %537 = memref.load %arg2[%c156] : memref<288xf32, #tpu.memory_space<smem>>
    %538 = vector.broadcast %537 : f32 to vector<8x16xf32>
    %539 = arith.mulf %370, %538 : vector<8x16xf32>
    %540 = arith.addf %536, %539 : vector<8x16xf32>
    %c157 = arith.constant 157 : index
    %541 = memref.load %arg2[%c157] : memref<288xf32, #tpu.memory_space<smem>>
    %542 = vector.broadcast %541 : f32 to vector<8x16xf32>
    %543 = arith.mulf %372, %542 : vector<8x16xf32>
    %544 = arith.addf %540, %543 : vector<8x16xf32>
    %c158 = arith.constant 158 : index
    %545 = memref.load %arg2[%c158] : memref<288xf32, #tpu.memory_space<smem>>
    %546 = vector.broadcast %545 : f32 to vector<8x16xf32>
    %547 = arith.mulf %374, %546 : vector<8x16xf32>
    %548 = arith.addf %544, %547 : vector<8x16xf32>
    %c159 = arith.constant 159 : index
    %549 = memref.load %arg2[%c159] : memref<288xf32, #tpu.memory_space<smem>>
    %550 = vector.broadcast %549 : f32 to vector<8x16xf32>
    %551 = arith.mulf %376, %550 : vector<8x16xf32>
    %552 = arith.addf %548, %551 : vector<8x16xf32>
    %c160 = arith.constant 160 : index
    %553 = memref.load %arg2[%c160] : memref<288xf32, #tpu.memory_space<smem>>
    %554 = vector.broadcast %553 : f32 to vector<8x16xf32>
    %555 = arith.mulf %378, %554 : vector<8x16xf32>
    %556 = arith.addf %552, %555 : vector<8x16xf32>
    %c161 = arith.constant 161 : index
    %557 = memref.load %arg2[%c161] : memref<288xf32, #tpu.memory_space<smem>>
    %558 = vector.broadcast %557 : f32 to vector<8x16xf32>
    %559 = arith.mulf %380, %558 : vector<8x16xf32>
    %560 = arith.addf %556, %559 : vector<8x16xf32>
    %c189 = arith.constant 189 : index
    %561 = memref.load %arg2[%c189] : memref<288xf32, #tpu.memory_space<smem>>
    %562 = vector.broadcast %561 : f32 to vector<8x16xf32>
    %563 = arith.mulf %364, %562 : vector<8x16xf32>
    %564 = arith.addf %290, %563 : vector<8x16xf32>
    %c190 = arith.constant 190 : index
    %565 = memref.load %arg2[%c190] : memref<288xf32, #tpu.memory_space<smem>>
    %566 = vector.broadcast %565 : f32 to vector<8x16xf32>
    %567 = arith.mulf %366, %566 : vector<8x16xf32>
    %568 = arith.addf %564, %567 : vector<8x16xf32>
    %c191 = arith.constant 191 : index
    %569 = memref.load %arg2[%c191] : memref<288xf32, #tpu.memory_space<smem>>
    %570 = vector.broadcast %569 : f32 to vector<8x16xf32>
    %571 = arith.mulf %368, %570 : vector<8x16xf32>
    %572 = arith.addf %568, %571 : vector<8x16xf32>
    %c192 = arith.constant 192 : index
    %573 = memref.load %arg2[%c192] : memref<288xf32, #tpu.memory_space<smem>>
    %574 = vector.broadcast %573 : f32 to vector<8x16xf32>
    %575 = arith.mulf %370, %574 : vector<8x16xf32>
    %576 = arith.addf %572, %575 : vector<8x16xf32>
    %c193 = arith.constant 193 : index
    %577 = memref.load %arg2[%c193] : memref<288xf32, #tpu.memory_space<smem>>
    %578 = vector.broadcast %577 : f32 to vector<8x16xf32>
    %579 = arith.mulf %372, %578 : vector<8x16xf32>
    %580 = arith.addf %576, %579 : vector<8x16xf32>
    %c194 = arith.constant 194 : index
    %581 = memref.load %arg2[%c194] : memref<288xf32, #tpu.memory_space<smem>>
    %582 = vector.broadcast %581 : f32 to vector<8x16xf32>
    %583 = arith.mulf %374, %582 : vector<8x16xf32>
    %584 = arith.addf %580, %583 : vector<8x16xf32>
    %c195 = arith.constant 195 : index
    %585 = memref.load %arg2[%c195] : memref<288xf32, #tpu.memory_space<smem>>
    %586 = vector.broadcast %585 : f32 to vector<8x16xf32>
    %587 = arith.mulf %376, %586 : vector<8x16xf32>
    %588 = arith.addf %584, %587 : vector<8x16xf32>
    %c196 = arith.constant 196 : index
    %589 = memref.load %arg2[%c196] : memref<288xf32, #tpu.memory_space<smem>>
    %590 = vector.broadcast %589 : f32 to vector<8x16xf32>
    %591 = arith.mulf %378, %590 : vector<8x16xf32>
    %592 = arith.addf %588, %591 : vector<8x16xf32>
    %c197 = arith.constant 197 : index
    %593 = memref.load %arg2[%c197] : memref<288xf32, #tpu.memory_space<smem>>
    %594 = vector.broadcast %593 : f32 to vector<8x16xf32>
    %595 = arith.mulf %380, %594 : vector<8x16xf32>
    %596 = arith.addf %592, %595 : vector<8x16xf32>
    %c225 = arith.constant 225 : index
    %597 = memref.load %arg2[%c225] : memref<288xf32, #tpu.memory_space<smem>>
    %598 = vector.broadcast %597 : f32 to vector<8x16xf32>
    %599 = arith.mulf %364, %598 : vector<8x16xf32>
    %600 = arith.addf %326, %599 : vector<8x16xf32>
    %c226 = arith.constant 226 : index
    %601 = memref.load %arg2[%c226] : memref<288xf32, #tpu.memory_space<smem>>
    %602 = vector.broadcast %601 : f32 to vector<8x16xf32>
    %603 = arith.mulf %366, %602 : vector<8x16xf32>
    %604 = arith.addf %600, %603 : vector<8x16xf32>
    %c227 = arith.constant 227 : index
    %605 = memref.load %arg2[%c227] : memref<288xf32, #tpu.memory_space<smem>>
    %606 = vector.broadcast %605 : f32 to vector<8x16xf32>
    %607 = arith.mulf %368, %606 : vector<8x16xf32>
    %608 = arith.addf %604, %607 : vector<8x16xf32>
    %c228 = arith.constant 228 : index
    %609 = memref.load %arg2[%c228] : memref<288xf32, #tpu.memory_space<smem>>
    %610 = vector.broadcast %609 : f32 to vector<8x16xf32>
    %611 = arith.mulf %370, %610 : vector<8x16xf32>
    %612 = arith.addf %608, %611 : vector<8x16xf32>
    %c229 = arith.constant 229 : index
    %613 = memref.load %arg2[%c229] : memref<288xf32, #tpu.memory_space<smem>>
    %614 = vector.broadcast %613 : f32 to vector<8x16xf32>
    %615 = arith.mulf %372, %614 : vector<8x16xf32>
    %616 = arith.addf %612, %615 : vector<8x16xf32>
    %c230 = arith.constant 230 : index
    %617 = memref.load %arg2[%c230] : memref<288xf32, #tpu.memory_space<smem>>
    %618 = vector.broadcast %617 : f32 to vector<8x16xf32>
    %619 = arith.mulf %374, %618 : vector<8x16xf32>
    %620 = arith.addf %616, %619 : vector<8x16xf32>
    %c231 = arith.constant 231 : index
    %621 = memref.load %arg2[%c231] : memref<288xf32, #tpu.memory_space<smem>>
    %622 = vector.broadcast %621 : f32 to vector<8x16xf32>
    %623 = arith.mulf %376, %622 : vector<8x16xf32>
    %624 = arith.addf %620, %623 : vector<8x16xf32>
    %c232 = arith.constant 232 : index
    %625 = memref.load %arg2[%c232] : memref<288xf32, #tpu.memory_space<smem>>
    %626 = vector.broadcast %625 : f32 to vector<8x16xf32>
    %627 = arith.mulf %378, %626 : vector<8x16xf32>
    %628 = arith.addf %624, %627 : vector<8x16xf32>
    %c233 = arith.constant 233 : index
    %629 = memref.load %arg2[%c233] : memref<288xf32, #tpu.memory_space<smem>>
    %630 = vector.broadcast %629 : f32 to vector<8x16xf32>
    %631 = arith.mulf %380, %630 : vector<8x16xf32>
    %632 = arith.addf %628, %631 : vector<8x16xf32>
    %c261 = arith.constant 261 : index
    %633 = memref.load %arg2[%c261] : memref<288xf32, #tpu.memory_space<smem>>
    %634 = vector.broadcast %633 : f32 to vector<8x16xf32>
    %635 = arith.mulf %364, %634 : vector<8x16xf32>
    %636 = arith.addf %362, %635 : vector<8x16xf32>
    %c262 = arith.constant 262 : index
    %637 = memref.load %arg2[%c262] : memref<288xf32, #tpu.memory_space<smem>>
    %638 = vector.broadcast %637 : f32 to vector<8x16xf32>
    %639 = arith.mulf %366, %638 : vector<8x16xf32>
    %640 = arith.addf %636, %639 : vector<8x16xf32>
    %c263 = arith.constant 263 : index
    %641 = memref.load %arg2[%c263] : memref<288xf32, #tpu.memory_space<smem>>
    %642 = vector.broadcast %641 : f32 to vector<8x16xf32>
    %643 = arith.mulf %368, %642 : vector<8x16xf32>
    %644 = arith.addf %640, %643 : vector<8x16xf32>
    %c264 = arith.constant 264 : index
    %645 = memref.load %arg2[%c264] : memref<288xf32, #tpu.memory_space<smem>>
    %646 = vector.broadcast %645 : f32 to vector<8x16xf32>
    %647 = arith.mulf %370, %646 : vector<8x16xf32>
    %648 = arith.addf %644, %647 : vector<8x16xf32>
    %c265 = arith.constant 265 : index
    %649 = memref.load %arg2[%c265] : memref<288xf32, #tpu.memory_space<smem>>
    %650 = vector.broadcast %649 : f32 to vector<8x16xf32>
    %651 = arith.mulf %372, %650 : vector<8x16xf32>
    %652 = arith.addf %648, %651 : vector<8x16xf32>
    %c266 = arith.constant 266 : index
    %653 = memref.load %arg2[%c266] : memref<288xf32, #tpu.memory_space<smem>>
    %654 = vector.broadcast %653 : f32 to vector<8x16xf32>
    %655 = arith.mulf %374, %654 : vector<8x16xf32>
    %656 = arith.addf %652, %655 : vector<8x16xf32>
    %c267 = arith.constant 267 : index
    %657 = memref.load %arg2[%c267] : memref<288xf32, #tpu.memory_space<smem>>
    %658 = vector.broadcast %657 : f32 to vector<8x16xf32>
    %659 = arith.mulf %376, %658 : vector<8x16xf32>
    %660 = arith.addf %656, %659 : vector<8x16xf32>
    %c268 = arith.constant 268 : index
    %661 = memref.load %arg2[%c268] : memref<288xf32, #tpu.memory_space<smem>>
    %662 = vector.broadcast %661 : f32 to vector<8x16xf32>
    %663 = arith.mulf %378, %662 : vector<8x16xf32>
    %664 = arith.addf %660, %663 : vector<8x16xf32>
    %c269 = arith.constant 269 : index
    %665 = memref.load %arg2[%c269] : memref<288xf32, #tpu.memory_space<smem>>
    %666 = vector.broadcast %665 : f32 to vector<8x16xf32>
    %667 = arith.mulf %380, %666 : vector<8x16xf32>
    %668 = arith.addf %664, %667 : vector<8x16xf32>
    %c2_102 = arith.constant 2 : index
    %c0_103 = arith.constant 0 : index
    %c0_104 = arith.constant 0 : index
    %669 = vector.load %arg6[%c2_102, %c0_103, %c0_104] : memref<4x10x18xf32, #tpu.memory_space<vmem>>, vector<1x8x16xf32>
    %670 = vector.shape_cast %669 : vector<1x8x16xf32> to vector<8x16xf32>
    %c2_105 = arith.constant 2 : index
    %c0_106 = arith.constant 0 : index
    %c1_107 = arith.constant 1 : index
    %671 = vector.load %arg6[%c2_105, %c0_106, %c1_107] : memref<4x10x18xf32, #tpu.memory_space<vmem>>, vector<1x8x16xf32>
    %672 = vector.shape_cast %671 : vector<1x8x16xf32> to vector<8x16xf32>
    %c2_108 = arith.constant 2 : index
    %c0_109 = arith.constant 0 : index
    %c2_110 = arith.constant 2 : index
    %673 = vector.load %arg6[%c2_108, %c0_109, %c2_110] : memref<4x10x18xf32, #tpu.memory_space<vmem>>, vector<1x8x16xf32>
    %674 = vector.shape_cast %673 : vector<1x8x16xf32> to vector<8x16xf32>
    %c2_111 = arith.constant 2 : index
    %c1_112 = arith.constant 1 : index
    %c0_113 = arith.constant 0 : index
    %675 = vector.load %arg6[%c2_111, %c1_112, %c0_113] : memref<4x10x18xf32, #tpu.memory_space<vmem>>, vector<1x8x16xf32>
    %676 = vector.shape_cast %675 : vector<1x8x16xf32> to vector<8x16xf32>
    %c2_114 = arith.constant 2 : index
    %c1_115 = arith.constant 1 : index
    %c1_116 = arith.constant 1 : index
    %677 = vector.load %arg6[%c2_114, %c1_115, %c1_116] : memref<4x10x18xf32, #tpu.memory_space<vmem>>, vector<1x8x16xf32>
    %678 = vector.shape_cast %677 : vector<1x8x16xf32> to vector<8x16xf32>
    %c2_117 = arith.constant 2 : index
    %c1_118 = arith.constant 1 : index
    %c2_119 = arith.constant 2 : index
    %679 = vector.load %arg6[%c2_117, %c1_118, %c2_119] : memref<4x10x18xf32, #tpu.memory_space<vmem>>, vector<1x8x16xf32>
    %680 = vector.shape_cast %679 : vector<1x8x16xf32> to vector<8x16xf32>
    %c2_120 = arith.constant 2 : index
    %c2_121 = arith.constant 2 : index
    %c0_122 = arith.constant 0 : index
    %681 = vector.load %arg6[%c2_120, %c2_121, %c0_122] : memref<4x10x18xf32, #tpu.memory_space<vmem>>, vector<1x8x16xf32>
    %682 = vector.shape_cast %681 : vector<1x8x16xf32> to vector<8x16xf32>
    %c2_123 = arith.constant 2 : index
    %c2_124 = arith.constant 2 : index
    %c1_125 = arith.constant 1 : index
    %683 = vector.load %arg6[%c2_123, %c2_124, %c1_125] : memref<4x10x18xf32, #tpu.memory_space<vmem>>, vector<1x8x16xf32>
    %684 = vector.shape_cast %683 : vector<1x8x16xf32> to vector<8x16xf32>
    %c2_126 = arith.constant 2 : index
    %c2_127 = arith.constant 2 : index
    %c2_128 = arith.constant 2 : index
    %685 = vector.load %arg6[%c2_126, %c2_127, %c2_128] : memref<4x10x18xf32, #tpu.memory_space<vmem>>, vector<1x8x16xf32>
    %686 = vector.shape_cast %685 : vector<1x8x16xf32> to vector<8x16xf32>
    %c18 = arith.constant 18 : index
    %687 = memref.load %arg2[%c18] : memref<288xf32, #tpu.memory_space<smem>>
    %688 = vector.broadcast %687 : f32 to vector<8x16xf32>
    %689 = arith.mulf %670, %688 : vector<8x16xf32>
    %690 = arith.addf %416, %689 : vector<8x16xf32>
    %c19 = arith.constant 19 : index
    %691 = memref.load %arg2[%c19] : memref<288xf32, #tpu.memory_space<smem>>
    %692 = vector.broadcast %691 : f32 to vector<8x16xf32>
    %693 = arith.mulf %672, %692 : vector<8x16xf32>
    %694 = arith.addf %690, %693 : vector<8x16xf32>
    %c20 = arith.constant 20 : index
    %695 = memref.load %arg2[%c20] : memref<288xf32, #tpu.memory_space<smem>>
    %696 = vector.broadcast %695 : f32 to vector<8x16xf32>
    %697 = arith.mulf %674, %696 : vector<8x16xf32>
    %698 = arith.addf %694, %697 : vector<8x16xf32>
    %c21 = arith.constant 21 : index
    %699 = memref.load %arg2[%c21] : memref<288xf32, #tpu.memory_space<smem>>
    %700 = vector.broadcast %699 : f32 to vector<8x16xf32>
    %701 = arith.mulf %676, %700 : vector<8x16xf32>
    %702 = arith.addf %698, %701 : vector<8x16xf32>
    %c22 = arith.constant 22 : index
    %703 = memref.load %arg2[%c22] : memref<288xf32, #tpu.memory_space<smem>>
    %704 = vector.broadcast %703 : f32 to vector<8x16xf32>
    %705 = arith.mulf %678, %704 : vector<8x16xf32>
    %706 = arith.addf %702, %705 : vector<8x16xf32>
    %c23 = arith.constant 23 : index
    %707 = memref.load %arg2[%c23] : memref<288xf32, #tpu.memory_space<smem>>
    %708 = vector.broadcast %707 : f32 to vector<8x16xf32>
    %709 = arith.mulf %680, %708 : vector<8x16xf32>
    %710 = arith.addf %706, %709 : vector<8x16xf32>
    %c24 = arith.constant 24 : index
    %711 = memref.load %arg2[%c24] : memref<288xf32, #tpu.memory_space<smem>>
    %712 = vector.broadcast %711 : f32 to vector<8x16xf32>
    %713 = arith.mulf %682, %712 : vector<8x16xf32>
    %714 = arith.addf %710, %713 : vector<8x16xf32>
    %c25 = arith.constant 25 : index
    %715 = memref.load %arg2[%c25] : memref<288xf32, #tpu.memory_space<smem>>
    %716 = vector.broadcast %715 : f32 to vector<8x16xf32>
    %717 = arith.mulf %684, %716 : vector<8x16xf32>
    %718 = arith.addf %714, %717 : vector<8x16xf32>
    %c26 = arith.constant 26 : index
    %719 = memref.load %arg2[%c26] : memref<288xf32, #tpu.memory_space<smem>>
    %720 = vector.broadcast %719 : f32 to vector<8x16xf32>
    %721 = arith.mulf %686, %720 : vector<8x16xf32>
    %722 = arith.addf %718, %721 : vector<8x16xf32>
    %c54 = arith.constant 54 : index
    %723 = memref.load %arg2[%c54] : memref<288xf32, #tpu.memory_space<smem>>
    %724 = vector.broadcast %723 : f32 to vector<8x16xf32>
    %725 = arith.mulf %670, %724 : vector<8x16xf32>
    %726 = arith.addf %452, %725 : vector<8x16xf32>
    %c55 = arith.constant 55 : index
    %727 = memref.load %arg2[%c55] : memref<288xf32, #tpu.memory_space<smem>>
    %728 = vector.broadcast %727 : f32 to vector<8x16xf32>
    %729 = arith.mulf %672, %728 : vector<8x16xf32>
    %730 = arith.addf %726, %729 : vector<8x16xf32>
    %c56 = arith.constant 56 : index
    %731 = memref.load %arg2[%c56] : memref<288xf32, #tpu.memory_space<smem>>
    %732 = vector.broadcast %731 : f32 to vector<8x16xf32>
    %733 = arith.mulf %674, %732 : vector<8x16xf32>
    %734 = arith.addf %730, %733 : vector<8x16xf32>
    %c57 = arith.constant 57 : index
    %735 = memref.load %arg2[%c57] : memref<288xf32, #tpu.memory_space<smem>>
    %736 = vector.broadcast %735 : f32 to vector<8x16xf32>
    %737 = arith.mulf %676, %736 : vector<8x16xf32>
    %738 = arith.addf %734, %737 : vector<8x16xf32>
    %c58 = arith.constant 58 : index
    %739 = memref.load %arg2[%c58] : memref<288xf32, #tpu.memory_space<smem>>
    %740 = vector.broadcast %739 : f32 to vector<8x16xf32>
    %741 = arith.mulf %678, %740 : vector<8x16xf32>
    %742 = arith.addf %738, %741 : vector<8x16xf32>
    %c59 = arith.constant 59 : index
    %743 = memref.load %arg2[%c59] : memref<288xf32, #tpu.memory_space<smem>>
    %744 = vector.broadcast %743 : f32 to vector<8x16xf32>
    %745 = arith.mulf %680, %744 : vector<8x16xf32>
    %746 = arith.addf %742, %745 : vector<8x16xf32>
    %c60 = arith.constant 60 : index
    %747 = memref.load %arg2[%c60] : memref<288xf32, #tpu.memory_space<smem>>
    %748 = vector.broadcast %747 : f32 to vector<8x16xf32>
    %749 = arith.mulf %682, %748 : vector<8x16xf32>
    %750 = arith.addf %746, %749 : vector<8x16xf32>
    %c61 = arith.constant 61 : index
    %751 = memref.load %arg2[%c61] : memref<288xf32, #tpu.memory_space<smem>>
    %752 = vector.broadcast %751 : f32 to vector<8x16xf32>
    %753 = arith.mulf %684, %752 : vector<8x16xf32>
    %754 = arith.addf %750, %753 : vector<8x16xf32>
    %c62 = arith.constant 62 : index
    %755 = memref.load %arg2[%c62] : memref<288xf32, #tpu.memory_space<smem>>
    %756 = vector.broadcast %755 : f32 to vector<8x16xf32>
    %757 = arith.mulf %686, %756 : vector<8x16xf32>
    %758 = arith.addf %754, %757 : vector<8x16xf32>
    %c90 = arith.constant 90 : index
    %759 = memref.load %arg2[%c90] : memref<288xf32, #tpu.memory_space<smem>>
    %760 = vector.broadcast %759 : f32 to vector<8x16xf32>
    %761 = arith.mulf %670, %760 : vector<8x16xf32>
    %762 = arith.addf %488, %761 : vector<8x16xf32>
    %c91 = arith.constant 91 : index
    %763 = memref.load %arg2[%c91] : memref<288xf32, #tpu.memory_space<smem>>
    %764 = vector.broadcast %763 : f32 to vector<8x16xf32>
    %765 = arith.mulf %672, %764 : vector<8x16xf32>
    %766 = arith.addf %762, %765 : vector<8x16xf32>
    %c92 = arith.constant 92 : index
    %767 = memref.load %arg2[%c92] : memref<288xf32, #tpu.memory_space<smem>>
    %768 = vector.broadcast %767 : f32 to vector<8x16xf32>
    %769 = arith.mulf %674, %768 : vector<8x16xf32>
    %770 = arith.addf %766, %769 : vector<8x16xf32>
    %c93 = arith.constant 93 : index
    %771 = memref.load %arg2[%c93] : memref<288xf32, #tpu.memory_space<smem>>
    %772 = vector.broadcast %771 : f32 to vector<8x16xf32>
    %773 = arith.mulf %676, %772 : vector<8x16xf32>
    %774 = arith.addf %770, %773 : vector<8x16xf32>
    %c94 = arith.constant 94 : index
    %775 = memref.load %arg2[%c94] : memref<288xf32, #tpu.memory_space<smem>>
    %776 = vector.broadcast %775 : f32 to vector<8x16xf32>
    %777 = arith.mulf %678, %776 : vector<8x16xf32>
    %778 = arith.addf %774, %777 : vector<8x16xf32>
    %c95 = arith.constant 95 : index
    %779 = memref.load %arg2[%c95] : memref<288xf32, #tpu.memory_space<smem>>
    %780 = vector.broadcast %779 : f32 to vector<8x16xf32>
    %781 = arith.mulf %680, %780 : vector<8x16xf32>
    %782 = arith.addf %778, %781 : vector<8x16xf32>
    %c96 = arith.constant 96 : index
    %783 = memref.load %arg2[%c96] : memref<288xf32, #tpu.memory_space<smem>>
    %784 = vector.broadcast %783 : f32 to vector<8x16xf32>
    %785 = arith.mulf %682, %784 : vector<8x16xf32>
    %786 = arith.addf %782, %785 : vector<8x16xf32>
    %c97 = arith.constant 97 : index
    %787 = memref.load %arg2[%c97] : memref<288xf32, #tpu.memory_space<smem>>
    %788 = vector.broadcast %787 : f32 to vector<8x16xf32>
    %789 = arith.mulf %684, %788 : vector<8x16xf32>
    %790 = arith.addf %786, %789 : vector<8x16xf32>
    %c98 = arith.constant 98 : index
    %791 = memref.load %arg2[%c98] : memref<288xf32, #tpu.memory_space<smem>>
    %792 = vector.broadcast %791 : f32 to vector<8x16xf32>
    %793 = arith.mulf %686, %792 : vector<8x16xf32>
    %794 = arith.addf %790, %793 : vector<8x16xf32>
    %c126 = arith.constant 126 : index
    %795 = memref.load %arg2[%c126] : memref<288xf32, #tpu.memory_space<smem>>
    %796 = vector.broadcast %795 : f32 to vector<8x16xf32>
    %797 = arith.mulf %670, %796 : vector<8x16xf32>
    %798 = arith.addf %524, %797 : vector<8x16xf32>
    %c127 = arith.constant 127 : index
    %799 = memref.load %arg2[%c127] : memref<288xf32, #tpu.memory_space<smem>>
    %800 = vector.broadcast %799 : f32 to vector<8x16xf32>
    %801 = arith.mulf %672, %800 : vector<8x16xf32>
    %802 = arith.addf %798, %801 : vector<8x16xf32>
    %c128 = arith.constant 128 : index
    %803 = memref.load %arg2[%c128] : memref<288xf32, #tpu.memory_space<smem>>
    %804 = vector.broadcast %803 : f32 to vector<8x16xf32>
    %805 = arith.mulf %674, %804 : vector<8x16xf32>
    %806 = arith.addf %802, %805 : vector<8x16xf32>
    %c129 = arith.constant 129 : index
    %807 = memref.load %arg2[%c129] : memref<288xf32, #tpu.memory_space<smem>>
    %808 = vector.broadcast %807 : f32 to vector<8x16xf32>
    %809 = arith.mulf %676, %808 : vector<8x16xf32>
    %810 = arith.addf %806, %809 : vector<8x16xf32>
    %c130 = arith.constant 130 : index
    %811 = memref.load %arg2[%c130] : memref<288xf32, #tpu.memory_space<smem>>
    %812 = vector.broadcast %811 : f32 to vector<8x16xf32>
    %813 = arith.mulf %678, %812 : vector<8x16xf32>
    %814 = arith.addf %810, %813 : vector<8x16xf32>
    %c131 = arith.constant 131 : index
    %815 = memref.load %arg2[%c131] : memref<288xf32, #tpu.memory_space<smem>>
    %816 = vector.broadcast %815 : f32 to vector<8x16xf32>
    %817 = arith.mulf %680, %816 : vector<8x16xf32>
    %818 = arith.addf %814, %817 : vector<8x16xf32>
    %c132 = arith.constant 132 : index
    %819 = memref.load %arg2[%c132] : memref<288xf32, #tpu.memory_space<smem>>
    %820 = vector.broadcast %819 : f32 to vector<8x16xf32>
    %821 = arith.mulf %682, %820 : vector<8x16xf32>
    %822 = arith.addf %818, %821 : vector<8x16xf32>
    %c133 = arith.constant 133 : index
    %823 = memref.load %arg2[%c133] : memref<288xf32, #tpu.memory_space<smem>>
    %824 = vector.broadcast %823 : f32 to vector<8x16xf32>
    %825 = arith.mulf %684, %824 : vector<8x16xf32>
    %826 = arith.addf %822, %825 : vector<8x16xf32>
    %c134 = arith.constant 134 : index
    %827 = memref.load %arg2[%c134] : memref<288xf32, #tpu.memory_space<smem>>
    %828 = vector.broadcast %827 : f32 to vector<8x16xf32>
    %829 = arith.mulf %686, %828 : vector<8x16xf32>
    %830 = arith.addf %826, %829 : vector<8x16xf32>
    %c162 = arith.constant 162 : index
    %831 = memref.load %arg2[%c162] : memref<288xf32, #tpu.memory_space<smem>>
    %832 = vector.broadcast %831 : f32 to vector<8x16xf32>
    %833 = arith.mulf %670, %832 : vector<8x16xf32>
    %834 = arith.addf %560, %833 : vector<8x16xf32>
    %c163 = arith.constant 163 : index
    %835 = memref.load %arg2[%c163] : memref<288xf32, #tpu.memory_space<smem>>
    %836 = vector.broadcast %835 : f32 to vector<8x16xf32>
    %837 = arith.mulf %672, %836 : vector<8x16xf32>
    %838 = arith.addf %834, %837 : vector<8x16xf32>
    %c164 = arith.constant 164 : index
    %839 = memref.load %arg2[%c164] : memref<288xf32, #tpu.memory_space<smem>>
    %840 = vector.broadcast %839 : f32 to vector<8x16xf32>
    %841 = arith.mulf %674, %840 : vector<8x16xf32>
    %842 = arith.addf %838, %841 : vector<8x16xf32>
    %c165 = arith.constant 165 : index
    %843 = memref.load %arg2[%c165] : memref<288xf32, #tpu.memory_space<smem>>
    %844 = vector.broadcast %843 : f32 to vector<8x16xf32>
    %845 = arith.mulf %676, %844 : vector<8x16xf32>
    %846 = arith.addf %842, %845 : vector<8x16xf32>
    %c166 = arith.constant 166 : index
    %847 = memref.load %arg2[%c166] : memref<288xf32, #tpu.memory_space<smem>>
    %848 = vector.broadcast %847 : f32 to vector<8x16xf32>
    %849 = arith.mulf %678, %848 : vector<8x16xf32>
    %850 = arith.addf %846, %849 : vector<8x16xf32>
    %c167 = arith.constant 167 : index
    %851 = memref.load %arg2[%c167] : memref<288xf32, #tpu.memory_space<smem>>
    %852 = vector.broadcast %851 : f32 to vector<8x16xf32>
    %853 = arith.mulf %680, %852 : vector<8x16xf32>
    %854 = arith.addf %850, %853 : vector<8x16xf32>
    %c168 = arith.constant 168 : index
    %855 = memref.load %arg2[%c168] : memref<288xf32, #tpu.memory_space<smem>>
    %856 = vector.broadcast %855 : f32 to vector<8x16xf32>
    %857 = arith.mulf %682, %856 : vector<8x16xf32>
    %858 = arith.addf %854, %857 : vector<8x16xf32>
    %c169 = arith.constant 169 : index
    %859 = memref.load %arg2[%c169] : memref<288xf32, #tpu.memory_space<smem>>
    %860 = vector.broadcast %859 : f32 to vector<8x16xf32>
    %861 = arith.mulf %684, %860 : vector<8x16xf32>
    %862 = arith.addf %858, %861 : vector<8x16xf32>
    %c170 = arith.constant 170 : index
    %863 = memref.load %arg2[%c170] : memref<288xf32, #tpu.memory_space<smem>>
    %864 = vector.broadcast %863 : f32 to vector<8x16xf32>
    %865 = arith.mulf %686, %864 : vector<8x16xf32>
    %866 = arith.addf %862, %865 : vector<8x16xf32>
    %c198 = arith.constant 198 : index
    %867 = memref.load %arg2[%c198] : memref<288xf32, #tpu.memory_space<smem>>
    %868 = vector.broadcast %867 : f32 to vector<8x16xf32>
    %869 = arith.mulf %670, %868 : vector<8x16xf32>
    %870 = arith.addf %596, %869 : vector<8x16xf32>
    %c199 = arith.constant 199 : index
    %871 = memref.load %arg2[%c199] : memref<288xf32, #tpu.memory_space<smem>>
    %872 = vector.broadcast %871 : f32 to vector<8x16xf32>
    %873 = arith.mulf %672, %872 : vector<8x16xf32>
    %874 = arith.addf %870, %873 : vector<8x16xf32>
    %c200 = arith.constant 200 : index
    %875 = memref.load %arg2[%c200] : memref<288xf32, #tpu.memory_space<smem>>
    %876 = vector.broadcast %875 : f32 to vector<8x16xf32>
    %877 = arith.mulf %674, %876 : vector<8x16xf32>
    %878 = arith.addf %874, %877 : vector<8x16xf32>
    %c201 = arith.constant 201 : index
    %879 = memref.load %arg2[%c201] : memref<288xf32, #tpu.memory_space<smem>>
    %880 = vector.broadcast %879 : f32 to vector<8x16xf32>
    %881 = arith.mulf %676, %880 : vector<8x16xf32>
    %882 = arith.addf %878, %881 : vector<8x16xf32>
    %c202 = arith.constant 202 : index
    %883 = memref.load %arg2[%c202] : memref<288xf32, #tpu.memory_space<smem>>
    %884 = vector.broadcast %883 : f32 to vector<8x16xf32>
    %885 = arith.mulf %678, %884 : vector<8x16xf32>
    %886 = arith.addf %882, %885 : vector<8x16xf32>
    %c203 = arith.constant 203 : index
    %887 = memref.load %arg2[%c203] : memref<288xf32, #tpu.memory_space<smem>>
    %888 = vector.broadcast %887 : f32 to vector<8x16xf32>
    %889 = arith.mulf %680, %888 : vector<8x16xf32>
    %890 = arith.addf %886, %889 : vector<8x16xf32>
    %c204 = arith.constant 204 : index
    %891 = memref.load %arg2[%c204] : memref<288xf32, #tpu.memory_space<smem>>
    %892 = vector.broadcast %891 : f32 to vector<8x16xf32>
    %893 = arith.mulf %682, %892 : vector<8x16xf32>
    %894 = arith.addf %890, %893 : vector<8x16xf32>
    %c205 = arith.constant 205 : index
    %895 = memref.load %arg2[%c205] : memref<288xf32, #tpu.memory_space<smem>>
    %896 = vector.broadcast %895 : f32 to vector<8x16xf32>
    %897 = arith.mulf %684, %896 : vector<8x16xf32>
    %898 = arith.addf %894, %897 : vector<8x16xf32>
    %c206 = arith.constant 206 : index
    %899 = memref.load %arg2[%c206] : memref<288xf32, #tpu.memory_space<smem>>
    %900 = vector.broadcast %899 : f32 to vector<8x16xf32>
    %901 = arith.mulf %686, %900 : vector<8x16xf32>
    %902 = arith.addf %898, %901 : vector<8x16xf32>
    %c234 = arith.constant 234 : index
    %903 = memref.load %arg2[%c234] : memref<288xf32, #tpu.memory_space<smem>>
    %904 = vector.broadcast %903 : f32 to vector<8x16xf32>
    %905 = arith.mulf %670, %904 : vector<8x16xf32>
    %906 = arith.addf %632, %905 : vector<8x16xf32>
    %c235 = arith.constant 235 : index
    %907 = memref.load %arg2[%c235] : memref<288xf32, #tpu.memory_space<smem>>
    %908 = vector.broadcast %907 : f32 to vector<8x16xf32>
    %909 = arith.mulf %672, %908 : vector<8x16xf32>
    %910 = arith.addf %906, %909 : vector<8x16xf32>
    %c236 = arith.constant 236 : index
    %911 = memref.load %arg2[%c236] : memref<288xf32, #tpu.memory_space<smem>>
    %912 = vector.broadcast %911 : f32 to vector<8x16xf32>
    %913 = arith.mulf %674, %912 : vector<8x16xf32>
    %914 = arith.addf %910, %913 : vector<8x16xf32>
    %c237 = arith.constant 237 : index
    %915 = memref.load %arg2[%c237] : memref<288xf32, #tpu.memory_space<smem>>
    %916 = vector.broadcast %915 : f32 to vector<8x16xf32>
    %917 = arith.mulf %676, %916 : vector<8x16xf32>
    %918 = arith.addf %914, %917 : vector<8x16xf32>
    %c238 = arith.constant 238 : index
    %919 = memref.load %arg2[%c238] : memref<288xf32, #tpu.memory_space<smem>>
    %920 = vector.broadcast %919 : f32 to vector<8x16xf32>
    %921 = arith.mulf %678, %920 : vector<8x16xf32>
    %922 = arith.addf %918, %921 : vector<8x16xf32>
    %c239 = arith.constant 239 : index
    %923 = memref.load %arg2[%c239] : memref<288xf32, #tpu.memory_space<smem>>
    %924 = vector.broadcast %923 : f32 to vector<8x16xf32>
    %925 = arith.mulf %680, %924 : vector<8x16xf32>
    %926 = arith.addf %922, %925 : vector<8x16xf32>
    %c240 = arith.constant 240 : index
    %927 = memref.load %arg2[%c240] : memref<288xf32, #tpu.memory_space<smem>>
    %928 = vector.broadcast %927 : f32 to vector<8x16xf32>
    %929 = arith.mulf %682, %928 : vector<8x16xf32>
    %930 = arith.addf %926, %929 : vector<8x16xf32>
    %c241 = arith.constant 241 : index
    %931 = memref.load %arg2[%c241] : memref<288xf32, #tpu.memory_space<smem>>
    %932 = vector.broadcast %931 : f32 to vector<8x16xf32>
    %933 = arith.mulf %684, %932 : vector<8x16xf32>
    %934 = arith.addf %930, %933 : vector<8x16xf32>
    %c242 = arith.constant 242 : index
    %935 = memref.load %arg2[%c242] : memref<288xf32, #tpu.memory_space<smem>>
    %936 = vector.broadcast %935 : f32 to vector<8x16xf32>
    %937 = arith.mulf %686, %936 : vector<8x16xf32>
    %938 = arith.addf %934, %937 : vector<8x16xf32>
    %c270 = arith.constant 270 : index
    %939 = memref.load %arg2[%c270] : memref<288xf32, #tpu.memory_space<smem>>
    %940 = vector.broadcast %939 : f32 to vector<8x16xf32>
    %941 = arith.mulf %670, %940 : vector<8x16xf32>
    %942 = arith.addf %668, %941 : vector<8x16xf32>
    %c271 = arith.constant 271 : index
    %943 = memref.load %arg2[%c271] : memref<288xf32, #tpu.memory_space<smem>>
    %944 = vector.broadcast %943 : f32 to vector<8x16xf32>
    %945 = arith.mulf %672, %944 : vector<8x16xf32>
    %946 = arith.addf %942, %945 : vector<8x16xf32>
    %c272 = arith.constant 272 : index
    %947 = memref.load %arg2[%c272] : memref<288xf32, #tpu.memory_space<smem>>
    %948 = vector.broadcast %947 : f32 to vector<8x16xf32>
    %949 = arith.mulf %674, %948 : vector<8x16xf32>
    %950 = arith.addf %946, %949 : vector<8x16xf32>
    %c273 = arith.constant 273 : index
    %951 = memref.load %arg2[%c273] : memref<288xf32, #tpu.memory_space<smem>>
    %952 = vector.broadcast %951 : f32 to vector<8x16xf32>
    %953 = arith.mulf %676, %952 : vector<8x16xf32>
    %954 = arith.addf %950, %953 : vector<8x16xf32>
    %c274 = arith.constant 274 : index
    %955 = memref.load %arg2[%c274] : memref<288xf32, #tpu.memory_space<smem>>
    %956 = vector.broadcast %955 : f32 to vector<8x16xf32>
    %957 = arith.mulf %678, %956 : vector<8x16xf32>
    %958 = arith.addf %954, %957 : vector<8x16xf32>
    %c275 = arith.constant 275 : index
    %959 = memref.load %arg2[%c275] : memref<288xf32, #tpu.memory_space<smem>>
    %960 = vector.broadcast %959 : f32 to vector<8x16xf32>
    %961 = arith.mulf %680, %960 : vector<8x16xf32>
    %962 = arith.addf %958, %961 : vector<8x16xf32>
    %c276 = arith.constant 276 : index
    %963 = memref.load %arg2[%c276] : memref<288xf32, #tpu.memory_space<smem>>
    %964 = vector.broadcast %963 : f32 to vector<8x16xf32>
    %965 = arith.mulf %682, %964 : vector<8x16xf32>
    %966 = arith.addf %962, %965 : vector<8x16xf32>
    %c277 = arith.constant 277 : index
    %967 = memref.load %arg2[%c277] : memref<288xf32, #tpu.memory_space<smem>>
    %968 = vector.broadcast %967 : f32 to vector<8x16xf32>
    %969 = arith.mulf %684, %968 : vector<8x16xf32>
    %970 = arith.addf %966, %969 : vector<8x16xf32>
    %c278 = arith.constant 278 : index
    %971 = memref.load %arg2[%c278] : memref<288xf32, #tpu.memory_space<smem>>
    %972 = vector.broadcast %971 : f32 to vector<8x16xf32>
    %973 = arith.mulf %686, %972 : vector<8x16xf32>
    %974 = arith.addf %970, %973 : vector<8x16xf32>
    %c3_129 = arith.constant 3 : index
    %c0_130 = arith.constant 0 : index
    %c0_131 = arith.constant 0 : index
    %975 = vector.load %arg6[%c3_129, %c0_130, %c0_131] : memref<4x10x18xf32, #tpu.memory_space<vmem>>, vector<1x8x16xf32>
    %976 = vector.shape_cast %975 : vector<1x8x16xf32> to vector<8x16xf32>
    %c3_132 = arith.constant 3 : index
    %c0_133 = arith.constant 0 : index
    %c1_134 = arith.constant 1 : index
    %977 = vector.load %arg6[%c3_132, %c0_133, %c1_134] : memref<4x10x18xf32, #tpu.memory_space<vmem>>, vector<1x8x16xf32>
    %978 = vector.shape_cast %977 : vector<1x8x16xf32> to vector<8x16xf32>
    %c3_135 = arith.constant 3 : index
    %c0_136 = arith.constant 0 : index
    %c2_137 = arith.constant 2 : index
    %979 = vector.load %arg6[%c3_135, %c0_136, %c2_137] : memref<4x10x18xf32, #tpu.memory_space<vmem>>, vector<1x8x16xf32>
    %980 = vector.shape_cast %979 : vector<1x8x16xf32> to vector<8x16xf32>
    %c3_138 = arith.constant 3 : index
    %c1_139 = arith.constant 1 : index
    %c0_140 = arith.constant 0 : index
    %981 = vector.load %arg6[%c3_138, %c1_139, %c0_140] : memref<4x10x18xf32, #tpu.memory_space<vmem>>, vector<1x8x16xf32>
    %982 = vector.shape_cast %981 : vector<1x8x16xf32> to vector<8x16xf32>
    %c3_141 = arith.constant 3 : index
    %c1_142 = arith.constant 1 : index
    %c1_143 = arith.constant 1 : index
    %983 = vector.load %arg6[%c3_141, %c1_142, %c1_143] : memref<4x10x18xf32, #tpu.memory_space<vmem>>, vector<1x8x16xf32>
    %984 = vector.shape_cast %983 : vector<1x8x16xf32> to vector<8x16xf32>
    %c3_144 = arith.constant 3 : index
    %c1_145 = arith.constant 1 : index
    %c2_146 = arith.constant 2 : index
    %985 = vector.load %arg6[%c3_144, %c1_145, %c2_146] : memref<4x10x18xf32, #tpu.memory_space<vmem>>, vector<1x8x16xf32>
    %986 = vector.shape_cast %985 : vector<1x8x16xf32> to vector<8x16xf32>
    %c3_147 = arith.constant 3 : index
    %c2_148 = arith.constant 2 : index
    %c0_149 = arith.constant 0 : index
    %987 = vector.load %arg6[%c3_147, %c2_148, %c0_149] : memref<4x10x18xf32, #tpu.memory_space<vmem>>, vector<1x8x16xf32>
    %988 = vector.shape_cast %987 : vector<1x8x16xf32> to vector<8x16xf32>
    %c3_150 = arith.constant 3 : index
    %c2_151 = arith.constant 2 : index
    %c1_152 = arith.constant 1 : index
    %989 = vector.load %arg6[%c3_150, %c2_151, %c1_152] : memref<4x10x18xf32, #tpu.memory_space<vmem>>, vector<1x8x16xf32>
    %990 = vector.shape_cast %989 : vector<1x8x16xf32> to vector<8x16xf32>
    %c3_153 = arith.constant 3 : index
    %c2_154 = arith.constant 2 : index
    %c2_155 = arith.constant 2 : index
    %991 = vector.load %arg6[%c3_153, %c2_154, %c2_155] : memref<4x10x18xf32, #tpu.memory_space<vmem>>, vector<1x8x16xf32>
    %992 = vector.shape_cast %991 : vector<1x8x16xf32> to vector<8x16xf32>
    %c27 = arith.constant 27 : index
    %993 = memref.load %arg2[%c27] : memref<288xf32, #tpu.memory_space<smem>>
    %994 = vector.broadcast %993 : f32 to vector<8x16xf32>
    %995 = arith.mulf %976, %994 : vector<8x16xf32>
    %996 = arith.addf %722, %995 : vector<8x16xf32>
    %c28 = arith.constant 28 : index
    %997 = memref.load %arg2[%c28] : memref<288xf32, #tpu.memory_space<smem>>
    %998 = vector.broadcast %997 : f32 to vector<8x16xf32>
    %999 = arith.mulf %978, %998 : vector<8x16xf32>
    %1000 = arith.addf %996, %999 : vector<8x16xf32>
    %c29 = arith.constant 29 : index
    %1001 = memref.load %arg2[%c29] : memref<288xf32, #tpu.memory_space<smem>>
    %1002 = vector.broadcast %1001 : f32 to vector<8x16xf32>
    %1003 = arith.mulf %980, %1002 : vector<8x16xf32>
    %1004 = arith.addf %1000, %1003 : vector<8x16xf32>
    %c30 = arith.constant 30 : index
    %1005 = memref.load %arg2[%c30] : memref<288xf32, #tpu.memory_space<smem>>
    %1006 = vector.broadcast %1005 : f32 to vector<8x16xf32>
    %1007 = arith.mulf %982, %1006 : vector<8x16xf32>
    %1008 = arith.addf %1004, %1007 : vector<8x16xf32>
    %c31 = arith.constant 31 : index
    %1009 = memref.load %arg2[%c31] : memref<288xf32, #tpu.memory_space<smem>>
    %1010 = vector.broadcast %1009 : f32 to vector<8x16xf32>
    %1011 = arith.mulf %984, %1010 : vector<8x16xf32>
    %1012 = arith.addf %1008, %1011 : vector<8x16xf32>
    %c32 = arith.constant 32 : index
    %1013 = memref.load %arg2[%c32] : memref<288xf32, #tpu.memory_space<smem>>
    %1014 = vector.broadcast %1013 : f32 to vector<8x16xf32>
    %1015 = arith.mulf %986, %1014 : vector<8x16xf32>
    %1016 = arith.addf %1012, %1015 : vector<8x16xf32>
    %c33 = arith.constant 33 : index
    %1017 = memref.load %arg2[%c33] : memref<288xf32, #tpu.memory_space<smem>>
    %1018 = vector.broadcast %1017 : f32 to vector<8x16xf32>
    %1019 = arith.mulf %988, %1018 : vector<8x16xf32>
    %1020 = arith.addf %1016, %1019 : vector<8x16xf32>
    %c34 = arith.constant 34 : index
    %1021 = memref.load %arg2[%c34] : memref<288xf32, #tpu.memory_space<smem>>
    %1022 = vector.broadcast %1021 : f32 to vector<8x16xf32>
    %1023 = arith.mulf %990, %1022 : vector<8x16xf32>
    %1024 = arith.addf %1020, %1023 : vector<8x16xf32>
    %c35 = arith.constant 35 : index
    %1025 = memref.load %arg2[%c35] : memref<288xf32, #tpu.memory_space<smem>>
    %1026 = vector.broadcast %1025 : f32 to vector<8x16xf32>
    %1027 = arith.mulf %992, %1026 : vector<8x16xf32>
    %1028 = arith.addf %1024, %1027 : vector<8x16xf32>
    %c63 = arith.constant 63 : index
    %1029 = memref.load %arg2[%c63] : memref<288xf32, #tpu.memory_space<smem>>
    %1030 = vector.broadcast %1029 : f32 to vector<8x16xf32>
    %1031 = arith.mulf %976, %1030 : vector<8x16xf32>
    %1032 = arith.addf %758, %1031 : vector<8x16xf32>
    %c64 = arith.constant 64 : index
    %1033 = memref.load %arg2[%c64] : memref<288xf32, #tpu.memory_space<smem>>
    %1034 = vector.broadcast %1033 : f32 to vector<8x16xf32>
    %1035 = arith.mulf %978, %1034 : vector<8x16xf32>
    %1036 = arith.addf %1032, %1035 : vector<8x16xf32>
    %c65 = arith.constant 65 : index
    %1037 = memref.load %arg2[%c65] : memref<288xf32, #tpu.memory_space<smem>>
    %1038 = vector.broadcast %1037 : f32 to vector<8x16xf32>
    %1039 = arith.mulf %980, %1038 : vector<8x16xf32>
    %1040 = arith.addf %1036, %1039 : vector<8x16xf32>
    %c66 = arith.constant 66 : index
    %1041 = memref.load %arg2[%c66] : memref<288xf32, #tpu.memory_space<smem>>
    %1042 = vector.broadcast %1041 : f32 to vector<8x16xf32>
    %1043 = arith.mulf %982, %1042 : vector<8x16xf32>
    %1044 = arith.addf %1040, %1043 : vector<8x16xf32>
    %c67 = arith.constant 67 : index
    %1045 = memref.load %arg2[%c67] : memref<288xf32, #tpu.memory_space<smem>>
    %1046 = vector.broadcast %1045 : f32 to vector<8x16xf32>
    %1047 = arith.mulf %984, %1046 : vector<8x16xf32>
    %1048 = arith.addf %1044, %1047 : vector<8x16xf32>
    %c68 = arith.constant 68 : index
    %1049 = memref.load %arg2[%c68] : memref<288xf32, #tpu.memory_space<smem>>
    %1050 = vector.broadcast %1049 : f32 to vector<8x16xf32>
    %1051 = arith.mulf %986, %1050 : vector<8x16xf32>
    %1052 = arith.addf %1048, %1051 : vector<8x16xf32>
    %c69 = arith.constant 69 : index
    %1053 = memref.load %arg2[%c69] : memref<288xf32, #tpu.memory_space<smem>>
    %1054 = vector.broadcast %1053 : f32 to vector<8x16xf32>
    %1055 = arith.mulf %988, %1054 : vector<8x16xf32>
    %1056 = arith.addf %1052, %1055 : vector<8x16xf32>
    %c70 = arith.constant 70 : index
    %1057 = memref.load %arg2[%c70] : memref<288xf32, #tpu.memory_space<smem>>
    %1058 = vector.broadcast %1057 : f32 to vector<8x16xf32>
    %1059 = arith.mulf %990, %1058 : vector<8x16xf32>
    %1060 = arith.addf %1056, %1059 : vector<8x16xf32>
    %c71 = arith.constant 71 : index
    %1061 = memref.load %arg2[%c71] : memref<288xf32, #tpu.memory_space<smem>>
    %1062 = vector.broadcast %1061 : f32 to vector<8x16xf32>
    %1063 = arith.mulf %992, %1062 : vector<8x16xf32>
    %1064 = arith.addf %1060, %1063 : vector<8x16xf32>
    %c99 = arith.constant 99 : index
    %1065 = memref.load %arg2[%c99] : memref<288xf32, #tpu.memory_space<smem>>
    %1066 = vector.broadcast %1065 : f32 to vector<8x16xf32>
    %1067 = arith.mulf %976, %1066 : vector<8x16xf32>
    %1068 = arith.addf %794, %1067 : vector<8x16xf32>
    %c100 = arith.constant 100 : index
    %1069 = memref.load %arg2[%c100] : memref<288xf32, #tpu.memory_space<smem>>
    %1070 = vector.broadcast %1069 : f32 to vector<8x16xf32>
    %1071 = arith.mulf %978, %1070 : vector<8x16xf32>
    %1072 = arith.addf %1068, %1071 : vector<8x16xf32>
    %c101 = arith.constant 101 : index
    %1073 = memref.load %arg2[%c101] : memref<288xf32, #tpu.memory_space<smem>>
    %1074 = vector.broadcast %1073 : f32 to vector<8x16xf32>
    %1075 = arith.mulf %980, %1074 : vector<8x16xf32>
    %1076 = arith.addf %1072, %1075 : vector<8x16xf32>
    %c102 = arith.constant 102 : index
    %1077 = memref.load %arg2[%c102] : memref<288xf32, #tpu.memory_space<smem>>
    %1078 = vector.broadcast %1077 : f32 to vector<8x16xf32>
    %1079 = arith.mulf %982, %1078 : vector<8x16xf32>
    %1080 = arith.addf %1076, %1079 : vector<8x16xf32>
    %c103 = arith.constant 103 : index
    %1081 = memref.load %arg2[%c103] : memref<288xf32, #tpu.memory_space<smem>>
    %1082 = vector.broadcast %1081 : f32 to vector<8x16xf32>
    %1083 = arith.mulf %984, %1082 : vector<8x16xf32>
    %1084 = arith.addf %1080, %1083 : vector<8x16xf32>
    %c104 = arith.constant 104 : index
    %1085 = memref.load %arg2[%c104] : memref<288xf32, #tpu.memory_space<smem>>
    %1086 = vector.broadcast %1085 : f32 to vector<8x16xf32>
    %1087 = arith.mulf %986, %1086 : vector<8x16xf32>
    %1088 = arith.addf %1084, %1087 : vector<8x16xf32>
    %c105 = arith.constant 105 : index
    %1089 = memref.load %arg2[%c105] : memref<288xf32, #tpu.memory_space<smem>>
    %1090 = vector.broadcast %1089 : f32 to vector<8x16xf32>
    %1091 = arith.mulf %988, %1090 : vector<8x16xf32>
    %1092 = arith.addf %1088, %1091 : vector<8x16xf32>
    %c106 = arith.constant 106 : index
    %1093 = memref.load %arg2[%c106] : memref<288xf32, #tpu.memory_space<smem>>
    %1094 = vector.broadcast %1093 : f32 to vector<8x16xf32>
    %1095 = arith.mulf %990, %1094 : vector<8x16xf32>
    %1096 = arith.addf %1092, %1095 : vector<8x16xf32>
    %c107 = arith.constant 107 : index
    %1097 = memref.load %arg2[%c107] : memref<288xf32, #tpu.memory_space<smem>>
    %1098 = vector.broadcast %1097 : f32 to vector<8x16xf32>
    %1099 = arith.mulf %992, %1098 : vector<8x16xf32>
    %1100 = arith.addf %1096, %1099 : vector<8x16xf32>
    %c135 = arith.constant 135 : index
    %1101 = memref.load %arg2[%c135] : memref<288xf32, #tpu.memory_space<smem>>
    %1102 = vector.broadcast %1101 : f32 to vector<8x16xf32>
    %1103 = arith.mulf %976, %1102 : vector<8x16xf32>
    %1104 = arith.addf %830, %1103 : vector<8x16xf32>
    %c136 = arith.constant 136 : index
    %1105 = memref.load %arg2[%c136] : memref<288xf32, #tpu.memory_space<smem>>
    %1106 = vector.broadcast %1105 : f32 to vector<8x16xf32>
    %1107 = arith.mulf %978, %1106 : vector<8x16xf32>
    %1108 = arith.addf %1104, %1107 : vector<8x16xf32>
    %c137 = arith.constant 137 : index
    %1109 = memref.load %arg2[%c137] : memref<288xf32, #tpu.memory_space<smem>>
    %1110 = vector.broadcast %1109 : f32 to vector<8x16xf32>
    %1111 = arith.mulf %980, %1110 : vector<8x16xf32>
    %1112 = arith.addf %1108, %1111 : vector<8x16xf32>
    %c138 = arith.constant 138 : index
    %1113 = memref.load %arg2[%c138] : memref<288xf32, #tpu.memory_space<smem>>
    %1114 = vector.broadcast %1113 : f32 to vector<8x16xf32>
    %1115 = arith.mulf %982, %1114 : vector<8x16xf32>
    %1116 = arith.addf %1112, %1115 : vector<8x16xf32>
    %c139 = arith.constant 139 : index
    %1117 = memref.load %arg2[%c139] : memref<288xf32, #tpu.memory_space<smem>>
    %1118 = vector.broadcast %1117 : f32 to vector<8x16xf32>
    %1119 = arith.mulf %984, %1118 : vector<8x16xf32>
    %1120 = arith.addf %1116, %1119 : vector<8x16xf32>
    %c140 = arith.constant 140 : index
    %1121 = memref.load %arg2[%c140] : memref<288xf32, #tpu.memory_space<smem>>
    %1122 = vector.broadcast %1121 : f32 to vector<8x16xf32>
    %1123 = arith.mulf %986, %1122 : vector<8x16xf32>
    %1124 = arith.addf %1120, %1123 : vector<8x16xf32>
    %c141 = arith.constant 141 : index
    %1125 = memref.load %arg2[%c141] : memref<288xf32, #tpu.memory_space<smem>>
    %1126 = vector.broadcast %1125 : f32 to vector<8x16xf32>
    %1127 = arith.mulf %988, %1126 : vector<8x16xf32>
    %1128 = arith.addf %1124, %1127 : vector<8x16xf32>
    %c142 = arith.constant 142 : index
    %1129 = memref.load %arg2[%c142] : memref<288xf32, #tpu.memory_space<smem>>
    %1130 = vector.broadcast %1129 : f32 to vector<8x16xf32>
    %1131 = arith.mulf %990, %1130 : vector<8x16xf32>
    %1132 = arith.addf %1128, %1131 : vector<8x16xf32>
    %c143 = arith.constant 143 : index
    %1133 = memref.load %arg2[%c143] : memref<288xf32, #tpu.memory_space<smem>>
    %1134 = vector.broadcast %1133 : f32 to vector<8x16xf32>
    %1135 = arith.mulf %992, %1134 : vector<8x16xf32>
    %1136 = arith.addf %1132, %1135 : vector<8x16xf32>
    %c171 = arith.constant 171 : index
    %1137 = memref.load %arg2[%c171] : memref<288xf32, #tpu.memory_space<smem>>
    %1138 = vector.broadcast %1137 : f32 to vector<8x16xf32>
    %1139 = arith.mulf %976, %1138 : vector<8x16xf32>
    %1140 = arith.addf %866, %1139 : vector<8x16xf32>
    %c172 = arith.constant 172 : index
    %1141 = memref.load %arg2[%c172] : memref<288xf32, #tpu.memory_space<smem>>
    %1142 = vector.broadcast %1141 : f32 to vector<8x16xf32>
    %1143 = arith.mulf %978, %1142 : vector<8x16xf32>
    %1144 = arith.addf %1140, %1143 : vector<8x16xf32>
    %c173 = arith.constant 173 : index
    %1145 = memref.load %arg2[%c173] : memref<288xf32, #tpu.memory_space<smem>>
    %1146 = vector.broadcast %1145 : f32 to vector<8x16xf32>
    %1147 = arith.mulf %980, %1146 : vector<8x16xf32>
    %1148 = arith.addf %1144, %1147 : vector<8x16xf32>
    %c174 = arith.constant 174 : index
    %1149 = memref.load %arg2[%c174] : memref<288xf32, #tpu.memory_space<smem>>
    %1150 = vector.broadcast %1149 : f32 to vector<8x16xf32>
    %1151 = arith.mulf %982, %1150 : vector<8x16xf32>
    %1152 = arith.addf %1148, %1151 : vector<8x16xf32>
    %c175 = arith.constant 175 : index
    %1153 = memref.load %arg2[%c175] : memref<288xf32, #tpu.memory_space<smem>>
    %1154 = vector.broadcast %1153 : f32 to vector<8x16xf32>
    %1155 = arith.mulf %984, %1154 : vector<8x16xf32>
    %1156 = arith.addf %1152, %1155 : vector<8x16xf32>
    %c176 = arith.constant 176 : index
    %1157 = memref.load %arg2[%c176] : memref<288xf32, #tpu.memory_space<smem>>
    %1158 = vector.broadcast %1157 : f32 to vector<8x16xf32>
    %1159 = arith.mulf %986, %1158 : vector<8x16xf32>
    %1160 = arith.addf %1156, %1159 : vector<8x16xf32>
    %c177 = arith.constant 177 : index
    %1161 = memref.load %arg2[%c177] : memref<288xf32, #tpu.memory_space<smem>>
    %1162 = vector.broadcast %1161 : f32 to vector<8x16xf32>
    %1163 = arith.mulf %988, %1162 : vector<8x16xf32>
    %1164 = arith.addf %1160, %1163 : vector<8x16xf32>
    %c178 = arith.constant 178 : index
    %1165 = memref.load %arg2[%c178] : memref<288xf32, #tpu.memory_space<smem>>
    %1166 = vector.broadcast %1165 : f32 to vector<8x16xf32>
    %1167 = arith.mulf %990, %1166 : vector<8x16xf32>
    %1168 = arith.addf %1164, %1167 : vector<8x16xf32>
    %c179 = arith.constant 179 : index
    %1169 = memref.load %arg2[%c179] : memref<288xf32, #tpu.memory_space<smem>>
    %1170 = vector.broadcast %1169 : f32 to vector<8x16xf32>
    %1171 = arith.mulf %992, %1170 : vector<8x16xf32>
    %1172 = arith.addf %1168, %1171 : vector<8x16xf32>
    %c207 = arith.constant 207 : index
    %1173 = memref.load %arg2[%c207] : memref<288xf32, #tpu.memory_space<smem>>
    %1174 = vector.broadcast %1173 : f32 to vector<8x16xf32>
    %1175 = arith.mulf %976, %1174 : vector<8x16xf32>
    %1176 = arith.addf %902, %1175 : vector<8x16xf32>
    %c208 = arith.constant 208 : index
    %1177 = memref.load %arg2[%c208] : memref<288xf32, #tpu.memory_space<smem>>
    %1178 = vector.broadcast %1177 : f32 to vector<8x16xf32>
    %1179 = arith.mulf %978, %1178 : vector<8x16xf32>
    %1180 = arith.addf %1176, %1179 : vector<8x16xf32>
    %c209 = arith.constant 209 : index
    %1181 = memref.load %arg2[%c209] : memref<288xf32, #tpu.memory_space<smem>>
    %1182 = vector.broadcast %1181 : f32 to vector<8x16xf32>
    %1183 = arith.mulf %980, %1182 : vector<8x16xf32>
    %1184 = arith.addf %1180, %1183 : vector<8x16xf32>
    %c210 = arith.constant 210 : index
    %1185 = memref.load %arg2[%c210] : memref<288xf32, #tpu.memory_space<smem>>
    %1186 = vector.broadcast %1185 : f32 to vector<8x16xf32>
    %1187 = arith.mulf %982, %1186 : vector<8x16xf32>
    %1188 = arith.addf %1184, %1187 : vector<8x16xf32>
    %c211 = arith.constant 211 : index
    %1189 = memref.load %arg2[%c211] : memref<288xf32, #tpu.memory_space<smem>>
    %1190 = vector.broadcast %1189 : f32 to vector<8x16xf32>
    %1191 = arith.mulf %984, %1190 : vector<8x16xf32>
    %1192 = arith.addf %1188, %1191 : vector<8x16xf32>
    %c212 = arith.constant 212 : index
    %1193 = memref.load %arg2[%c212] : memref<288xf32, #tpu.memory_space<smem>>
    %1194 = vector.broadcast %1193 : f32 to vector<8x16xf32>
    %1195 = arith.mulf %986, %1194 : vector<8x16xf32>
    %1196 = arith.addf %1192, %1195 : vector<8x16xf32>
    %c213 = arith.constant 213 : index
    %1197 = memref.load %arg2[%c213] : memref<288xf32, #tpu.memory_space<smem>>
    %1198 = vector.broadcast %1197 : f32 to vector<8x16xf32>
    %1199 = arith.mulf %988, %1198 : vector<8x16xf32>
    %1200 = arith.addf %1196, %1199 : vector<8x16xf32>
    %c214 = arith.constant 214 : index
    %1201 = memref.load %arg2[%c214] : memref<288xf32, #tpu.memory_space<smem>>
    %1202 = vector.broadcast %1201 : f32 to vector<8x16xf32>
    %1203 = arith.mulf %990, %1202 : vector<8x16xf32>
    %1204 = arith.addf %1200, %1203 : vector<8x16xf32>
    %c215 = arith.constant 215 : index
    %1205 = memref.load %arg2[%c215] : memref<288xf32, #tpu.memory_space<smem>>
    %1206 = vector.broadcast %1205 : f32 to vector<8x16xf32>
    %1207 = arith.mulf %992, %1206 : vector<8x16xf32>
    %1208 = arith.addf %1204, %1207 : vector<8x16xf32>
    %c243 = arith.constant 243 : index
    %1209 = memref.load %arg2[%c243] : memref<288xf32, #tpu.memory_space<smem>>
    %1210 = vector.broadcast %1209 : f32 to vector<8x16xf32>
    %1211 = arith.mulf %976, %1210 : vector<8x16xf32>
    %1212 = arith.addf %938, %1211 : vector<8x16xf32>
    %c244 = arith.constant 244 : index
    %1213 = memref.load %arg2[%c244] : memref<288xf32, #tpu.memory_space<smem>>
    %1214 = vector.broadcast %1213 : f32 to vector<8x16xf32>
    %1215 = arith.mulf %978, %1214 : vector<8x16xf32>
    %1216 = arith.addf %1212, %1215 : vector<8x16xf32>
    %c245 = arith.constant 245 : index
    %1217 = memref.load %arg2[%c245] : memref<288xf32, #tpu.memory_space<smem>>
    %1218 = vector.broadcast %1217 : f32 to vector<8x16xf32>
    %1219 = arith.mulf %980, %1218 : vector<8x16xf32>
    %1220 = arith.addf %1216, %1219 : vector<8x16xf32>
    %c246 = arith.constant 246 : index
    %1221 = memref.load %arg2[%c246] : memref<288xf32, #tpu.memory_space<smem>>
    %1222 = vector.broadcast %1221 : f32 to vector<8x16xf32>
    %1223 = arith.mulf %982, %1222 : vector<8x16xf32>
    %1224 = arith.addf %1220, %1223 : vector<8x16xf32>
    %c247 = arith.constant 247 : index
    %1225 = memref.load %arg2[%c247] : memref<288xf32, #tpu.memory_space<smem>>
    %1226 = vector.broadcast %1225 : f32 to vector<8x16xf32>
    %1227 = arith.mulf %984, %1226 : vector<8x16xf32>
    %1228 = arith.addf %1224, %1227 : vector<8x16xf32>
    %c248 = arith.constant 248 : index
    %1229 = memref.load %arg2[%c248] : memref<288xf32, #tpu.memory_space<smem>>
    %1230 = vector.broadcast %1229 : f32 to vector<8x16xf32>
    %1231 = arith.mulf %986, %1230 : vector<8x16xf32>
    %1232 = arith.addf %1228, %1231 : vector<8x16xf32>
    %c249 = arith.constant 249 : index
    %1233 = memref.load %arg2[%c249] : memref<288xf32, #tpu.memory_space<smem>>
    %1234 = vector.broadcast %1233 : f32 to vector<8x16xf32>
    %1235 = arith.mulf %988, %1234 : vector<8x16xf32>
    %1236 = arith.addf %1232, %1235 : vector<8x16xf32>
    %c250 = arith.constant 250 : index
    %1237 = memref.load %arg2[%c250] : memref<288xf32, #tpu.memory_space<smem>>
    %1238 = vector.broadcast %1237 : f32 to vector<8x16xf32>
    %1239 = arith.mulf %990, %1238 : vector<8x16xf32>
    %1240 = arith.addf %1236, %1239 : vector<8x16xf32>
    %c251 = arith.constant 251 : index
    %1241 = memref.load %arg2[%c251] : memref<288xf32, #tpu.memory_space<smem>>
    %1242 = vector.broadcast %1241 : f32 to vector<8x16xf32>
    %1243 = arith.mulf %992, %1242 : vector<8x16xf32>
    %1244 = arith.addf %1240, %1243 : vector<8x16xf32>
    %c279 = arith.constant 279 : index
    %1245 = memref.load %arg2[%c279] : memref<288xf32, #tpu.memory_space<smem>>
    %1246 = vector.broadcast %1245 : f32 to vector<8x16xf32>
    %1247 = arith.mulf %976, %1246 : vector<8x16xf32>
    %1248 = arith.addf %974, %1247 : vector<8x16xf32>
    %c280 = arith.constant 280 : index
    %1249 = memref.load %arg2[%c280] : memref<288xf32, #tpu.memory_space<smem>>
    %1250 = vector.broadcast %1249 : f32 to vector<8x16xf32>
    %1251 = arith.mulf %978, %1250 : vector<8x16xf32>
    %1252 = arith.addf %1248, %1251 : vector<8x16xf32>
    %c281 = arith.constant 281 : index
    %1253 = memref.load %arg2[%c281] : memref<288xf32, #tpu.memory_space<smem>>
    %1254 = vector.broadcast %1253 : f32 to vector<8x16xf32>
    %1255 = arith.mulf %980, %1254 : vector<8x16xf32>
    %1256 = arith.addf %1252, %1255 : vector<8x16xf32>
    %c282 = arith.constant 282 : index
    %1257 = memref.load %arg2[%c282] : memref<288xf32, #tpu.memory_space<smem>>
    %1258 = vector.broadcast %1257 : f32 to vector<8x16xf32>
    %1259 = arith.mulf %982, %1258 : vector<8x16xf32>
    %1260 = arith.addf %1256, %1259 : vector<8x16xf32>
    %c283 = arith.constant 283 : index
    %1261 = memref.load %arg2[%c283] : memref<288xf32, #tpu.memory_space<smem>>
    %1262 = vector.broadcast %1261 : f32 to vector<8x16xf32>
    %1263 = arith.mulf %984, %1262 : vector<8x16xf32>
    %1264 = arith.addf %1260, %1263 : vector<8x16xf32>
    %c284 = arith.constant 284 : index
    %1265 = memref.load %arg2[%c284] : memref<288xf32, #tpu.memory_space<smem>>
    %1266 = vector.broadcast %1265 : f32 to vector<8x16xf32>
    %1267 = arith.mulf %986, %1266 : vector<8x16xf32>
    %1268 = arith.addf %1264, %1267 : vector<8x16xf32>
    %c285 = arith.constant 285 : index
    %1269 = memref.load %arg2[%c285] : memref<288xf32, #tpu.memory_space<smem>>
    %1270 = vector.broadcast %1269 : f32 to vector<8x16xf32>
    %1271 = arith.mulf %988, %1270 : vector<8x16xf32>
    %1272 = arith.addf %1268, %1271 : vector<8x16xf32>
    %c286 = arith.constant 286 : index
    %1273 = memref.load %arg2[%c286] : memref<288xf32, #tpu.memory_space<smem>>
    %1274 = vector.broadcast %1273 : f32 to vector<8x16xf32>
    %1275 = arith.mulf %990, %1274 : vector<8x16xf32>
    %1276 = arith.addf %1272, %1275 : vector<8x16xf32>
    %c287 = arith.constant 287 : index
    %1277 = memref.load %arg2[%c287] : memref<288xf32, #tpu.memory_space<smem>>
    %1278 = vector.broadcast %1277 : f32 to vector<8x16xf32>
    %1279 = arith.mulf %992, %1278 : vector<8x16xf32>
    %1280 = arith.addf %1276, %1279 : vector<8x16xf32>
    %c0_156 = arith.constant 0 : index
    %c0_157 = arith.constant 0 : index
    %c0_158 = arith.constant 0 : index
    %c0_159 = arith.constant 0 : index
    %1281 = vector.load %arg5[%c0_156, %c0_157, %c0_158, %c0_159] : memref<1x8x8x16xf32, #tpu.memory_space<vmem>>, vector<1x1x8x16xf32>
    %1282 = vector.shape_cast %1281 : vector<1x1x8x16xf32> to vector<8x16xf32>
    %1283 = vector.shape_cast %1028 : vector<8x16xf32> to vector<1x1x8x16xf32>
    tpu.vector_store %arg5[%c0_156, %c0_157, %c0_158, %c0_159], %1283 {strides = array<i32>} : memref<1x8x8x16xf32, #tpu.memory_space<vmem>>, vector<1x1x8x16xf32>,
    %c0_160 = arith.constant 0 : index
    %c1_161 = arith.constant 1 : index
    %c0_162 = arith.constant 0 : index
    %c0_163 = arith.constant 0 : index
    %1284 = vector.load %arg5[%c0_160, %c1_161, %c0_162, %c0_163] : memref<1x8x8x16xf32, #tpu.memory_space<vmem>>, vector<1x1x8x16xf32>
    %1285 = vector.shape_cast %1284 : vector<1x1x8x16xf32> to vector<8x16xf32>
    %1286 = vector.shape_cast %1064 : vector<8x16xf32> to vector<1x1x8x16xf32>
    tpu.vector_store %arg5[%c0_160, %c1_161, %c0_162, %c0_163], %1286 {strides = array<i32>} : memref<1x8x8x16xf32, #tpu.memory_space<vmem>>, vector<1x1x8x16xf32>,
    %c0_164 = arith.constant 0 : index
    %c2_165 = arith.constant 2 : index
    %c0_166 = arith.constant 0 : index
    %c0_167 = arith.constant 0 : index
    %1287 = vector.load %arg5[%c0_164, %c2_165, %c0_166, %c0_167] : memref<1x8x8x16xf32, #tpu.memory_space<vmem>>, vector<1x1x8x16xf32>
    %1288 = vector.shape_cast %1287 : vector<1x1x8x16xf32> to vector<8x16xf32>
    %1289 = vector.shape_cast %1100 : vector<8x16xf32> to vector<1x1x8x16xf32>
    tpu.vector_store %arg5[%c0_164, %c2_165, %c0_166, %c0_167], %1289 {strides = array<i32>} : memref<1x8x8x16xf32, #tpu.memory_space<vmem>>, vector<1x1x8x16xf32>,
    %c0_168 = arith.constant 0 : index
    %c3_169 = arith.constant 3 : index
    %c0_170 = arith.constant 0 : index
    %c0_171 = arith.constant 0 : index
    %1290 = vector.load %arg5[%c0_168, %c3_169, %c0_170, %c0_171] : memref<1x8x8x16xf32, #tpu.memory_space<vmem>>, vector<1x1x8x16xf32>
    %1291 = vector.shape_cast %1290 : vector<1x1x8x16xf32> to vector<8x16xf32>
    %1292 = vector.shape_cast %1136 : vector<8x16xf32> to vector<1x1x8x16xf32>
    tpu.vector_store %arg5[%c0_168, %c3_169, %c0_170, %c0_171], %1292 {strides = array<i32>} : memref<1x8x8x16xf32, #tpu.memory_space<vmem>>, vector<1x1x8x16xf32>,
    %c0_172 = arith.constant 0 : index
    %c4_173 = arith.constant 4 : index
    %c0_174 = arith.constant 0 : index
    %c0_175 = arith.constant 0 : index
    %1293 = vector.load %arg5[%c0_172, %c4_173, %c0_174, %c0_175] : memref<1x8x8x16xf32, #tpu.memory_space<vmem>>, vector<1x1x8x16xf32>
    %1294 = vector.shape_cast %1293 : vector<1x1x8x16xf32> to vector<8x16xf32>
    %1295 = vector.shape_cast %1172 : vector<8x16xf32> to vector<1x1x8x16xf32>
    tpu.vector_store %arg5[%c0_172, %c4_173, %c0_174, %c0_175], %1295 {strides = array<i32>} : memref<1x8x8x16xf32, #tpu.memory_space<vmem>>, vector<1x1x8x16xf32>,
    %c0_176 = arith.constant 0 : index
    %c5_177 = arith.constant 5 : index
    %c0_178 = arith.constant 0 : index
    %c0_179 = arith.constant 0 : index
    %1296 = vector.load %arg5[%c0_176, %c5_177, %c0_178, %c0_179] : memref<1x8x8x16xf32, #tpu.memory_space<vmem>>, vector<1x1x8x16xf32>
    %1297 = vector.shape_cast %1296 : vector<1x1x8x16xf32> to vector<8x16xf32>
    %1298 = vector.shape_cast %1208 : vector<8x16xf32> to vector<1x1x8x16xf32>
    tpu.vector_store %arg5[%c0_176, %c5_177, %c0_178, %c0_179], %1298 {strides = array<i32>} : memref<1x8x8x16xf32, #tpu.memory_space<vmem>>, vector<1x1x8x16xf32>,
    %c0_180 = arith.constant 0 : index
    %c6_181 = arith.constant 6 : index
    %c0_182 = arith.constant 0 : index
    %c0_183 = arith.constant 0 : index
    %1299 = vector.load %arg5[%c0_180, %c6_181, %c0_182, %c0_183] : memref<1x8x8x16xf32, #tpu.memory_space<vmem>>, vector<1x1x8x16xf32>
    %1300 = vector.shape_cast %1299 : vector<1x1x8x16xf32> to vector<8x16xf32>
    %1301 = vector.shape_cast %1244 : vector<8x16xf32> to vector<1x1x8x16xf32>
    tpu.vector_store %arg5[%c0_180, %c6_181, %c0_182, %c0_183], %1301 {strides = array<i32>} : memref<1x8x8x16xf32, #tpu.memory_space<vmem>>, vector<1x1x8x16xf32>,
    %c0_184 = arith.constant 0 : index
    %c7_185 = arith.constant 7 : index
    %c0_186 = arith.constant 0 : index
    %c0_187 = arith.constant 0 : index
    %1302 = vector.load %arg5[%c0_184, %c7_185, %c0_186, %c0_187] : memref<1x8x8x16xf32, #tpu.memory_space<vmem>>, vector<1x1x8x16xf32>
    %1303 = vector.shape_cast %1302 : vector<1x1x8x16xf32> to vector<8x16xf32>
    %1304 = vector.shape_cast %1280 : vector<8x16xf32> to vector<1x1x8x16xf32>
    tpu.vector_store %arg5[%c0_184, %c7_185, %c0_186, %c0_187], %1304 {strides = array<i32>} : memref<1x8x8x16xf32, #tpu.memory_space<vmem>>, vector<1x1x8x16xf32>,
    return
  }
  func.func @transform_0(%arg0: i32, %arg1: i32) -> i32 {
    %c0_i32 = arith.constant 0 : i32
    %c0_i32_0 = arith.constant 0 : i32
    return %c0_i32 : i32
  }
  func.func @transform_1(%arg0: i32, %arg1: i32) -> i32 {
    %c0_i32 = arith.constant 0 : i32
    %c0_i32_0 = arith.constant 0 : i32
    return %c0_i32 : i32
  }
  func.func @transform_2(%arg0: i32, %arg1: i32) -> (i32, i32, i32, i32) {
    %c0_i32 = arith.constant 0 : i32
    %c0_i32_0 = arith.constant 0 : i32
    %c0_i32_1 = arith.constant 0 : i32
    %c0_i32_2 = arith.constant 0 : i32
    return %arg0, %c0_i32, %c0_i32_0, %c0_i32_1 : i32, i32, i32, i32
  }
  func.func @transform_3(%arg0: i32, %arg1: i32) -> (i32, i32, i32, i32) {
    %c0_i32 = arith.constant 0 : i32
    %c0_i32_0 = arith.constant 0 : i32
    %c0_i32_1 = arith.constant 0 : i32
    return %arg0, %c0_i32, %arg1, %c0_i32_0 : i32, i32, i32, i32
  }
}

</mosaic_0001>

<bundles_post_ra>
// kernel: tpu_custom_call.1
= control target key start
LH: loop header
LB: loop body
LE: loop exit
PB: predicated region body
PF: predicated region fallthrough
CT: control target
= control target key end

     0   :  { %s4956_s0 = inlined_call_operand.hbm [shape: f32[288], index: 0, kind: input, shape index: {}]   ;;  %s4957_s1 = inlined_call_operand.hbm [shape: f32[8], index: 1, kind: input, shape index: {}]   ;;  %s4958_s2 = inlined_call_operand.hbm [shape: f32[2,4,16,16], index: 2, kind: input, shape index: {}]   ;;  %s4959_s3 = inlined_call_operand.hbm [shape: f32[2,8,16,16], index: 3, kind: output, shape index: {}]  }
   0x1   :  { %4966 = sst [smem:[#allocation26_spill]] %s4956_s0 }
   0x2   :  { %4967 = sst [smem:[#allocation27_spill]] %s4957_s1 }
   0x3   :  { %8 = vsyncpa [#allocation6], 0 }
   0x4   :  { %9 = vsyncpa [#allocation8], 0 }
   0x5   :  { %10 = vsyncpa [#allocation4], 0 }
   0x6   :  { %12 = vsyncpa [#allocation4 + $0x1], 0 }
   0x7   :  { %13 = vsyncpa [#allocation5], 0 }
   0x8   :  { %15 = vsyncpa [#allocation5 + $0x1], 0  ;;  %s3209_s12 = smov 0   ;;  %s3211_s13 = smov 0  }
   0x9   :  { %s3213_s14 = smov 0   ;;  %s3215_s15 = smov 0  }
   0xa   :  { %s3217_s16 = smov 0   ;;  %s3219_s17 = smov 0  }
   0xb   :  { %s3221_s18 = smov 0   ;;  %s3223_s19 = smov 0  }
   0xc   :  { %s3225_s20 = smov 0   ;;  %s3227_s21 = smov 0  }
   0xd   :  { %s3229_s22 = smov 0  }
   0xe LB: > { %4968 = sst [smem:[#allocation15_spill]] %s3136_s12  ;;  %s2520_s23 = sadd.s32 4294967295, %s3176_s22   ;;  %s3176_s22 = sphi %s3229_s22, %s5010_s22   ;;  %s3172_s21 = sphi %s3227_s21, %s5009_s21   ;;  %s3168_s20 = sphi %s3225_s20, %s5008_s20   ;;  %s3164_s19 = sphi %s3223_s19, %s5007_s19   ;;  %s3160_s18 = sphi %s3221_s18, %s4999_s18   ;;  %s3156_s17 = sphi %s3219_s17, %s5006_s17   ;;  %s3152_s16 = sphi %s3217_s16, %s5005_s16   ;;  %s3148_s15 = sphi %s3215_s15, %s5004_s15   ;;  %s3144_s14 = sphi %s3213_s14, %s5003_s14   ;;  %s3140_s13 = sphi %s3211_s13, %s5002_s13   ;;  %s3136_s12 = sphi %s3209_s12, %s5001_s12  }
   0xf   : > { %4969 = sst [smem:[#allocation16_spill]] %s3168_s20  ;;  %s2521_s24 = sadd.s32 4294967294, %s3176_s22  }
  0x10   : > { %4970 = sst [smem:[#allocation17_spill]] %s3176_s22  ;;  %p89_p0 = scmp.ne.s32.totalorder %s3156_s17, %s3152_s16 }
  0x11   : > { %p90_p1 = scmp.eq.s32.totalorder %s3176_s22, 0  ;;  %p95_p2 = scmp.ne.s32.totalorder %s3152_s16, %s3148_s15 }
  0x12   : > { %p3269_p3 = scmp.eq.s32.totalorder %s2520_s23, 0  ;;  %p120_p5 = scmp.ne.s32.totalorder %s3144_s14, %s3140_s13 }
  0x13   : > { %p3274_p4 = por %p90_p1, %p89_p0  ;;  %p121_p7 = scmp.eq.s32.totalorder %s2520_s23, 3 }
  0x14   : > { %p3282_p6 = por %p3269_p3, %p95_p2  ;;  %p126_p8 = scmp.ne.s32.totalorder %s3140_s13, %s3136_s12 }
  0x15   : > { %p127_p9 = scmp.eq.s32.totalorder %s2521_s24, 3  ;;  %p3288_p10 = por %p121_p7, %p120_p5 }
  0x16   : > { %p2522_p11 = scmp.ge.s32.totalorder %s3176_s22, 1  ;;  %p134_p13 = scmp.lt.s32.totalorder %s3176_s22, 5 }
  0x17   : > { %p3293_p12 = por %p127_p9, %p126_p8  ;;  %s4977_s0 = sld [smem:[#allocation26_spill]] }
  0x18   : > { %p3301_p0 = pnand %p2522_p11, %p134_p13  ;;  %p2872_p2 = scmp.lt.s32.totalorder %s3176_s22, 4 }
  0x19   : > { %s4975_s4 = scalar_select %p3293_p12, 1, 0 }
  0x1a   : > { %p2855_p1 = pneg %p3301_p0  ;;  %s4979_s1 = sld [smem:[#allocation27_spill]] }
  0x1b   : > { %4976 = sst [smem:[#allocation18_spill]] %s4975_s4  ;;  %p3315_p7 = pnand %p2872_p2, %p3274_p4 }
  0x1c   : > { %p2856_p5 = pnand %p2855_p1, %p3269_p3  ;;  %s3178_s23 = smov [#allocation3]  }
  0x1d   : > { %s146_s7 = sshll.u32 %s4977_s0, 4  ;;  %s3179_s24 = smov [#allocation7]   ;;  %s147_s7 = int_to_ptr.hbm [resolvable:$true] %s146_s7 }
  0x1e   : > { %2858 = dma.hbm_to_smem (!%p2856_p5), %s147_s7, 48, %s3178_s23, [#allocation6]  }
  0x1f   : > { %s30_s5 = sadd.s32 1, %s3168_s20  ;;  %s33_s6 = sadd.s32 1, %s3172_s21 }
  0x20   : > { %s156_s11 = sshll.u32 %s4979_s1, 4  ;;  %p31_p8 = scmp.ge.s32.totalorder %s30_s5, 2  ;;  %s157_s11 = int_to_ptr.hbm [resolvable:$true] %s156_s11 }
  0x21   : > { %2861 = dma.hbm_to_smem (!%p2856_p5), %s157_s11, 16, %s3179_s24, [#allocation8]  }
  0x22   : > { %s167_s27 = sand.u32 1, %s3156_s17   ;;  %s2842_s9 = sshll.u32 %s3172_s21, 6 }
  0x23   : > { %s5012_s5 = smov (%p31_p8, %s30_s5), 0  ;;  %s5014_s6 = smov (!%p31_p8, %s33_s6), %s3172_s21 }
  0x24   : > { %4981 = sst [smem:[#allocation19_spill]] %s5012_s5  ;;  %s106_s28 = ssub.s32 %s3168_s20, %s5012_s5 }
  0x25   : > { %p35_p4 = scmp.ge.s32.totalorder %s5014_s6, 2  ;;  %s2526_s10 = sshll.u32 %s167_s27, 6 }
  0x26   : > { %s176_s11 = scalar_lea.hbm %s4958_s2, %s2842_s9  ;;  %s171_s25 = scalar_lea.vmem [#allocation9], %s2526_s10 }
  0x27   : > { %s5016_s6 = smov (%p35_p4, %s5014_s6), 0  ;;  %s177_s24 = sshll.u32 %s176_s11, 4  ;;  %s178_s24 = int_to_ptr.hbm [resolvable:$true] %s177_s24 }
  0x28   : > { %s179_s0 = sshll.u32 %s171_s25, 4  ;;  %s79_s1 = ssub.s32 %s3172_s21, %s5016_s6  ;;  %s180_s0 = int_to_ptr.vmem [resolvable:$true] %s179_s0 }
  0x29   : > { %p80_p9 = scmp.eq.s32.totalorder %s79_s1, 0  ;;  %s107_s4 = sor.u32 %s106_s28, %s79_s1 }
  0x2a   : > { %p108_p11 = scmp.eq.s32.totalorder %s107_s4, 0  ;;  %s4982_s5 = sadd.s32 1, %s3156_s17 }
  0x2b   : > { %s3338_s20 = scalar_select %p80_p9, %s3156_s17, %s4982_s5  }
  0x2c   : > { %s4983_s12 = sadd.s32 1, %s3144_s14  ;;  %s168_s9 = scalar_lea.sflag [#allocation4], %s167_s27 }
  0x2d   : > { %s3343_s22 = scalar_select %p108_p11, %s3144_s14, %s4983_s12  }
  0x2e   : > { %s3180_s7 = smov 128   ;;  %s3181_s23 = smov 8  }
  0x2f   : > { %2865 = dma.hbm_to_vmem [thread:$0]  (!%p3315_p7), %s178_s24, 1024, %s180_s0, %s168_s9, %s3180_s7, %s3180_s7, %s3181_s23  }
  0x30   : > { %191 = sbr.rel (%p3301_p0) target bundleno = 1088 (0x440), region = 32 }
  0x35   : > { %3119 = dma.done.wait (%p3269_p3), [#allocation6], 48  }
  0x36   : > { %3121 = vsyncadd (%p3269_p3), [#allocation6], 4294967248 }
  0x37   : > { %3123 = dma.done.wait (%p3269_p3), [#allocation8], 16  }
  0x38   : > { %3125 = vsyncadd (%p3269_p3), [#allocation8], 4294967280  ;;  %s203_s1 = sand.u32 1, %s3152_s16  }
  0x39   : > { %s2532_s12 = sshll.u32 %s203_s1, 6  ;;  %s204_s0 = scalar_lea.sflag [#allocation4], %s203_s1 }
  0x3a   : > { %s207_s25 = scalar_lea.vmem [#allocation9], %s2532_s12 }
  0x3b   : > { %3127 = dma.done.wait (%p3282_p6), %s204_s0, 1024  }
  0x3c   : > { %3129 = vsyncadd (%p3282_p6), %s204_s0, 4294966272 }
  0x3d   : > { %213 = sfence }
  0x3e   : > { %s2534_s27 = sshll.u32 %s3160_s18, 3  ;;  %s3182_s8 = smov 1   ;;  %vm286_vm0 = vcmask 131080   ;;  %vm257_vm1 = vcmask 138248   ;;  %vm356_vm2 = vcmask 7168   ;;  %vm358_vm3 = vcmask 1024  }
  0x3f   : > { %s236_s4 = scalar_lea.vmem %s207_s25, %s2534_s27 [#allocation9]  ;;  %p233_p13 = scmp.eq.s32.totalorder %s2534_s27, 0  ;;  %vm406_vm4 = vcmask 146568   ;;  %vm408_vm5 = vcmask 140424   ;;  %vm2375_vm6 = vcmask 130048  }
  0x40   : > { %v239_v0 = vld [vmem:[%s236_s4 + $0x20] sm:$0xff]  ;;  %s2535_s26 = sadd.s32 4294967295, %s2534_s27  ;;  %s234_s5 = sadd.s32 8, %s2534_s27  ;;  %v240_v3 = vld [vmem:[%s236_s4 + $0x30] sm:$0xff] }
  0x41   : > { %v237_v1 = vld [vmem:[%s236_s4] sm:$0xff]  ;;  %249 = vrot.lane.b32.xlu1 %v239_v0, %s3182_s8  ;;  %s5018_s26 = smov (%p233_p13, %s2535_s26), 1  ;;  %v238_v4 = vld [vmem:[%s236_s4 + $0x10] sm:$0xff]  ;;  %p235_p3 = scmp.eq.s32.totalorder %s234_s5, 16 }
  0x42   : > { %245 = vrot.lane.b32.xlu0 %v237_v1, %s3182_s8  ;;  %s265_s15 = scalar_lea.vmem %s207_s25, %s5018_s26 [#allocation9]  ;;  %s3183_s28 = smov 126  }
  0x43   : > { %v266_v2 = vld [vmem:[%s265_s15] sm:$0x1]  ;;  %v267_v5 = vld [vmem:[%s265_s15 + $0x10] sm:$0x1]  ;;  %s5020_s5 = smov (%p235_p3, %s234_s5), 14  ;;  %s3184_s10 = smov 2  }
  0x44   : > { %274 = vrot.lane.b32.xlu2 %v266_v2, %s3182_s8  ;;  %v269_v6 = vld [vmem:[%s265_s15 + $0x30] sm:$0x1]  ;;  %v268_v7 = vld [vmem:[%s265_s15 + $0x20] sm:$0x1]  ;;  %s291_s29 = scalar_lea.vmem %s207_s25, %s5020_s5 [#allocation9]  ;;  %s2544_s11 = sld [smem:[#allocation3 + $0x2]] }
  0x45   : > { %v292_v8 = vld [vmem:[%s291_s29] sm:$0x1]  ;;  %v293_v10 = vld [vmem:[%s291_s29 + $0x10] sm:$0x1]  ;;  %s2543_s24 = sld [smem:[#allocation3 + $0x1]]  ;;  %s3185_s23 = smov 127  }
  0x46   : > { %v294_v9 = vld [vmem:[%s291_s29 + $0x20] sm:$0x1]  ;;  %v295_v11 = vld [vmem:[%s291_s29 + $0x30] sm:$0x1]  ;;  %s2553_s9 = sld [smem:[#allocation3 + $0x26]] }
  0x47   : > { %s2552_s7 = sld [smem:[#allocation3 + $0x25]] }
  0x48   : > { %s2562_s1 = sld [smem:[#allocation3 + $0x4a]] }
  0x49   : > { %251 = vrot.lane.b32.xlu1 %v240_v3, %s3182_s8  ;;  %s2561_s12 = sld [smem:[#allocation3 + $0x49]] }
  0x4a   : > { %247 = vrot.lane.b32.xlu0 %v238_v4, %s3182_s8  ;;  %v456_v49 = vstv %s2544_s11  ;;  %s2571_s0 = sld [smem:[#allocation3 + $0x6e]] }
  0x4b   : > { %v448_v50 = vstv %s2543_s24  ;;  %s2570_s25 = sld [smem:[#allocation3 + $0x6d]] }
  0x4c   : > { %276 = vrot.lane.b32.xlu2 %v267_v5, %s3182_s8  ;;  %v516_v55 = vstv %s2553_s9  ;;  %s2580_s27 = sld [smem:[#allocation3 + $0x92]] }
  0x4d   : > { %v508_v56 = vstv %s2552_s7  ;;  %s2579_s4 = sld [smem:[#allocation3 + $0x91]] }
  0x4e   : > { %v576_v60 = vstv %s2562_s1  ;;  %s2589_s26 = sld [smem:[#allocation3 + $0xb6]] }
  0x4f   : > { %v568_v61 = vstv %s2561_s12  ;;  %s2598_s15 = sld [smem:[#allocation3 + $0xda]] }
  0x50   : > { %v636_v2 = vstv %s2571_s0  ;;  %s2597_s5 = sld [smem:[#allocation3 + $0xd9]] }
  0x51   : > { %280 = vrot.lane.b32.xlu1 %v269_v6, %s3182_s8  ;;  %v628_v3 = vstv %s2570_s25  ;;  %s2546_s29 = sld [smem:[#allocation3 + $0x4]] }
  0x52   : > { %278 = vrot.lane.b32.xlu0 %v268_v7, %s3182_s8  ;;  %v696_v6 = vstv %s2580_s27  ;;  %s2606_s11 = sld [smem:[#allocation3 + $0xfd]] }
  0x53   : > { %v688_v7 = vstv %s2579_s4  ;;  %s2550_s24 = sld [smem:[#allocation3 + $0x8]] }
  0x54   : > { %300 = vrot.lane.b32.xlu2 %v292_v8, %s3182_s8  ;;  %s2616_s9 = sld [smem:[#allocation3 + $0xb]] }
  0x55   : > { %s2615_s7 = sld [smem:[#allocation3 + $0xa]] }
  0x56   : > { %s2555_s1 = sld [smem:[#allocation3 + $0x28]] }
  0x57   : > { %s2625_s12 = sld [smem:[#allocation3 + $0x2f]] }
  0x58   : > { %s2624_s0 = sld [smem:[#allocation3 + $0x2e]] }
  0x59   : > { %304 = vrot.lane.b32.xlu1 %v294_v9, %s3182_s8  ;;  %s2559_s25 = sld [smem:[#allocation3 + $0x2c]] }
  0x5a   : > { %302 = vrot.lane.b32.xlu0 %v293_v10, %s3182_s8  ;;  %s2634_s27 = sld [smem:[#allocation3 + $0x53]] }
  0x5b   : > { %s2633_s4 = sld [smem:[#allocation3 + $0x52]] }
  0x5c   : > { %306 = vrot.lane.b32.xlu2 %v295_v11, %s3182_s8  ;;  %s2588_s8 = sld [smem:[#allocation3 + $0xb5]]  ;;  %v756_v11 = vstv %s2589_s26 }
  0x5d   : > { %s2564_s26 = sld [smem:[#allocation3 + $0x4c]] }
  0x9e   : > { %v275_v12 = vpop.permute.xlu2 %274 }
  0x9f   : > { %287 = vst.msk [vmem:[#allocation2] sm:$0x1] %vm286_vm0, %v275_v12  ;;  %v748_v12 = vstv %s2588_s8  ;;  %s2643_s8 = sld [smem:[#allocation3 + $0x77]] }
  0xa6   : > { %v277_v13 = vpop.permute.xlu2 %276 }
  0xa7   : > { %288 = vst.msk [vmem:[#allocation2 + $0x10] sm:$0x1] %vm286_vm0, %v277_v13 }
  0xae   : > { %v301_v14 = vpop.permute.xlu2 %300 }
  0xaf   : > { %312 = vst.msk [vmem:[#allocation2 + $0x9] sm:$0x1] %vm286_vm0, %v301_v14 }
  0xb3   : > { %v250_v15 = vpop.permute.xlu1 %249 }
  0xb4   : > { %v246_v16 = vpop.permute.xlu0 %245  ;;  %260 = vst.msk [vmem:[#allocation2 + $0x21] sm:$0xff] %vm257_vm1, %v250_v15 }
  0xb5   : > { %258 = vst.msk [vmem:[#allocation2 + $0x1] sm:$0xff] %vm257_vm1, %v246_v16  ;;  %v816_v16 = vstv %s2598_s15  ;;  %s2642_s15 = sld [smem:[#allocation3 + $0x76]] }
  0xb6   : > { %v307_v30 = vpop.permute.xlu2 %306 }
  0xb7   : > { %315 = vst.msk [vmem:[#allocation2 + $0x39] sm:$0x1] %vm286_vm0, %v307_v30 }
  0xbb   : > { %v252_v17 = vpop.permute.xlu1 %251 }
  0xbc   : > { %v248_v18 = vpop.permute.xlu0 %247  ;;  %261 = vst.msk [vmem:[#allocation2 + $0x31] sm:$0xff] %vm257_vm1, %v252_v17  ;;  %v316_v19 = vld [vmem:[#allocation2] sm:$0xff]  ;;  %v317_v29 = vld [vmem:[#allocation2 + $0x8] sm:$0x3]  ;;  %v808_v17 = vstv %s2597_s5  ;;  %s2568_s5 = sld [smem:[#allocation3 + $0x50]] }
  0xbd   : > { %259 = vst.msk [vmem:[#allocation2 + $0x11] sm:$0xff] %vm257_vm1, %v248_v18  ;;  %332 = vrot.lane.b32.xlu0 %v316_v19, %s3183_s28  ;;  %v468_v18 = vstv %s2546_s29  ;;  %s2652_s29 = sld [smem:[#allocation3 + $0x9b]] }
  0xc3   : > { %v281_v20 = vpop.permute.xlu1 %280  ;;  %v323_v31 = vld [vmem:[#allocation2 + $0x38] sm:$0x3] }
  0xc4   : > { %v279_v21 = vpop.permute.xlu0 %278  ;;  %290 = vst.msk [vmem:[#allocation2 + $0x30] sm:$0x1] %vm286_vm0, %v281_v20  ;;  %v318_v22 = vld [vmem:[#allocation2 + $0x10] sm:$0xff] }
  0xc5   : > { %289 = vst.msk [vmem:[#allocation2 + $0x20] sm:$0x1] %vm286_vm0, %v279_v21  ;;  %336 = vrot.lane.b32.xlu2 %v318_v22, %s3183_s28 }
  0xcb   : > { %v305_v23 = vpop.permute.xlu1 %304  ;;  %v322_v25 = vld [vmem:[#allocation2 + $0x30] sm:$0xff] }
  0xcc   : > { %v303_v24 = vpop.permute.xlu0 %302  ;;  %314 = vst.msk [vmem:[#allocation2 + $0x29] sm:$0x1] %vm286_vm0, %v305_v23  ;;  %v320_v26 = vld [vmem:[#allocation2 + $0x20] sm:$0xff]  ;;  %344 = vrot.lane.b32.xlu0 %v322_v25, %s3183_s28 }
  0xcd   : > { %313 = vst.msk [vmem:[#allocation2 + $0x19] sm:$0x1] %vm286_vm0, %v303_v24  ;;  %340 = vrot.lane.b32.xlu1 %v320_v26, %s3183_s28  ;;  %v868_v24 = vstv %s2606_s11  ;;  %v496_v26 = vstv %s2550_s24  ;;  %s2573_s11 = sld [smem:[#allocation3 + $0x70]] }
  0xce   : > { %s2661_s24 = sld [smem:[#allocation3 + $0xbf]] }
  0xd3   : > { %v321_v27 = vld [vmem:[#allocation2 + $0x28] sm:$0x3] }
  0xd4   : > { %v319_v28 = vld [vmem:[#allocation2 + $0x18] sm:$0x3]  ;;  %342 = vrot.lane.b32.xlu2 %v321_v27, %s3183_s28 }
  0xd5   : > { %338 = vrot.lane.b32.xlu0 %v319_v28, %s3183_s28  ;;  %334 = vrot.lane.b32.xlu1 %v317_v29, %s3183_s28 }
  0xdd   : > { %346 = vrot.lane.b32.xlu1 %v323_v31, %s3183_s28  ;;  %v940_v31 = vstv %s2616_s9  ;;  %s2660_s9 = sld [smem:[#allocation3 + $0xbe]] }
 0x11f   : > { %v337_v32 = vpop.permute.xlu2 %336 }
 0x120   : > { %360 = vst.msk [vmem:[#allocation2 + $0x10] sm:$0xff] %vm356_vm2, %v337_v32  ;;  %v932_v32 = vstv %s2615_s7  ;;  %s2577_s7 = sld [smem:[#allocation3 + $0x74]] }
 0x127   : > { %v368_v33 = vld [vmem:[#allocation2 + $0x10] sm:$0xff] }
 0x128   : > { %386 = vrot.lane.b32.xlu1 %v368_v33, %s3184_s10  ;;  %v528_v33 = vstv %s2555_s1  ;;  %s2670_s1 = sld [smem:[#allocation3 + $0xe3]] }
 0x12e   : > { %v343_v34 = vpop.permute.xlu2 %342 }
 0x12f   : > { %v333_v35 = vpop.permute.xlu0 %332  ;;  %363 = vst.msk [vmem:[#allocation2 + $0x28] sm:$0x3] %vm358_vm3, %v343_v34 }
 0x130   : > { %357 = vst.msk [vmem:[#allocation2] sm:$0xff] %vm356_vm2, %v333_v35 }
 0x136   : > { %v371_v36 = vld [vmem:[#allocation2 + $0x28] sm:$0x3] }
 0x137   : > { %v366_v37 = vld [vmem:[#allocation2] sm:$0xff]  ;;  %392 = vrot.lane.b32.xlu1 %v371_v36, %s3184_s10 }
 0x138   : > { %382 = vrot.lane.b32.xlu2 %v366_v37, %s3184_s10  ;;  %v1000_v37 = vstv %s2625_s12  ;;  %s443_s12 = sld [smem:[#allocation3]] }
 0x13e   : > { %v345_v38 = vpop.permute.xlu0 %344 }
 0x13f   : > { %v341_v39 = vpop.permute.xlu1 %340  ;;  %364 = vst.msk [vmem:[#allocation2 + $0x30] sm:$0xff] %vm356_vm2, %v345_v38  ;;  %v992_v38 = vstv %s2624_s0  ;;  %s2669_s0 = sld [smem:[#allocation3 + $0xe2]] }
 0x140   : > { %362 = vst.msk [vmem:[#allocation2 + $0x20] sm:$0xff] %vm356_vm2, %v341_v39  ;;  %v556_v39 = vstv %s2559_s25  ;;  %s2582_s25 = sld [smem:[#allocation3 + $0x94]] }
 0x146   : > { %v372_v40 = vld [vmem:[#allocation2 + $0x30] sm:$0xff] }
 0x147   : > { %v339_v41 = vpop.permute.xlu0 %338  ;;  %v335_v42 = vpop.permute.xlu1 %334  ;;  %v370_v43 = vld [vmem:[#allocation2 + $0x20] sm:$0xff]  ;;  %394 = vrot.lane.b32.xlu2 %v372_v40, %s3184_s10 }
 0x148   : > { %361 = vst.msk [vmem:[#allocation2 + $0x18] sm:$0x3] %vm358_vm3, %v339_v41  ;;  %390 = vrot.lane.b32.xlu0 %v370_v43, %s3184_s10 }
 0x149   : > { %359 = vst.msk [vmem:[#allocation2 + $0x8] sm:$0x3] %vm358_vm3, %v335_v42 }
 0x14f   : > { %v369_v44 = vld [vmem:[#allocation2 + $0x18] sm:$0x3]  ;;  %v347_v46 = vpop.permute.xlu1 %346 }
 0x150   : > { %388 = vrot.lane.b32.xlu2 %v369_v44, %s3184_s10  ;;  %v367_v45 = vld [vmem:[#allocation2 + $0x8] sm:$0x3]  ;;  %365 = vst.msk [vmem:[#allocation2 + $0x38] sm:$0x3] %vm358_vm3, %v347_v46  ;;  %v1060_v44 = vstv %s2634_s27  ;;  %v588_v46 = vstv %s2564_s26  ;;  %s416_s27 = sld [smem:[#allocation7]] }
 0x151   : > { %384 = vrot.lane.b32.xlu0 %v367_v45, %s3184_s10  ;;  %v1052_v45 = vstv %s2633_s4  ;;  %s3476_s4 = sld [smem:[#allocation3 + $0x107]] }
 0x152   : > { %s3479_s26 = sld [smem:[#allocation3 + $0x24]] }
 0x157   : > { %v373_v47 = vld [vmem:[#allocation2 + $0x38] sm:$0x3] }
 0x159   : > { %396 = vrot.lane.b32.xlu0 %v373_v47, %s3184_s10  ;;  %s2607_s10 = sld [smem:[#allocation3 + $0xfe]] }
 0x15f   : > { %v876_v23 = vstv %s2607_s10  ;;  %s2651_s10 = sld [smem:[#allocation3 + $0x9a]] }
 0x192   : > { %v383_v48 = vpop.permute.xlu2 %382 }
 0x193   : > { %407 = vst.msk [vmem:[#allocation2] sm:$0xff] %vm406_vm4, %v383_v48 }
 0x19a   : > { %v3388_v51 = vld [vmem:[#allocation2] sm:$0xff]  ;;  %v387_v52 = vpop.permute.xlu1 %386 }
 0x19b   : > { %410 = vst.msk [vmem:[#allocation2 + $0x10] sm:$0xff] %vm406_vm4, %v387_v52  ;;  %v457_v53 = vmul.f32 %v456_v49, %v3388_v51  ;;  %v449_v54 = vmul.f32 %v448_v50, %v3388_v51  ;;  %v517_v58 = vmul.f32 %v516_v55, %v3388_v51  ;;  %v509_v59 = vmul.f32 %v508_v56, %v3388_v51 }
 0x19c   : > { %v577_v0 = vmul.f32 %v576_v60, %v3388_v51  ;;  %v569_v1 = vmul.f32 %v568_v61, %v3388_v51  ;;  %v637_v4 = vmul.f32 %v636_v2, %v3388_v51  ;;  %v629_v5 = vmul.f32 %v628_v3, %v3388_v51 }
 0x19d   : > { %459 = vrot.lane.b32.xlu2 %v457_v53, %s3183_s28  ;;  %451 = vrot.lane.b32.xlu1 %v449_v54, %s3185_s23  ;;  %v697_v9 = vmul.f32 %v696_v6, %v3388_v51  ;;  %v689_v10 = vmul.f32 %v688_v7, %v3388_v51  ;;  %v757_v14 = vmul.f32 %v756_v11, %v3388_v51  ;;  %v1120_v50 = vstv %s2643_s8  ;;  %s3483_s8 = sld [smem:[#allocation3 + $0x3]] }
 0x19e   : > { %v749_v15 = vmul.f32 %v748_v12, %v3388_v51  ;;  %v817_v20 = vmul.f32 %v816_v16, %v3388_v51  ;;  %v809_v21 = vmul.f32 %v808_v17, %v3388_v51  ;;  %v877_v27 = vmul.f32 %v876_v23, %v3388_v51 }
 0x19f   : > { %v869_v28 = vmul.f32 %v868_v24, %v3388_v51  ;;  %v1112_v52 = vstv %s2642_s15  ;;  %v616_v53 = vstv %s2568_s5  ;;  %v648_v60 = vstv %s2573_s11  ;;  %s2678_s15 = sld [smem:[#allocation3 + $0x106]] }
 0x1a0   : > { %v1232_v2 = vstv %s2660_s9  ;;  %v676_v3 = vstv %s2577_s7  ;;  %v708_v11 = vstv %s2582_s25  ;;  %s3485_s5 = sld [smem:[#allocation3 + $0x98]]  ;;  %v1360_v24 = vstv %s3476_s4 }
 0x1a1   : > { %v395_v57 = vpop.permute.xlu2 %394  ;;  %s3498_s11 = sld [smem:[#allocation3 + $0x14]] }
 0x1a2   : > { %414 = vst.msk [vmem:[#allocation2 + $0x30] sm:$0xff] %vm406_vm4, %v395_v57  ;;  %v3436_v30 = vld [vmem:[#allocation2 + $0x10] sm:$0xff]  ;;  %s3507_s9 = sld [smem:[#allocation3 + $0x13]] }
 0x1a3   : > { %v941_v34 = vmul.f32 %v940_v31, %v3436_v30  ;;  %v933_v35 = vmul.f32 %v932_v32, %v3436_v30  ;;  %v1001_v40 = vmul.f32 %v1000_v37, %v3436_v30  ;;  %v993_v41 = vmul.f32 %v992_v38, %v3436_v30  ;;  %s3510_s7 = sld [smem:[#allocation3 + $0xb8]] }
 0x1a4   : > { %v1061_v47 = vmul.f32 %v1060_v44, %v3436_v30  ;;  %v1053_v48 = vmul.f32 %v1052_v45, %v3436_v30  ;;  %v1121_v54 = vmul.f32 %v1120_v50, %v3436_v30  ;;  %v1113_v55 = vmul.f32 %v1112_v52, %v3436_v30  ;;  %s3533_s25 = sld [smem:[#allocation3 + $0x4b]] }
 0x1a5   : > { %519 = vrot.lane.b32.xlu2 %v517_v58, %s3183_s28  ;;  %511 = vrot.lane.b32.xlu1 %v509_v59, %s3185_s23  ;;  %v1180_v58 = vstv %s2652_s29  ;;  %v1172_v59 = vstv %s2651_s10  ;;  %s3490_s29 = sld [smem:[#allocation7 + $0x1]]  ;;  %v1361_v32 = vmul.f32 %v1360_v24, %v3436_v30 }
 0x1a6   : > { %v1181_v61 = vmul.f32 %v1180_v58, %v3436_v30  ;;  %s3495_s10 = sld [smem:[#allocation3 + $0x48]] }
 0x1a7   : > { %s3542_s4 = sld [smem:[#allocation3 + $0xbc]] }
 0x1a8   : > { %v1416_v44 = vstv %s3507_s9  ;;  %s3591_s9 = sld [smem:[#allocation3 + $0xb4]] }
 0x1a9   : > { %v393_v62 = vpop.permute.xlu1 %392  ;;  %v768_v45 = vstv %s3510_s7  ;;  %s3597_s7 = sld [smem:[#allocation3 + $0x93]] }
 0x1aa   : > { %413 = vst.msk [vmem:[#allocation2 + $0x28] sm:$0x3] %vm408_vm5, %v393_v62  ;;  %v389_v63 = vpop.permute.xlu2 %388  ;;  %v1173_v62 = vmul.f32 %v1172_v59, %v3436_v30  ;;  %v584_v59 = vstv %s3533_s25  ;;  %s3619_s25 = sld [smem:[#allocation3 + $0x7]] }
 0x1ab   : > { %411 = vst.msk [vmem:[#allocation2 + $0x18] sm:$0x3] %vm408_vm5, %v389_v63 }
 0x1ad   : > { %579 = vrot.lane.b32.xlu2 %v577_v0, %s3183_s28  ;;  %571 = vrot.lane.b32.xlu1 %v569_v1, %s3185_s23  ;;  %v1240_v1 = vstv %s2661_s24  ;;  %s3504_s24 = sld [smem:[#allocation3 + $0x27]] }
 0x1b5   : > { %639 = vrot.lane.b32.xlu2 %v637_v4, %s3183_s28  ;;  %631 = vrot.lane.b32.xlu1 %v629_v5, %s3185_s23  ;;  %v1241_v4 = vmul.f32 %v1240_v1, %v3436_v30  ;;  %v1233_v5 = vmul.f32 %v1232_v2, %v3436_v30 }
 0x1ba   : > { %v391_v8 = vpop.permute.xlu0 %390 }
 0x1bb   : > { %412 = vst.msk [vmem:[#allocation2 + $0x20] sm:$0xff] %vm406_vm4, %v391_v8  ;;  %v444_v8 = vstv %s443_s12  ;;  %s3524_s12 = sld [smem:[#allocation3 + $0x6c]] }
 0x1bc   : > { %v445_v12 = vmul.f32 %v444_v8, %v3388_v51 }
 0x1bd   : > { %699 = vrot.lane.b32.xlu2 %v697_v9, %s3183_s28  ;;  %691 = vrot.lane.b32.xlu1 %v689_v10, %s3185_s23  ;;  %v1300_v9 = vstv %s2670_s1  ;;  %v1292_v10 = vstv %s2669_s0  ;;  %s3517_s1 = sld [smem:[#allocation7 + $0x2]] }
 0x1be   : > { %s3527_s0 = sld [smem:[#allocation3 + $0x38]] }
 0x1c1   : > { %v624_v58 = vstv %s3524_s12  ;;  %s3604_s12 = sld [smem:[#allocation3 + $0xe0]] }
 0x1c2   : > { %v625_v1 = vmul.f32 %v624_v58, %v3388_v51 }
 0x1c3   : > { %v385_v13 = vpop.permute.xlu0 %384  ;;  %v423_v52 = vstv %s3517_s1  ;;  %s3601_s1 = sld [smem:[#allocation3 + $0x7f]] }
 0x1c4   : > { %409 = vst.msk [vmem:[#allocation2 + $0x8] sm:$0x3] %vm408_vm5, %v385_v13  ;;  %v1301_v13 = vmul.f32 %v1300_v9, %v3436_v30 }
 0x1c5   : > { %759 = vrot.lane.b32.xlu2 %v757_v14, %s3183_s28  ;;  %751 = vrot.lane.b32.xlu1 %v749_v15, %s3185_s23  ;;  %v1293_v14 = vmul.f32 %v1292_v10, %v3436_v30  ;;  %v417_v15 = vstv %s416_s27  ;;  %s3539_s27 = sld [smem:[#allocation3 + $0x37]] }
 0x1c6   : > { %v446_v17 = vadd.f32 %v445_v12, %v417_v15 }
 0x1cb   : > { %v3420_v19 = vld [vmem:[#allocation2 + $0x1] sm:$0xff]  ;;  %v397_v43 = vpop.permute.xlu0 %396 }
 0x1cc   : > { %v469_v22 = vmul.f32 %v468_v18, %v3420_v19  ;;  %v3428_v25 = vld [vmem:[#allocation2 + $0x2] sm:$0xff]  ;;  %v529_v36 = vmul.f32 %v528_v33, %v3420_v19  ;;  %415 = vst.msk [vmem:[#allocation2 + $0x38] sm:$0x3] %vm408_vm5, %v397_v43  ;;  %v589_v49 = vmul.f32 %v588_v46, %v3420_v19  ;;  %v649_v63 = vmul.f32 %v648_v60, %v3420_v19 }
 0x1cd   : > { %819 = vrot.lane.b32.xlu2 %v817_v20, %s3183_s28  ;;  %811 = vrot.lane.b32.xlu1 %v809_v21, %s3185_s23  ;;  %v497_v29 = vmul.f32 %v496_v26, %v3428_v25  ;;  %v557_v42 = vmul.f32 %v556_v39, %v3428_v25  ;;  %v617_v56 = vmul.f32 %v616_v53, %v3428_v25  ;;  %v504_v21 = vstv %s3479_s26  ;;  %s3550_s26 = sld [smem:[#allocation7 + $0x3]] }
 0x1ce   : > { %471 = vrot.lane.b32.xlu0 %v469_v22, %s3185_s23  ;;  %v677_v6 = vmul.f32 %v676_v3, %v3428_v25  ;;  %v709_v16 = vmul.f32 %v708_v11, %v3420_v19  ;;  %v464_v22 = vstv %s3483_s8  ;;  %v1352_v26 = vstv %s2678_s15  ;;  %s3557_s8 = sld [smem:[#allocation3 + $0x90]] }
 0x1cf   : > { %v465_v31 = vmul.f32 %v464_v22, %v3420_v19  ;;  %v1353_v33 = vmul.f32 %v1352_v26, %v3436_v30  ;;  %v564_v39 = vstv %s3495_s10  ;;  %v1424_v43 = vstv %s3498_s11  ;;  %s3560_s15 = sld [smem:[#allocation3 + $0x5c]] }
 0x1d0   : > { %v769_v53 = vmul.f32 %v768_v45, %v3420_v19  ;;  %s3573_s10 = sld [smem:[#allocation3 + $0xdc]]  ;;  %v585_v2 = vmul.f32 %v584_v59, %v3420_v19 }
 0x1d1   : > { %s3581_s11 = sld [smem:[#allocation7 + $0x4]] }
 0x1d4   : > { %v684_v11 = vstv %s3557_s8  ;;  %s3635_s8 = sld [smem:[#allocation3 + $0x100]] }
 0x1d5   : > { %879 = vrot.lane.b32.xlu2 %v877_v27, %s3183_s28  ;;  %871 = vrot.lane.b32.xlu1 %v869_v28, %s3185_s23  ;;  %v736_v27 = vstv %s3485_s5  ;;  %s3566_s5 = sld [smem:[#allocation3 + $0x6f]] }
 0x1d6   : > { %499 = vrot.lane.b32.xlu0 %v497_v29, %s3183_s28  ;;  %v505_v29 = vmul.f32 %v504_v21, %v3388_v51 }
 0x1d7   : > { %v429_v24 = vstv %s3581_s11  ;;  %s3663_s11 = sld [smem:[#allocation3 + $0x29]] }
 0x1db   : > { %v644_v12 = vstv %s3566_s5  ;;  %s3650_s5 = sld [smem:[#allocation3 + $0x2b]] }
 0x1dc   : > { %v645_v21 = vmul.f32 %v644_v12, %v3420_v19 }
 0x1dd   : > { %943 = vrot.lane.b32.xlu2 %v941_v34, %s3183_s28  ;;  %935 = vrot.lane.b32.xlu1 %v933_v35, %s3185_s23  ;;  %v420_v34 = vstv %s3490_s29  ;;  %v737_v35 = vmul.f32 %v736_v27, %v3428_v25  ;;  %s3570_s29 = sld [smem:[#allocation3 + $0x5b]] }
 0x1de   : > { %531 = vrot.lane.b32.xlu0 %v529_v36, %s3185_s23  ;;  %v506_v37 = vadd.f32 %v505_v29, %v420_v34 }
 0x1e3   : > { %v1536_v15 = vstv %s3570_s29  ;;  %s3653_s29 = sld [smem:[#allocation3 + $0xfc]] }
 0x1e5   : > { %1003 = vrot.lane.b32.xlu2 %v1001_v40, %s3183_s28  ;;  %995 = vrot.lane.b32.xlu1 %v993_v41, %s3185_s23  ;;  %v524_v40 = vstv %s3504_s24  ;;  %v3535_v41 = vld [vmem:[#allocation2 + $0x20] sm:$0xff]  ;;  %s3588_s24 = sld [smem:[#allocation3 + $0x80]] }
 0x1e6   : > { %559 = vrot.lane.b32.xlu0 %v557_v42, %s3183_s28  ;;  %v1417_v50 = vmul.f32 %v1416_v44, %v3535_v41 }
 0x1eb   : > { %v1604_v34 = vstv %s3588_s24  ;;  %s3666_s24 = sld [smem:[#allocation3 + $0x104]] }
 0x1ed   : > { %1063 = vrot.lane.b32.xlu2 %v1061_v47, %s3183_s28  ;;  %1055 = vrot.lane.b32.xlu1 %v1053_v48, %s3185_s23  ;;  %v565_v47 = vmul.f32 %v564_v39, %v3388_v51  ;;  %v525_v48 = vmul.f32 %v524_v40, %v3420_v19 }
 0x1ee   : > { %591 = vrot.lane.b32.xlu0 %v589_v49, %s3185_s23  ;;  %v1425_v49 = vmul.f32 %v1424_v43, %v3535_v41 }
 0x1f5   : > { %1123 = vrot.lane.b32.xlu2 %v1121_v54, %s3183_s28  ;;  %1115 = vrot.lane.b32.xlu1 %v1113_v55, %s3185_s23  ;;  %v566_v55 = vadd.f32 %v565_v47, %v423_v52  ;;  %v488_v52 = vstv %s3619_s25  ;;  %s2576_s25 = sld [smem:[#allocation3 + $0x73]] }
 0x1f6   : > { %619 = vrot.lane.b32.xlu0 %v617_v56, %s3183_s28 }
 0x1f7   : > { %v460_v57 = vpop.permute.xlu2 %459 }
 0x1fd   : > { %1183 = vrot.lane.b32.xlu2 %v1181_v61, %s3183_s28  ;;  %1175 = vrot.lane.b32.xlu1 %v1173_v62, %s3185_s23  ;;  %v1484_v61 = vstv %s3527_s0  ;;  %v1476_v62 = vstv %s3539_s27  ;;  %s3612_s0 = sld [smem:[#allocation7 + $0x5]] }
 0x1fe   : > { %651 = vrot.lane.b32.xlu0 %v649_v63, %s3185_s23  ;;  %v796_v63 = vstv %s3542_s4  ;;  %v1485_v3 = vmul.f32 %v1484_v61, %v3535_v41  ;;  %s3622_s27 = sld [smem:[#allocation3 + $0xd8]] }
 0x1ff   : > { %v3469_v0 = vpop.permute.xlu2 %519  ;;  %s3628_s4 = sld [smem:[#allocation3 + $0xb7]] }
 0x203   : > { %v432_v44 = vstv %s3612_s0  ;;  %s2618_s0 = sld [smem:[#allocation3 + $0xd]] }
 0x205   : > { %1243 = vrot.lane.b32.xlu2 %v1241_v4, %s3183_s28  ;;  %1235 = vrot.lane.b32.xlu1 %v1233_v5, %s3185_s23  ;;  %v1477_v4 = vmul.f32 %v1476_v62, %v3535_v41  ;;  %v426_v5 = vstv %s3550_s26  ;;  %s3632_s26 = sld [smem:[#allocation3 + $0x5]] }
 0x206   : > { %679 = vrot.lane.b32.xlu0 %v677_v6, %s3183_s28  ;;  %v797_v6 = vmul.f32 %v796_v63, %v3428_v25 }
 0x207   : > { %v3481_v7 = vpop.permute.xlu2 %579 }
 0x20d   : > { %1303 = vrot.lane.b32.xlu2 %v1301_v13, %s3183_s28  ;;  %1295 = vrot.lane.b32.xlu1 %v1293_v14, %s3185_s23  ;;  %v1544_v14 = vstv %s3560_s15  ;;  %s3643_s15 = sld [smem:[#allocation7 + $0x6]] }
 0x20e   : > { %711 = vrot.lane.b32.xlu0 %v709_v16, %s3185_s23  ;;  %v828_v16 = vstv %s3573_s10  ;;  %v1545_v22 = vmul.f32 %v1544_v14, %v3535_v41  ;;  %s3659_s10 = sld [smem:[#allocation3 + $0xdb]] }
 0x20f   : > { %v452_v18 = vpop.permute.xlu1 %451  ;;  %v3500_v20 = vpop.permute.xlu2 %639  ;;  %v829_v26 = vmul.f32 %v828_v16, %v3420_v19 }
 0x210   : > { %v454_v23 = vadd.f32 %v452_v18, %v446_v17  ;;  %v685_v18 = vmul.f32 %v684_v11, %v3388_v51  ;;  %v916_v11 = vstv %s3666_s24  ;;  %s2601_s24 = sld [smem:[#allocation3 + $0xdd]] }
 0x212   : > { %v462_v28 = vadd.f32 %v460_v57, %v454_v23  ;;  %v1537_v23 = vmul.f32 %v1536_v15, %v3535_v41 }
 0x213   : > { %v435_v62 = vstv %s3643_s15  ;;  %s2627_s15 = sld [smem:[#allocation3 + $0x31]] }
 0x214   : > { %v3520_v36 = vadd.f32 %v465_v31, %v462_v28  ;;  %v744_v31 = vstv %s3591_s9  ;;  %s3674_s9 = sld [smem:[#allocation7 + $0x7]] }
 0x215   : > { %1363 = vrot.lane.b32.xlu2 %v1361_v32, %s3183_s28  ;;  %1355 = vrot.lane.b32.xlu1 %v1353_v33, %s3185_s23  ;;  %v704_v32 = vstv %s3597_s7  ;;  %v745_v39 = vmul.f32 %v744_v31, %v3388_v51  ;;  %s3682_s7 = sld [smem:[#allocation3 + $0x4f]]  ;;  %v3713_v31 = vld [vmem:[#allocation2 + $0x11] sm:$0xff] }
 0x216   : > { %739 = vrot.lane.b32.xlu0 %v737_v35, %s3183_s28  ;;  %v1596_v35 = vstv %s3601_s1  ;;  %v705_v40 = vmul.f32 %v704_v32, %v3420_v19  ;;  %s3688_s1 = sld [smem:[#allocation3 + $0xff]]  ;;  %v952_v32 = vstv %s2618_s0 }
 0x217   : > { %v512_v30 = vpop.permute.xlu1 %511  ;;  %v3529_v38 = vpop.permute.xlu2 %699  ;;  %v1597_v43 = vmul.f32 %v1596_v35, %v3535_v41  ;;  %s2621_s0 = sld [smem:[#allocation3 + $0x10]] }
 0x218   : > { %v514_v42 = vadd.f32 %v512_v30, %v506_v37  ;;  %v856_v37 = vstv %s3604_s12  ;;  %s2565_s12 = sld [smem:[#allocation3 + $0x4d]] }
 0x219   : > { %v857_v45 = vmul.f32 %v856_v37, %v3428_v25 }
 0x21a   : > { %v522_v46 = vadd.f32 %v3469_v0, %v514_v42  ;;  %v1605_v42 = vmul.f32 %v1604_v34, %v3535_v41 }
 0x21c   : > { %v3553_v54 = vadd.f32 %v525_v48, %v522_v46  ;;  %v804_v48 = vstv %s3622_s27  ;;  %s2574_s27 = sld [smem:[#allocation3 + $0x71]] }
 0x21d   : > { %1427 = vrot.lane.b32.xlu2 %v1425_v49, %s3183_s28  ;;  %1419 = vrot.lane.b32.xlu1 %v1417_v50, %s3185_s23  ;;  %v764_v49 = vstv %s3628_s4  ;;  %v805_v58 = vmul.f32 %v804_v48, %v3388_v51  ;;  %s2622_s4 = sld [smem:[#allocation3 + $0x11]] }
 0x21e   : > { %771 = vrot.lane.b32.xlu0 %v769_v53, %s3185_s23  ;;  %v476_v53 = vstv %s3632_s26  ;;  %v765_v59 = vmul.f32 %v764_v49, %v3420_v19  ;;  %s2585_s26 = sld [smem:[#allocation3 + $0x97]] }
 0x21f   : > { %v572_v56 = vpop.permute.xlu1 %571  ;;  %v3562_v57 = vpop.permute.xlu2 %759  ;;  %v477_v61 = vmul.f32 %v476_v53, %v3420_v19 }
 0x220   : > { %v574_v60 = vadd.f32 %v572_v56, %v566_v55  ;;  %v888_v55 = vstv %s3635_s8  ;;  %s2583_s8 = sld [smem:[#allocation3 + $0x95]] }
 0x221   : > { %v889_v63 = vmul.f32 %v888_v55, %v3420_v19 }
 0x222   : > { %v582_v0 = vadd.f32 %v3481_v7, %v574_v60  ;;  %v626_v7 = vadd.f32 %v625_v1, %v426_v5  ;;  %v489_v60 = vmul.f32 %v488_v52, %v3428_v25 }
 0x224   : > { %v3584_v8 = vadd.f32 %v585_v2, %v582_v0  ;;  %v728_v55 = vstv %s2585_s26  ;;  %s2628_s26 = sld [smem:[#allocation3 + $0x32]] }
 0x225   : > { %1487 = vrot.lane.b32.xlu2 %v1485_v3, %s3183_s28  ;;  %1479 = vrot.lane.b32.xlu1 %v1477_v4, %s3185_s23  ;;  %v864_v3 = vstv %s3653_s29  ;;  %v824_v4 = vstv %s3659_s10  ;;  %s2592_s29 = sld [smem:[#allocation3 + $0xb9]] }
 0x226   : > { %799 = vrot.lane.b32.xlu0 %v797_v6, %s3183_s28  ;;  %v825_v14 = vmul.f32 %v824_v4, %v3420_v19  ;;  %s2631_s10 = sld [smem:[#allocation3 + $0x35]] }
 0x227   : > { %v632_v9 = vpop.permute.xlu1 %631  ;;  %v3593_v10 = vpop.permute.xlu2 %819 }
 0x228   : > { %v634_v13 = vadd.f32 %v632_v9, %v626_v7  ;;  %v548_v7 = vstv %s3650_s5  ;;  %v536_v9 = vstv %s3663_s11  ;;  %s2594_s5 = sld [smem:[#allocation3 + $0xbb]] }
 0x229   : > { %v549_v15 = vmul.f32 %v548_v7, %v3428_v25  ;;  %v537_v16 = vmul.f32 %v536_v9, %v3420_v19  ;;  %s2603_s11 = sld [smem:[#allocation3 + $0xdf]] }
 0x22a   : > { %v642_v17 = vadd.f32 %v3500_v20, %v634_v13  ;;  %v686_v20 = vadd.f32 %v685_v18, %v429_v24  ;;  %v865_v13 = vmul.f32 %v864_v3, %v3388_v51  ;;  %v917_v18 = vmul.f32 %v916_v11, %v3428_v25 }
 0x22b   : > { %v776_v3 = vstv %s2592_s29  ;;  %s2654_s29 = sld [smem:[#allocation3 + $0x9d]] }
 0x22c   : > { %v3615_v27 = vadd.f32 %v645_v21, %v642_v17  ;;  %v438_v17 = vstv %s3674_s9  ;;  %v1040_v4 = vstv %s2631_s10  ;;  %s2636_s9 = sld [smem:[#allocation3 + $0x55]]  ;;  %v777_v7 = vmul.f32 %v776_v3, %v3420_v19 }
 0x22d   : > { %1547 = vrot.lane.b32.xlu2 %v1545_v22, %s3183_s28  ;;  %1539 = vrot.lane.b32.xlu1 %v1537_v23, %s3185_s23  ;;  %v884_v23 = vstv %s3688_s1  ;;  %s2610_s1 = sld [smem:[#allocation3 + $0x101]] }
 0x22e   : > { %831 = vrot.lane.b32.xlu0 %v829_v26, %s3185_s23  ;;  %v885_v34 = vmul.f32 %v884_v23, %v3420_v19  ;;  %s2648_s10 = sld [smem:[#allocation3 + $0x7c]] }
 0x22f   : > { %v692_v28 = vpop.permute.xlu1 %691  ;;  %v3624_v29 = vpop.permute.xlu2 %879 }
 0x230   : > { %v694_v33 = vadd.f32 %v692_v28, %v686_v20  ;;  %v608_v20 = vstv %s3682_s7  ;;  %v596_v28 = vstv %s2565_s12  ;;  %s2612_s7 = sld [smem:[#allocation3 + $0x103]] }
 0x231   : > { %v609_v35 = vmul.f32 %v608_v20, %v3428_v25  ;;  %v597_v37 = vmul.f32 %v596_v28, %v3420_v19  ;;  %s2640_s12 = sld [smem:[#allocation3 + $0x59]] }
 0x232   : > { %v702_v30 = vadd.f32 %v3529_v38, %v694_v33  ;;  %v746_v38 = vadd.f32 %v745_v39, %v432_v44  ;;  %v656_v44 = vstv %s2574_s27  ;;  %s2645_s27 = sld [smem:[#allocation3 + $0x79]] }
 0x233   : > { %v657_v48 = vmul.f32 %v656_v44, %v3420_v19  ;;  %v896_v28 = vstv %s2610_s1  ;;  %v972_v44 = vstv %s2621_s0  ;;  %s2663_s1 = sld [smem:[#allocation3 + $0xc1]] }
 0x234   : > { %v3646_v46 = vadd.f32 %v705_v40, %v702_v30  ;;  %v953_v30 = vmul.f32 %v952_v32, %v3713_v31  ;;  %s2664_s0 = sld [smem:[#allocation3 + $0xc2]] }
 0x235   : > { %1607 = vrot.lane.b32.xlu2 %v1605_v42, %s3183_s28  ;;  %1599 = vrot.lane.b32.xlu1 %v1597_v43, %s3185_s23  ;;  %v668_v43 = vstv %s2576_s25  ;;  %s2619_s25 = sld [smem:[#allocation3 + $0xe]] }
 0x236   : > { %859 = vrot.lane.b32.xlu0 %v857_v45, %s3183_s28  ;;  %v3731_v45 = vld [vmem:[#allocation2 + $0x12] sm:$0xff]  ;;  %v908_v20 = vstv %s2612_s7  ;;  %s2655_s7 = sld [smem:[#allocation3 + $0x9e]] }
 0x237   : > { %v752_v41 = vpop.permute.xlu1 %751  ;;  %v3655_v47 = vpop.permute.xlu2 %943  ;;  %v1041_v9 = vmul.f32 %v1040_v4, %v3731_v45  ;;  %v1100_v32 = vstv %s2640_s12  ;;  %s2666_s12 = sld [smem:[#allocation3 + $0xc4]] }
 0x238   : > { %v754_v50 = vadd.f32 %v752_v41, %v746_v38  ;;  %v980_v38 = vstv %s2622_s4  ;;  %v669_v41 = vmul.f32 %v668_v43, %v3428_v25  ;;  %s2630_s4 = sld [smem:[#allocation3 + $0x34]] }
 0x239   : > { %v981_v49 = vmul.f32 %v980_v38, %v3731_v45 }
 0x23a   : > { %v762_v56 = vadd.f32 %v3562_v57, %v754_v50  ;;  %v806_v57 = vadd.f32 %v805_v58, %v435_v62  ;;  %v1012_v58 = vstv %s2627_s15  ;;  %s2639_s15 = sld [smem:[#allocation3 + $0x58]] }
 0x23b   : > { %v960_v38 = vstv %s2619_s25  ;;  %s2667_s25 = sld [smem:[#allocation3 + $0xc5]] }
 0x23c   : > { %v3677_v0 = vadd.f32 %v765_v59, %v762_v56  ;;  %v716_v56 = vstv %s2583_s8  ;;  %v729_v59 = vmul.f32 %v728_v55, %v3428_v25  ;;  %s2649_s8 = sld [smem:[#allocation3 + $0x7d]] }
 0x23d   : > { %491 = vrot.lane.b32.xlu2 %v489_v60, %s3185_s23  ;;  %479 = vrot.lane.b32.xlu1 %v477_v61, %s3183_s28  ;;  %v717_v60 = vmul.f32 %v716_v56, %v3420_v19  ;;  %v1013_v61 = vmul.f32 %v1012_v58, %v3713_v31 }
 0x23e   : > { %891 = vrot.lane.b32.xlu0 %v889_v63, %s3185_s23 }
 0x23f   : > { %v812_v1 = vpop.permute.xlu1 %811  ;;  %v3684_v2 = vpop.permute.xlu2 %1003 }
 0x240   : > { %v3690_v5 = vpop.permute.xlu0 %471  ;;  %v814_v6 = vadd.f32 %v812_v1, %v806_v57  ;;  %v788_v1 = vstv %s2594_s5  ;;  %s2637_s5 = sld [smem:[#allocation3 + $0x56]] }
 0x242   : > { %v822_v12 = vadd.f32 %v3593_v10, %v814_v6  ;;  %v866_v10 = vadd.f32 %v865_v13, %v438_v17  ;;  %v789_v6 = vmul.f32 %v788_v1, %v3428_v25 }
 0x244   : > { %v3702_v21 = vadd.f32 %v825_v14, %v822_v12  ;;  %v848_v14 = vstv %s2603_s11  ;;  %s2646_s11 = sld [smem:[#allocation3 + $0x7a]] }
 0x245   : > { %551 = vrot.lane.b32.xlu2 %v549_v15, %s3185_s23  ;;  %539 = vrot.lane.b32.xlu1 %v537_v16, %s3183_s28  ;;  %v836_v15 = vstv %s2601_s24  ;;  %v1072_v16 = vstv %s2636_s9  ;;  %v849_v17 = vmul.f32 %v848_v14, %v3428_v25  ;;  %s2658_s24 = sld [smem:[#allocation3 + $0xa1]] }
 0x246   : > { %919 = vrot.lane.b32.xlu0 %v917_v18, %s3183_s28  ;;  %v837_v18 = vmul.f32 %v836_v15, %v3420_v19  ;;  %v1092_v14 = vstv %s2639_s15  ;;  %v1080_v15 = vstv %s2637_s5  ;;  %s2657_s9 = sld [smem:[#allocation3 + $0xa0]] }
 0x247   : > { %v872_v51 = vpop.permute.xlu1 %871  ;;  %v3707_v22 = vpop.permute.xlu2 %1063  ;;  %s2684_s15 = sld [smem:[#allocation3 + $0x10c]] }
 0x248   : > { %v3710_v24 = vpop.permute.xlu0 %499  ;;  %v874_v26 = vadd.f32 %v872_v51, %v866_v10  ;;  %v1073_v10 = vmul.f32 %v1072_v16, %v3713_v31  ;;  %v1192_v16 = vstv %s2654_s29  ;;  %s2682_s5 = sld [smem:[#allocation3 + $0x10a]] }
 0x249   : > { %s2676_s29 = sld [smem:[#allocation3 + $0xe9]] }
 0x24a   : > { %v882_v33 = vadd.f32 %v3624_v29, %v874_v26 }
 0x24c   : > { %v3720_v39 = vadd.f32 %v885_v34, %v882_v33  ;;  %v909_v33 = vmul.f32 %v908_v20, %v3428_v25  ;;  %v897_v34 = vmul.f32 %v896_v28, %v3420_v19  ;;  %v973_v19 = vmul.f32 %v972_v44, %v3731_v45 }
 0x24d   : > { %611 = vrot.lane.b32.xlu2 %v609_v35, %s3185_s23  ;;  %599 = vrot.lane.b32.xlu1 %v597_v37, %s3183_s28  ;;  %v1101_v35 = vmul.f32 %v1100_v32, %v3731_v45 }
 0x24e   : > { %955 = vrot.lane.b32.xlu0 %v953_v30, %s3185_s23 }
 0x24f   : > { %v3725_v40 = vpop.permute.xlu1 %935  ;;  %v3727_v42 = vpop.permute.xlu2 %1123 }
 0x250   : > { %v3729_v29 = vpop.permute.xlu0 %531 }
 0x255   : > { %671 = vrot.lane.b32.xlu2 %v669_v41, %s3185_s23  ;;  %659 = vrot.lane.b32.xlu1 %v657_v48, %s3183_s28  ;;  %v1132_v41 = vstv %s2645_s27  ;;  %v961_v48 = vmul.f32 %v960_v38, %v3713_v31  ;;  %s2675_s27 = sld [smem:[#allocation3 + $0xe8]] }
 0x256   : > { %983 = vrot.lane.b32.xlu0 %v981_v49, %s3183_s28  ;;  %v1133_v49 = vmul.f32 %v1132_v41, %v3713_v31 }
 0x257   : > { %v3739_v50 = vpop.permute.xlu1 %995  ;;  %v3741_v52 = vpop.permute.xlu2 %1183 }
 0x258   : > { %v3743_v53 = vpop.permute.xlu0 %559 }
 0x25d   : > { %731 = vrot.lane.b32.xlu2 %v729_v59, %s3185_s23  ;;  %719 = vrot.lane.b32.xlu1 %v717_v60, %s3183_s28  ;;  %v1032_v59 = vstv %s2630_s4  ;;  %v1020_v60 = vstv %s2628_s26  ;;  %s2673_s4 = sld [smem:[#allocation3 + $0xe6]] }
 0x25e   : > { %1015 = vrot.lane.b32.xlu0 %v1013_v61, %s3185_s23  ;;  %v1160_v61 = vstv %s2649_s8  ;;  %v1033_v1 = vmul.f32 %v1032_v59, %v3731_v45  ;;  %v1021_v3 = vmul.f32 %v1020_v60, %v3713_v31  ;;  %v1212_v59 = vstv %s2657_s9  ;;  %s2672_s26 = sld [smem:[#allocation3 + $0xe5]] }
 0x25f   : > { %v3751_v62 = vpop.permute.xlu1 %1055  ;;  %v3753_v63 = vpop.permute.xlu2 %1243  ;;  %v1161_v4 = vmul.f32 %v1160_v61, %v3731_v45  ;;  %v1200_v60 = vstv %s2655_s7  ;;  %v1252_v61 = vstv %s2663_s1  ;;  %s2548_s8 = sld [smem:[#allocation3 + $0x6]] }
 0x260   : > { %v3755_v57 = vpop.permute.xlu0 %591  ;;  %s3881_s9 = sld [smem:[#allocation3 + $0x17]] }
 0x261   : > { %s3886_s7 = sld [smem:[#allocation3 + $0x109]] }
 0x262   : > { %s3888_s1 = sld [smem:[#allocation3 + $0xc]] }
 0x265   : > { %791 = vrot.lane.b32.xlu2 %v789_v6, %s3185_s23  ;;  %779 = vrot.lane.b32.xlu1 %v777_v7, %s3183_s28 }
 0x266   : > { %1043 = vrot.lane.b32.xlu0 %v1041_v9, %s3183_s28 }
 0x267   : > { %v3763_v11 = vpop.permute.xlu1 %1115  ;;  %v3765_v12 = vpop.permute.xlu2 %1303 }
 0x268   : > { %v3767_v13 = vpop.permute.xlu0 %619 }
 0x26d   : > { %851 = vrot.lane.b32.xlu2 %v849_v17, %s3185_s23  ;;  %839 = vrot.lane.b32.xlu1 %v837_v18, %s3183_s28  ;;  %v1093_v17 = vmul.f32 %v1092_v14, %v3731_v45  ;;  %v1081_v18 = vmul.f32 %v1080_v15, %v3713_v31 }
 0x26e   : > { %1075 = vrot.lane.b32.xlu0 %v1073_v10, %s3185_s23  ;;  %v1193_v10 = vmul.f32 %v1192_v16, %v3713_v31 }
 0x26f   : > { %v3775_v51 = vpop.permute.xlu1 %1175  ;;  %v3777_v23 = vpop.permute.xlu2 %1363 }
 0x270   : > { %v3779_v26 = vpop.permute.xlu0 %651 }
 0x275   : > { %911 = vrot.lane.b32.xlu2 %v909_v33, %s3185_s23  ;;  %899 = vrot.lane.b32.xlu1 %v897_v34, %s3183_s28  ;;  %v1152_v33 = vstv %s2648_s10  ;;  %v1140_v34 = vstv %s2646_s11  ;;  %s3867_s10 = sld [smem:[#allocation3 + $0x9]] }
 0x276   : > { %1103 = vrot.lane.b32.xlu0 %v1101_v35, %s3183_s28  ;;  %v1220_v35 = vstv %s2658_s24  ;;  %v1153_v44 = vmul.f32 %v1152_v33, %v3731_v45  ;;  %v1141_v38 = vmul.f32 %v1140_v34, %v3713_v31  ;;  %s3872_s11 = sld [smem:[#allocation3 + $0x2a]] }
 0x277   : > { %v3787_v37 = vpop.permute.xlu1 %1235  ;;  %v3789_v30 = vpop.permute.xlu2 %1427  ;;  %v1221_v41 = vmul.f32 %v1220_v35, %v3731_v45  ;;  %s3877_s24 = sld [smem:[#allocation3 + $0x19]] }
 0x278   : > { %v3791_v43 = vpop.permute.xlu0 %679 }
 0x27d   : > { %975 = vrot.lane.b32.xlu2 %v973_v19, %s3185_s23  ;;  %963 = vrot.lane.b32.xlu1 %v961_v48, %s3183_s28 }
 0x27e   : > { %1135 = vrot.lane.b32.xlu0 %v1133_v49, %s3185_s23 }
 0x27f   : > { %v3799_v55 = vpop.permute.xlu1 %1295  ;;  %v3801_v56 = vpop.permute.xlu2 %1487 }
 0x280   : > { %4984 = vst [vmem:[#allocation20_spill] sm:$0xff] %v3801_v56  ;;  %v3803_v58 = vpop.permute.xlu0 %711 }
 0x285   : > { %1035 = vrot.lane.b32.xlu2 %v1033_v1, %s3185_s23  ;;  %1023 = vrot.lane.b32.xlu1 %v1021_v3, %s3183_s28  ;;  %v1213_v1 = vmul.f32 %v1212_v59, %v3731_v45  ;;  %v1201_v3 = vmul.f32 %v1200_v60, %v3713_v31  ;;  %v1332_v59 = vstv %s2675_s27  ;;  %v1320_v60 = vstv %s2673_s4  ;;  %s3914_s27 = sld [smem:[#allocation3 + $0x3b]] }
 0x286   : > { %1163 = vrot.lane.b32.xlu0 %v1161_v4, %s3183_s28  ;;  %v1253_v4 = vmul.f32 %v1252_v61, %v3713_v31  ;;  %v1312_v61 = vstv %s2672_s26  ;;  %s3926_s4 = sld [smem:[#allocation3 + $0x10d]] }
 0x287   : > { %v3811_v6 = vpop.permute.xlu1 %1355  ;;  %v3813_v7 = vpop.permute.xlu2 %1547  ;;  %s3930_s26 = sld [smem:[#allocation3 + $0x30]] }
 0x288   : > { %4985 = vst [vmem:[#allocation21_spill] sm:$0xff] %v3813_v7  ;;  %v3815_v9 = vpop.permute.xlu0 %739 }
 0x28d   : > { %1095 = vrot.lane.b32.xlu2 %v1093_v17, %s3185_s23  ;;  %1083 = vrot.lane.b32.xlu1 %v1081_v18, %s3183_s28  ;;  %v1272_v17 = vstv %s2666_s12  ;;  %v1260_v18 = vstv %s2664_s0  ;;  %s3893_s12 = sld [smem:[#allocation3 + $0x2d]] }
 0x28e   : > { %1195 = vrot.lane.b32.xlu0 %v1193_v10, %s3185_s23  ;;  %v1280_v10 = vstv %s2667_s25  ;;  %v1273_v33 = vmul.f32 %v1272_v17, %v3731_v45  ;;  %v1261_v34 = vmul.f32 %v1260_v18, %v3713_v31  ;;  %v484_v17 = vstv %s2548_s8  ;;  %s3900_s0 = sld [smem:[#allocation3 + $0x4e]] }
 0x28f   : > { %v3823_v20 = vpop.permute.xlu1 %1419  ;;  %v3825_v28 = vpop.permute.xlu2 %1607  ;;  %v1281_v35 = vmul.f32 %v1280_v10, %v3731_v45  ;;  %v474_v18 = vadd.f32 %v3690_v5, %v3520_v36  ;;  %v1340_v36 = vstv %s2676_s29  ;;  %s3909_s25 = sld [smem:[#allocation3 + $0x3d]] }
 0x290   : > { %4986 = vst [vmem:[#allocation22_spill] sm:$0xff] %v3825_v28  ;;  %v3827_v32 = vpop.permute.xlu0 %771  ;;  %v948_v28 = vstv %s3888_s1  ;;  %s3936_s8 = sld [smem:[#allocation3 + $0x51]] }
 0x291   : > { %s3957_s29 = sld [smem:[#allocation3 + $0x5f]] }
 0x292   : > { %s3998_s1 = sld [smem:[#allocation3 + $0x1a]] }
 0x295   : > { %1155 = vrot.lane.b32.xlu2 %v1153_v44, %s3185_s23  ;;  %1143 = vrot.lane.b32.xlu1 %v1141_v38, %s3183_s28 }
 0x296   : > { %1223 = vrot.lane.b32.xlu0 %v1221_v41, %s3183_s28 }
 0x297   : > { %v3835_v19 = vpop.permute.xlu1 %1479  ;;  %v3837_v48 = vpop.permute.xlu2 %491 }
 0x298   : > { %4987 = vst [vmem:[#allocation23_spill] sm:$0xff] %v3835_v19  ;;  %v3839_v49 = vpop.permute.xlu0 %799  ;;  %v988_v19 = vstv %s3893_s12  ;;  %s4002_s12 = sld [smem:[#allocation3 + $0x75]] }
 0x29d   : > { %1215 = vrot.lane.b32.xlu2 %v1213_v1, %s3185_s23  ;;  %1203 = vrot.lane.b32.xlu1 %v1201_v3, %s3183_s28  ;;  %v1333_v1 = vmul.f32 %v1332_v59, %v3731_v45  ;;  %v1321_v3 = vmul.f32 %v1320_v60, %v3713_v31  ;;  %v1392_v60 = vstv %s2684_s15  ;;  %s3945_s15 = sld [smem:[#allocation3 + $0x72]] }
 0x29e   : > { %1255 = vrot.lane.b32.xlu0 %v1253_v4, %s3185_s23  ;;  %v1313_v4 = vmul.f32 %v1312_v61, %v3713_v31  ;;  %v1380_v61 = vstv %s2682_s5  ;;  %s3951_s5 = sld [smem:[#allocation3 + $0x61]] }
 0x29f   : > { %v3847_v14 = vpop.permute.xlu1 %1539  ;;  %v3849_v15 = vpop.permute.xlu2 %551 }
 0x2a0   : > { %4988 = vst [vmem:[#allocation24_spill] sm:$0xff] %v3847_v14  ;;  %v3851_v16 = vpop.permute.xlu0 %831 }
 0x2a5   : > { %1275 = vrot.lane.b32.xlu2 %v1273_v33, %s3185_s23  ;;  %1263 = vrot.lane.b32.xlu1 %v1261_v34, %s3183_s28 }
 0x2a6   : > { %1283 = vrot.lane.b32.xlu0 %v1281_v35, %s3183_s28  ;;  %v485_v35 = vmul.f32 %v484_v17, %v3428_v25  ;;  %v1341_v17 = vmul.f32 %v1340_v36, %v3731_v45  ;;  %v1456_v36 = vstv %s3877_s24  ;;  %s3980_s24 = sld [smem:[#allocation3 + $0x96]] }
 0x2a7   : > { %v3859_v44 = vpop.permute.xlu1 %1599  ;;  %v3861_v38 = vpop.permute.xlu2 %611 }
 0x2a8   : > { %4989 = vst [vmem:[#allocation25_spill] sm:$0xff] %v3859_v44  ;;  %v3863_v41 = vpop.permute.xlu0 %859 }
 0x2ad   : > { %1335 = vrot.lane.b32.xlu2 %v1333_v1, %s3185_s23  ;;  %1323 = vrot.lane.b32.xlu1 %v1321_v3, %s3183_s28  ;;  %v1393_v1 = vmul.f32 %v1392_v60, %v3731_v45  ;;  %v1381_v3 = vmul.f32 %v1380_v61, %v3713_v31 }
 0x2ae   : > { %1315 = vrot.lane.b32.xlu0 %v1313_v4, %s3185_s23  ;;  %v928_v4 = vstv %s3867_s10  ;;  %s3961_s10 = sld [smem:[#allocation3 + $0x16]] }
 0x2af   : > { %v480_v10 = vpop.permute.xlu1 %479  ;;  %v3879_v33 = vpop.permute.xlu2 %671 }
 0x2b0   : > { %v3883_v34 = vpop.permute.xlu0 %891  ;;  %v482_v59 = vadd.f32 %v480_v10, %v474_v18  ;;  %v544_v18 = vstv %s3872_s11  ;;  %v534_v10 = vadd.f32 %v3729_v29, %v3553_v54  ;;  %v3916_v54 = vld [vmem:[#allocation2 + $0x21] sm:$0xff]  ;;  %s3967_s11 = sld [smem:[#allocation3 + $0x54]] }
 0x2b2   : > { %v486_v5 = vadd.f32 %v485_v35, %v482_v59  ;;  %v3906_v59 = vld [vmem:[#allocation2 + $0x10] sm:$0xff] }
 0x2b4   : > { %v494_v25 = vadd.f32 %v3837_v48, %v486_v5  ;;  %v929_v48 = vmul.f32 %v3906_v59, %v928_v4  ;;  %v3922_v5 = vld [vmem:[#allocation2 + $0x2] sm:$0xff]  ;;  %v1444_v4 = vstv %s3881_s9  ;;  %s3986_s9 = sld [smem:[#allocation3 + $0x85]] }
 0x2b5   : > { %1395 = vrot.lane.b32.xlu2 %v1393_v1, %s3185_s23  ;;  %1383 = vrot.lane.b32.xlu1 %v1381_v3, %s3183_s28  ;;  %v545_v1 = vmul.f32 %v3922_v5, %v544_v18  ;;  %v1445_v56 = vmul.f32 %v1444_v4, %v3916_v54 }
 0x2b6   : > { %v502_v35 = vadd.f32 %v3710_v24, %v494_v25  ;;  %1343 = vrot.lane.b32.xlu0 %v1341_v17, %s3183_s28  ;;  %v3918_v24 = vld [vmem:[#allocation2 + $0x22] sm:$0xff]  ;;  %v1372_v17 = vstv %s3886_s7  ;;  %s3992_s7 = sld [smem:[#allocation3 + $0x83]] }
 0x2b7   : > { %v540_v60 = vpop.permute.xlu1 %539  ;;  %v3911_v61 = vpop.permute.xlu2 %731  ;;  %v1457_v14 = vmul.f32 %v1456_v36, %v3918_v24 }
 0x2b8   : > { %v3920_v29 = vpop.permute.xlu0 %919  ;;  %v542_v3 = vadd.f32 %v540_v60, %v534_v10  ;;  %v930_v25 = vadd.f32 %v929_v48, %v502_v35  ;;  %v1373_v10 = vmul.f32 %v1372_v17, %v3713_v31  ;;  %v949_v48 = vmul.f32 %v948_v28, %v3713_v31 }
 0x2b9   : > { %v594_v60 = vadd.f32 %v3755_v57, %v3584_v8 }
 0x2ba   : > { %v546_v44 = vadd.f32 %v545_v1, %v542_v3  ;;  %v938_v7 = vadd.f32 %v3725_v40, %v930_v25  ;;  %v604_v40 = vstv %s3900_s0  ;;  %v1400_v3 = vstv %s3926_s4  ;;  %s4014_s0 = sld [smem:[#allocation3 + $0xba]] }
 0x2bb   : > { %v605_v8 = vmul.f32 %v3922_v5, %v604_v40  ;;  %s4030_s4 = sld [smem:[#allocation3 + $0xa3]] }
 0x2bc   : > { %v554_v18 = vadd.f32 %v3849_v15, %v546_v44  ;;  %v946_v35 = vadd.f32 %v3655_v47, %v938_v7  ;;  %v989_v7 = vmul.f32 %v3906_v59, %v988_v19  ;;  %v1504_v44 = vstv %s3914_s27  ;;  %s4025_s27 = sld [smem:[#allocation3 + $0x78]] }
 0x2bd   : > { %1459 = vrot.lane.b32.xlu2 %v1457_v14, %s3185_s23  ;;  %1447 = vrot.lane.b32.xlu1 %v1445_v56, %s3183_s28  ;;  %v1516_v14 = vstv %s3909_s25  ;;  %v1008_v19 = vstv %s3930_s26  ;;  %s4019_s25 = sld [smem:[#allocation3 + $0xa4]] }
 0x2be   : > { %v562_v15 = vadd.f32 %v3743_v53, %v554_v18  ;;  %1375 = vrot.lane.b32.xlu0 %v1373_v10, %s3185_s23  ;;  %v950_v47 = vadd.f32 %v949_v48, %v946_v35  ;;  %v1517_v17 = vmul.f32 %v1516_v14, %v3918_v24  ;;  %v1505_v18 = vmul.f32 %v1504_v44, %v3916_v54  ;;  %s4035_s26 = sld [smem:[#allocation3 + $0x3a]] }
 0x2bf   : > { %v600_v28 = vpop.permute.xlu1 %599  ;;  %v3954_v56 = vpop.permute.xlu2 %791  ;;  %v1048_v10 = vstv %s3936_s8  ;;  %v1401_v48 = vmul.f32 %v1400_v3, %v3731_v45  ;;  %v1009_v40 = vmul.f32 %v1008_v19, %v3713_v31  ;;  %v1576_v14 = vstv %s3951_s5  ;;  %s4047_s8 = sld [smem:[#allocation3 + $0xde]] }
 0x2c0   : > { %v602_v57 = vadd.f32 %v600_v28, %v594_v60  ;;  %v956_v53 = vpop.permute.xlu0 %955  ;;  %v990_v36 = vadd.f32 %v989_v7, %v562_v15  ;;  %v654_v15 = vadd.f32 %v3779_v26, %v3615_v27  ;;  %v1068_v44 = vstv %s3967_s11  ;;  %s4057_s5 = sld [smem:[#allocation3 + $0xa7]] }
 0x2c1   : > { %v3963_v1 = vadd.f32 %v956_v53, %v950_v47  ;;  %v1436_v53 = vstv %s3961_s10  ;;  %v1577_v19 = vmul.f32 %v1576_v14, %v3918_v24  ;;  %s4068_s10 = sld [smem:[#allocation3 + $0x99]] }
 0x2c2   : > { %v606_v4 = vadd.f32 %v605_v8, %v602_v57  ;;  %v998_v25 = vadd.f32 %v3739_v50, %v990_v36  ;;  %v664_v50 = vstv %s3945_s15  ;;  %s4052_s15 = sld [smem:[#allocation3 + $0xa9]] }
 0x2c3   : > { %v665_v8 = vmul.f32 %v3922_v5, %v664_v50  ;;  %s4085_s11 = sld [smem:[#allocation3 + $0x102]] }
 0x2c4   : > { %v614_v35 = vadd.f32 %v3861_v38, %v606_v4  ;;  %v1006_v60 = vadd.f32 %v3684_v2, %v998_v25  ;;  %v1049_v2 = vmul.f32 %v3906_v59, %v1048_v10 }
 0x2c5   : > { %1519 = vrot.lane.b32.xlu2 %v1517_v17, %s3185_s23  ;;  %1507 = vrot.lane.b32.xlu1 %v1505_v18, %s3183_s28  ;;  %v1437_v17 = vmul.f32 %v1436_v53, %v3916_v54  ;;  %v1069_v18 = vmul.f32 %v1068_v44, %v3713_v31  ;;  %v784_v53 = vstv %s4014_s0  ;;  %s4124_s0 = sld [smem:[#allocation3 + $0xcd]] }
 0x2c6   : > { %v622_v38 = vadd.f32 %v3767_v13, %v614_v35  ;;  %1403 = vrot.lane.b32.xlu0 %v1401_v48, %s3183_s28  ;;  %v1010_v47 = vadd.f32 %v1009_v40, %v1006_v60  ;;  %v1564_v13 = vstv %s3957_s29  ;;  %v724_v35 = vstv %s3980_s24  ;;  %s4064_s29 = sld [smem:[#allocation3 + $0x3e]] }
 0x2c7   : > { %v660_v7 = vpop.permute.xlu1 %659  ;;  %v3989_v28 = vpop.permute.xlu2 %851  ;;  %v1565_v4 = vmul.f32 %v1564_v13, %v3916_v54  ;;  %v725_v40 = vmul.f32 %v3922_v5, %v724_v35  ;;  %s4090_s24 = sld [smem:[#allocation3 + $0xc8]] }
 0x2c8   : > { %v662_v27 = vadd.f32 %v660_v7, %v654_v15  ;;  %v3995_v26 = vpop.permute.xlu0 %983  ;;  %v1050_v57 = vadd.f32 %v1049_v2, %v622_v38  ;;  %v1636_v15 = vstv %s3986_s9  ;;  %v1624_v38 = vstv %s3992_s7  ;;  %s4094_s9 = sld [smem:[#allocation3 + $0x9c]] }
 0x2c9   : > { %v1108_v2 = vstv %s4002_s12  ;;  %s4099_s7 = sld [smem:[#allocation3 + $0xc7]] }
 0x2ca   : > { %v666_v36 = vadd.f32 %v665_v8, %v662_v27  ;;  %v1058_v3 = vadd.f32 %v3751_v62, %v1050_v57  ;;  %v714_v62 = vadd.f32 %v3803_v58, %v3646_v46  ;;  %v1464_v58 = vstv %s3998_s1  ;;  %s4105_s1 = sld [smem:[#allocation3 + $0x5e]] }
 0x2cb   : > { %v1637_v8 = vmul.f32 %v1636_v15, %v3918_v24  ;;  %v1625_v27 = vmul.f32 %v1624_v38, %v3916_v54  ;;  %v1465_v57 = vmul.f32 %v1464_v58, %v3918_v24  ;;  %v834_v38 = vadd.f32 %v3851_v16, %v3702_v21  ;;  %s4115_s12 = sld [smem:[#allocation3 + $0xf]] }
 0x2cc   : > { %v674_v25 = vadd.f32 %v3879_v33, %v666_v36  ;;  %v1066_v10 = vadd.f32 %v3707_v22, %v1058_v3  ;;  %v1664_v3 = vstv %s4019_s25  ;;  %v1524_v16 = vstv %s4064_s29  ;;  %s4130_s25 = sld [smem:[#allocation3 + $0xbd]] }
 0x2cd   : > { %1579 = vrot.lane.b32.xlu2 %v1577_v19, %s3185_s23  ;;  %1567 = vrot.lane.b32.xlu1 %v1565_v4, %s3183_s28  ;;  %v1128_v19 = vstv %s4025_s27  ;;  %v785_v4 = vmul.f32 %v3922_v5, %v784_v53  ;;  %s4136_s27 = sld [smem:[#allocation3 + $0xcb]] }
 0x2ce   : > { %1439 = vrot.lane.b32.xlu0 %v1437_v17, %s3185_s23  ;;  %v4021_v33 = vadd.f32 %v1069_v18, %v1066_v10  ;;  %v682_v7 = vadd.f32 %v3791_v43, %v674_v25  ;;  %v774_v43 = vadd.f32 %v3827_v32, %v3677_v0  ;;  %v1656_v18 = vstv %s4030_s4  ;;  %s4140_s4 = sld [smem:[#allocation3 + $0x62]] }
 0x2cf   : > { %v720_v22 = vpop.permute.xlu1 %719  ;;  %v4023_v48 = vpop.permute.xlu2 %911  ;;  %v1496_v32 = vstv %s4035_s26  ;;  %v1129_v35 = vmul.f32 %v1128_v19, %v3713_v31  ;;  %s4149_s26 = sld [smem:[#allocation3 + $0x33]] }
 0x2d0   : > { %v722_v60 = vadd.f32 %v720_v22, %v714_v62  ;;  %v1016_v50 = vpop.permute.xlu0 %1015  ;;  %v4072_v22 = vld [vmem:[#allocation2 + $0x20] sm:$0xff]  ;;  %s4178_s29 = sld [smem:[#allocation3 + $0x82]] }
 0x2d1   : > { %v4032_v46 = vadd.f32 %v1016_v50, %v1010_v47  ;;  %v1109_v47 = vmul.f32 %v3906_v59, %v1108_v2 }
 0x2d2   : > { %v726_v14 = vadd.f32 %v725_v40, %v722_v60  ;;  %v1665_v40 = vmul.f32 %v4072_v22, %v1664_v3  ;;  %v1657_v60 = vmul.f32 %v4072_v22, %v1656_v18  ;;  %v1525_v3 = vmul.f32 %v1524_v16, %v3918_v24 }
 0x2d3   : > { %v1188_v18 = vstv %s4094_s9  ;;  %s4204_s9 = sld [smem:[#allocation3 + $0xef]] }
 0x2d4   : > { %v734_v13 = vadd.f32 %v3911_v61, %v726_v14  ;;  %v1110_v61 = vadd.f32 %v1109_v47, %v682_v7 }
 0x2d5   : > { %1639 = vrot.lane.b32.xlu2 %v1637_v8, %s3185_s23  ;;  %1627 = vrot.lane.b32.xlu1 %v1625_v27, %s3183_s28  ;;  %v1696_v8 = vstv %s4052_s15  ;;  %v1684_v27 = vstv %s4057_s5  ;;  %s4164_s15 = sld [smem:[#allocation3 + $0xec]] }
 0x2d6   : > { %1467 = vrot.lane.b32.xlu0 %v1465_v57, %s3183_s28  ;;  %v1118_v0 = vadd.f32 %v3763_v11, %v1110_v61  ;;  %v1497_v11 = vmul.f32 %v1496_v32, %v3916_v54  ;;  %v1168_v57 = vstv %s4068_s10  ;;  %v742_v47 = vadd.f32 %v3815_v9, %v734_v13  ;;  %s4172_s5 = sld [smem:[#allocation3 + $0xeb]] }
 0x2d7   : > { %v780_v44 = vpop.permute.xlu1 %779  ;;  %v4054_v36 = vpop.permute.xlu2 %975  ;;  %v1685_v61 = vmul.f32 %v1684_v27, %v3916_v54  ;;  %v904_v9 = vstv %s4085_s11  ;;  %v894_v13 = vadd.f32 %v3883_v34, %v3720_v39  ;;  %v1556_v34 = vstv %s4105_s1  ;;  %s4183_s10 = sld [smem:[#allocation3 + $0xe1]] }
 0x2d8   : > { %v782_v25 = vadd.f32 %v780_v44, %v774_v43  ;;  %v4061_v17 = vpop.permute.xlu0 %1043  ;;  %v1126_v62 = vadd.f32 %v3727_v42, %v1118_v0  ;;  %v844_v42 = vstv %s4047_s8  ;;  %v1697_v43 = vmul.f32 %v1696_v8, %v3918_v24  ;;  %s4155_s8 = sld [smem:[#allocation3 + $0xc0]] }
 0x2d9   : > { %v845_v2 = vmul.f32 %v3922_v5, %v844_v42  ;;  %v905_v0 = vmul.f32 %v3922_v5, %v904_v9  ;;  %s4188_s11 = sld [smem:[#allocation3 + $0x57]] }
 0x2da   : > { %v786_v10 = vadd.f32 %v785_v4, %v782_v25  ;;  %v4080_v15 = vadd.f32 %v1129_v35, %v1126_v62  ;;  %v1724_v25 = vstv %s4090_s24  ;;  %v1716_v35 = vstv %s4099_s7  ;;  %s4197_s24 = sld [smem:[#allocation3 + $0xf1]] }
 0x2db   : > { %v1717_v5 = vmul.f32 %v4072_v22, %v1716_v35  ;;  %s4210_s7 = sld [smem:[#allocation3 + $0x86]] }
 0x2dc   : > { %v4077_v50 = vadd.f32 %v3954_v56, %v786_v10  ;;  %s4215_s1 = sld [smem:[#allocation3 + $0xe4]] }
 0x2dd   : > { %1667 = vrot.lane.b32.xlu2 %v1665_v40, %s3183_s28  ;;  %1659 = vrot.lane.b32.xlu1 %v1657_v60, %s3185_s23  ;;  %v1189_v40 = vmul.f32 %v1188_v18, %v3713_v31  ;;  %v1784_v18 = vstv %s4164_s15  ;;  %s4274_s15 = sld [smem:[#allocation3 + $0x113]] }
 0x2de   : > { %1499 = vrot.lane.b32.xlu0 %v1497_v11, %s3185_s23  ;;  %v1725_v11 = vmul.f32 %v4072_v22, %v1724_v25  ;;  %v802_v8 = vadd.f32 %v3839_v49, %v4077_v50  ;;  %v1248_v9 = vstv %s4155_s8  ;;  %s4268_s8 = sld [smem:[#allocation3 + $0x115]] }
 0x2df   : > { %v840_v56 = vpop.permute.xlu1 %839  ;;  %v4092_v58 = vpop.permute.xlu2 %1035  ;;  %v1249_v35 = vmul.f32 %v1248_v9, %v3713_v31 }
 0x2e0   : > { %v842_v7 = vadd.f32 %v840_v56, %v834_v38  ;;  %v1076_v14 = vpop.permute.xlu0 %1075  ;;  %v1557_v38 = vmul.f32 %v1556_v34, %v3916_v54  ;;  %v968_v56 = vstv %s4115_s12  ;;  %s4229_s12 = sld [smem:[#allocation3 + $0x7b]] }
 0x2e1   : > { %v4102_v21 = vadd.f32 %v1076_v14, %v4021_v33  ;;  %v1169_v33 = vmul.f32 %v3906_v59, %v1168_v57  ;;  %v1228_v14 = vstv %s4130_s25  ;;  %v1756_v57 = vstv %s4124_s0  ;;  %s4239_s0 = sld [smem:[#allocation3 + $0x110]] }
 0x2e2   : > { %v846_v53 = vadd.f32 %v845_v2, %v842_v7  ;;  %v1757_v49 = vmul.f32 %v1756_v57, %v3918_v24  ;;  %s4244_s25 = sld [smem:[#allocation3 + $0x10f]] }
 0x2e4   : > { %v4112_v44 = vadd.f32 %v3989_v28, %v846_v53  ;;  %v1170_v28 = vadd.f32 %v1169_v33, %v742_v47  ;;  %v1584_v53 = vstv %s4140_s4  ;;  %v1028_v33 = vstv %s4149_s26  ;;  %s4254_s4 = sld [smem:[#allocation3 + $0x105]] }
 0x2e5   : > { %1699 = vrot.lane.b32.xlu2 %v1697_v43, %s3185_s23  ;;  %1687 = vrot.lane.b32.xlu1 %v1685_v61, %s3183_s28  ;;  %v1229_v61 = vmul.f32 %v3906_v59, %v1228_v14  ;;  %v1804_v14 = vstv %s4204_s9  ;;  %s4258_s26 = sld [smem:[#allocation3 + $0x9f]] }
 0x2e6   : > { %1527 = vrot.lane.b32.xlu0 %v1525_v3, %s3183_s28  ;;  %v1178_v39 = vadd.f32 %v3775_v51, %v1170_v28  ;;  %v1585_v3 = vmul.f32 %v1584_v53, %v3918_v24  ;;  %v1029_v28 = vmul.f32 %v1028_v33, %v3731_v45  ;;  %s4316_s9 = sld [smem:[#allocation3 + $0xca]] }
 0x2e7   : > { %v900_v19 = vpop.permute.xlu1 %899  ;;  %v4126_v4 = vpop.permute.xlu2 %1095 }
 0x2e8   : > { %v902_v32 = vadd.f32 %v900_v19, %v894_v13  ;;  %v4133_v10 = vpop.permute.xlu0 %1103  ;;  %v1186_v60 = vadd.f32 %v3741_v52, %v1178_v39  ;;  %v1616_v39 = vstv %s4178_s29  ;;  %s4285_s29 = sld [smem:[#allocation3 + $0x108]] }
 0x2e9   : > { %v1617_v31 = vmul.f32 %v1616_v39, %v3916_v54  ;;  %v4302_v39 = vld [vmem:[#allocation2 + $0x12] sm:$0xff] }
 0x2ea   : > { %v906_v62 = vadd.f32 %v905_v0, %v902_v32  ;;  %v4151_v51 = vadd.f32 %v1189_v40, %v1186_v60  ;;  %v1776_v32 = vstv %s4172_s5  ;;  %v1785_v40 = vmul.f32 %v4072_v22, %v1784_v18  ;;  %s4282_s5 = sld [smem:[#allocation3 + $0xaa]] }
 0x2eb   : > { %v1288_v60 = vstv %s4183_s10  ;;  %s4295_s10 = sld [smem:[#allocation3 + $0xc3]] }
 0x2ec   : > { %v914_v42 = vadd.f32 %v4023_v48, %v906_v62  ;;  %v969_v48 = vmul.f32 %v968_v56, %v3731_v45 }
 0x2ed   : > { %1727 = vrot.lane.b32.xlu2 %v1725_v11, %s3183_s28  ;;  %1719 = vrot.lane.b32.xlu1 %v1717_v5, %s3185_s23  ;;  %v862_v11 = vadd.f32 %v3863_v41, %v4112_v44  ;;  %v1289_v41 = vmul.f32 %v3906_v59, %v1288_v60 }
 0x2ee   : > { %v4158_v52 = vadd.f32 %v3920_v29, %v914_v42  ;;  %1559 = vrot.lane.b32.xlu0 %v1557_v38, %s3185_s23  ;;  %v1744_v29 = vstv %s4136_s27  ;;  %s4248_s27 = sld [smem:[#allocation3 + $0xa6]] }
 0x2ef   : > { %v964_v2 = vpop.permute.xlu1 %963  ;;  %v4162_v7 = vpop.permute.xlu2 %1155  ;;  %v1745_v50 = vmul.f32 %v1744_v29, %v3916_v54 }
 0x2f0   : > { %v966_v27 = vadd.f32 %v964_v2, %v3963_v1  ;;  %v1136_v16 = vpop.permute.xlu0 %1135  ;;  %v1816_v2 = vstv %s4197_s24  ;;  %s4311_s24 = sld [smem:[#allocation3 + $0x1c]] }
 0x2f1   : > { %v4175_v47 = vadd.f32 %v1136_v16, %v4080_v15  ;;  %v1230_v15 = vadd.f32 %v1229_v61, %v802_v8  ;;  %v1308_v16 = vstv %s4215_s1  ;;  %v1817_v53 = vmul.f32 %v1816_v2, %v3918_v24  ;;  %s4337_s1 = sld [smem:[#allocation3 + $0x22]] }
 0x2f2   : > { %v970_v43 = vadd.f32 %v969_v48, %v966_v27  ;;  %v1644_v27 = vstv %s4210_s7  ;;  %s4331_s7 = sld [smem:[#allocation3 + $0x20]] }
 0x2f3   : > { %v1645_v61 = vmul.f32 %v1644_v27, %v3918_v24  ;;  %v4339_v27 = vld [vmem:[#allocation2 + $0x30] sm:$0xff] }
 0x2f4   : > { %v978_v1 = vadd.f32 %v4054_v36, %v970_v43  ;;  %v1238_v36 = vadd.f32 %v3787_v37, %v1230_v15 }
 0x2f5   : > { %1759 = vrot.lane.b32.xlu2 %v1757_v49, %s3185_s23  ;;  %1747 = vrot.lane.b32.xlu1 %v1745_v50, %s3183_s28 }
 0x2f6   : > { %v4194_v13 = vadd.f32 %v3995_v26, %v978_v1  ;;  %1587 = vrot.lane.b32.xlu0 %v1585_v3, %s3183_s28  ;;  %v1246_v37 = vadd.f32 %v3753_v63, %v1238_v36  ;;  %v1088_v63 = vstv %s4188_s11  ;;  %v1836_v36 = vstv %s4244_s25  ;;  %s4307_s11 = sld [smem:[#allocation3 + $0x1d]] }
 0x2f7   : > { %v1024_v19 = vpop.permute.xlu1 %1023  ;;  %v4201_v25 = vpop.permute.xlu2 %1215  ;;  %s4356_s25 = sld [smem:[#allocation3 + $0x40]] }
 0x2f8   : > { %v1026_v0 = vadd.f32 %v1024_v19, %v4032_v46  ;;  %v4207_v26 = vpop.permute.xlu0 %1163  ;;  %v4217_v62 = vadd.f32 %v1249_v35, %v1246_v37  ;;  %v1777_v46 = vmul.f32 %v4072_v22, %v1776_v32  ;;  %v1348_v32 = vstv %s4254_s4  ;;  %s2744_s4 = sld [smem:[#allocation3 + $0xee]] }
 0x2fa   : > { %v1030_v34 = vadd.f32 %v1029_v28, %v1026_v0  ;;  %v1676_v28 = vstv %s4248_s27  ;;  %v1837_v0 = vmul.f32 %v4072_v22, %v1836_v36  ;;  %v1928_v36 = vstv %s4331_s7  ;;  %s2769_s27 = sld [smem:[#allocation3 + $0x41]] }
 0x2fb   : > { %s4415_s7 = sld [smem:[#allocation3 + $0x68]] }
 0x2fc   : > { %v1038_v5 = vadd.f32 %v4092_v58, %v1030_v34  ;;  %v1089_v58 = vmul.f32 %v1088_v63, %v3731_v45  ;;  %v1704_v63 = vstv %s4282_s5  ;;  %s2774_s5 = sld [smem:[#allocation3 + $0x46]] }
 0x2fd   : > { %1787 = vrot.lane.b32.xlu2 %v1785_v40, %s3183_s28  ;;  %1779 = vrot.lane.b32.xlu1 %v1777_v46, %s3185_s23 }
 0x2fe   : > { %v4232_v42 = vadd.f32 %v4061_v17, %v1038_v5  ;;  %1619 = vrot.lane.b32.xlu0 %v1617_v31, %s3185_s23  ;;  %v1290_v17 = vadd.f32 %v1289_v41, %v862_v11  ;;  %v1876_v5 = vstv %s4268_s8  ;;  %v1864_v31 = vstv %s4274_s15  ;;  %s4374_s8 = sld [smem:[#allocation3 + $0x12]] }
 0x2ff   : > { %v1084_v44 = vpop.permute.xlu1 %1083  ;;  %v4237_v38 = vpop.permute.xlu2 %1275  ;;  %v1368_v41 = vstv %s4285_s29  ;;  %s2683_s15 = sld [smem:[#allocation3 + $0x10b]] }
 0x300   : > { %v1086_v56 = vadd.f32 %v1084_v44, %v4102_v21  ;;  %v1196_v48 = vpop.permute.xlu0 %1195  ;;  %v1298_v29 = vadd.f32 %v3799_v55, %v1290_v17  ;;  %v1805_v21 = vmul.f32 %v1804_v14, %v3916_v54  ;;  %v1148_v55 = vstv %s4229_s12  ;;  %s2674_s12 = sld [smem:[#allocation3 + $0xe7]] }
 0x301   : > { %v1198_v8 = vadd.f32 %v1196_v48, %v4151_v51  ;;  %v2978_v51 = vld [vmem:[#allocation2 + $0x11] sm:$0xff]  ;;  %v1865_v48 = vmul.f32 %v1864_v31, %v3916_v54  ;;  %v1705_v14 = vmul.f32 %v1704_v63, %v3918_v24  ;;  %v1968_v31 = vstv %s2769_s27  ;;  %s2748_s29 = sld [smem:[#allocation3 + $0xf2]] }
 0x302   : > { %v1090_v57 = vadd.f32 %v1089_v58, %v1086_v56  ;;  %v1309_v49 = vmul.f32 %v2978_v51, %v1308_v16  ;;  %v1306_v50 = vadd.f32 %v3765_v12, %v1298_v29  ;;  %v1149_v12 = vmul.f32 %v1148_v55, %v3731_v45  ;;  %s4446_s27 = sld [smem:[#allocation3 + $0x88]] }
 0x303   : > { %v1677_v45 = vmul.f32 %v1676_v28, %v3916_v54  ;;  %v1877_v56 = vmul.f32 %v1876_v5, %v3918_v24  ;;  %v1908_v29 = vstv %s4307_s11  ;;  %v1940_v28 = vstv %s4337_s1  ;;  %s4400_s11 = sld [smem:[#allocation3 + $0x65]] }
 0x304   : > { %v1098_v43 = vadd.f32 %v4126_v4, %v1090_v57  ;;  %v4270_v4 = vadd.f32 %v1309_v49, %v1306_v50  ;;  %v1960_v5 = vstv %s4356_s25  ;;  %s4418_s1 = sld [smem:[#allocation3 + $0x36]] }
 0x305   : > { %1819 = vrot.lane.b32.xlu2 %v1817_v53, %s3185_s23  ;;  %1807 = vrot.lane.b32.xlu1 %v1805_v21, %s3183_s28  ;;  %v1900_v53 = vstv %s4311_s24  ;;  %v1736_v21 = vstv %s4316_s9  ;;  %v1961_v63 = vmul.f32 %v1960_v5, %v4339_v27  ;;  %s4403_s24 = sld [smem:[#allocation3 + $0x112]] }
 0x306   : > { %v4265_v1 = vadd.f32 %v4133_v10, %v1098_v43  ;;  %1647 = vrot.lane.b32.xlu0 %v1645_v61, %s3183_s28  ;;  %v1844_v10 = vstv %s4239_s0  ;;  %s2739_s0 = sld [smem:[#allocation3 + $0xce]]  ;;  %v1909_v61 = vmul.f32 %v1908_v29, %v4339_v27  ;;  %v1737_v50 = vmul.f32 %v1736_v21, %v3916_v54 }
 0x307   : > { %v1144_v3 = vpop.permute.xlu1 %1143  ;;  %v4272_v33 = vpop.permute.xlu2 %1335  ;;  %v1845_v18 = vmul.f32 %v4072_v22, %v1844_v10  ;;  %v4360_v10 = vld [vmem:[#allocation2 + $0x32] sm:$0xff]  ;;  %s4407_s9 = sld [smem:[#allocation3 + $0x15]] }
 0x308   : > { %v1146_v15 = vadd.f32 %v1144_v3, %v4175_v47  ;;  %v4278_v9 = vpop.permute.xlu0 %1223  ;;  %v1208_v47 = vstv %s4258_s26  ;;  %s4371_s26 = sld [smem:[#allocation3 + $0x44]] }
 0x309   : > { %v1209_v34 = vmul.f32 %v4302_v39, %v1208_v47  ;;  %s4435_s25 = sld [smem:[#allocation3 + $0x116]] }
 0x30a   : > { %v1150_v19 = vadd.f32 %v1149_v12, %v1146_v15  ;;  %v4358_v15 = vld [vmem:[#allocation2 + $0x31] sm:$0xff] }
 0x30c   : > { %v1158_v35 = vadd.f32 %v4162_v7, %v1150_v19  ;;  %v1349_v7 = vmul.f32 %v3906_v59, %v1348_v32  ;;  %v1328_v19 = vstv %s2674_s12  ;;  %s4426_s12 = sld [smem:[#allocation3 + $0x18]] }
 0x30d   : > { %1847 = vrot.lane.b32.xlu2 %v1845_v18, %s3183_s28  ;;  %1839 = vrot.lane.b32.xlu1 %v1837_v0, %s3185_s23  ;;  %v1764_v0 = vstv %s2739_s0  ;;  %v1329_v47 = vmul.f32 %v4302_v39, %v1328_v19  ;;  %s4430_s0 = sld [smem:[#allocation3 + $0x6a]] }
 0x30e   : > { %v4298_v37 = vadd.f32 %v4207_v26, %v1158_v35  ;;  %1679 = vrot.lane.b32.xlu0 %v1677_v45, %s3185_s23  ;;  %v1350_v26 = vadd.f32 %v1349_v7, %v4158_v52  ;;  %v1369_v52 = vmul.f32 %v2978_v51, %v1368_v41  ;;  %v1901_v51 = vmul.f32 %v1900_v53, %v4339_v27 }
 0x30f   : > { %v1204_v40 = vpop.permute.xlu1 %1203  ;;  %v4305_v46 = vpop.permute.xlu2 %1395  ;;  %v1929_v35 = vmul.f32 %v1928_v36, %v4358_v15  ;;  %v1941_v45 = vmul.f32 %v1940_v28, %v4360_v10  ;;  %v1765_v7 = vmul.f32 %v1764_v0, %v3918_v24  ;;  %v1969_v41 = vmul.f32 %v1968_v31, %v4339_v27 }
 0x310   : > { %v1206_v60 = vadd.f32 %v1204_v40, %v1198_v8  ;;  %v1256_v11 = vpop.permute.xlu0 %1255  ;;  %v1358_v44 = vadd.f32 %v3811_v6, %v1350_v26  ;;  %v1268_v6 = vstv %s4295_s10  ;;  %s4393_s10 = sld [smem:[#allocation3 + $0x64]]  ;;  %v1432_v36 = vstv %s4407_s9 }
 0x311   : > { %v1258_v59 = vadd.f32 %v1256_v11, %v4217_v62  ;;  %v1472_v0 = vstv %s4418_s1  ;;  %s4508_s9 = sld [smem:[#allocation3 + $0xac]] }
 0x312   : > { %v1210_v58 = vadd.f32 %v1209_v34, %v1206_v60  ;;  %v1366_v62 = vadd.f32 %v3777_v23, %v1358_v44  ;;  %v1269_v23 = vmul.f32 %v4302_v39, %v1268_v6  ;;  %v2000_v6 = vstv %s2774_s5  ;;  %s4474_s5 = sld [smem:[#allocation3 + $0x8c]] }
 0x313   : > { %s4518_s1 = sld [smem:[#allocation3 + $0xad]] }
 0x314   : > { %v4323_v2 = vadd.f32 %v4201_v25, %v1210_v58  ;;  %v4333_v17 = vadd.f32 %v1369_v52, %v1366_v62  ;;  %v1988_v62 = vstv %s4371_s26  ;;  %s4458_s26 = sld [smem:[#allocation3 + $0x89]] }
 0x315   : > { %1879 = vrot.lane.b32.xlu2 %v1877_v56, %s3185_s23  ;;  %1867 = vrot.lane.b32.xlu1 %v1865_v48, %s3183_s28  ;;  %v1388_v48 = vstv %s2683_s15  ;;  %s4465_s15 = sld [smem:[#allocation3 + $0x39]] }
 0x316   : > { %1707 = vrot.lane.b32.xlu0 %v1705_v14, %s3183_s28  ;;  %v4397_v14 = vadd.f32 %v4278_v9, %v4323_v2  ;;  %v1989_v9 = vmul.f32 %v1988_v62, %v4358_v15  ;;  %v2001_v2 = vmul.f32 %v2000_v6, %v4360_v10  ;;  %v2080_v6 = vstv %s4446_s27  ;;  %s4542_s27 = sld [smem:[#allocation3 + $0x7e]] }
 0x317   : > { %v1264_v25 = vpop.permute.xlu1 %1263  ;;  %v4335_v8 = vpop.permute.xlu2 %1459 }
 0x318   : > { %v1266_v16 = vadd.f32 %v1264_v25, %v1258_v59  ;;  %v1284_v57 = vpop.permute.xlu0 %1283  ;;  %v1796_v59 = vstv %s2744_s4  ;;  %s4454_s4 = sld [smem:[#allocation3 + $0x1f]] }
 0x319   : > { %v1797_v58 = vmul.f32 %v1796_v59, %v3916_v54 }
 0x31a   : > { %v1270_v43 = vadd.f32 %v1269_v23, %v1266_v16  ;;  %v1824_v23 = vstv %s2748_s29  ;;  %s4477_s29 = sld [smem:[#allocation3 + $0x5a]] }
 0x31c   : > { %v1278_v49 = vadd.f32 %v4237_v38, %v1270_v43 }
 0x31d   : > { %1911 = vrot.lane.b32.xlu2 %v1909_v61, %s3183_s28  ;;  %1903 = vrot.lane.b32.xlu1 %v1901_v51, %s3185_s23 }
 0x31e   : > { %v4351_v55 = vadd.f32 %v1284_v57, %v1278_v49  ;;  %1739 = vrot.lane.b32.xlu0 %v1737_v50, %s3185_s23  ;;  %v1389_v57 = vmul.f32 %v4302_v39, %v1388_v48  ;;  %v2020_v49 = vstv %s4393_s10  ;;  %v2028_v50 = vstv %s4400_s11  ;;  %s4485_s10 = sld [smem:[#allocation3 + $0x3c]] }
 0x31f   : > { %v1324_v3 = vpop.permute.xlu1 %1323  ;;  %v4354_v12 = vpop.permute.xlu2 %1519  ;;  %s4489_s11 = sld [smem:[#allocation3 + $0x8e]] }
 0x320   : > { %v1316_v38 = vpop.permute.xlu0 %1315 }
 0x321   : > { %v1318_v18 = vadd.f32 %v1316_v38, %v4270_v4  ;;  %v1856_v38 = vstv %s4403_s24  ;;  %s4495_s24 = sld [smem:[#allocation3 + $0x23]] }
 0x322   : > { %v1857_v19 = vmul.f32 %v1856_v38, %v3916_v54 }
 0x323   : > { %v1326_v32 = vadd.f32 %v1324_v3, %v1318_v18  ;;  %v1433_v18 = vmul.f32 %v1432_v36, %v3916_v54 }
 0x324   : > { %v1512_v36 = vstv %s4485_s10  ;;  %s4587_s10 = sld [smem:[#allocation3 + $0xea]] }
 0x325   : > { %1931 = vrot.lane.b32.xlu1 %v1929_v35, %s3183_s28  ;;  %1943 = vrot.lane.b32.xlu2 %v1941_v45, %s3185_s23  ;;  %v1330_v34 = vadd.f32 %v1329_v47, %v1326_v32 }
 0x326   : > { %1767 = vrot.lane.b32.xlu0 %v1765_v7, %s3183_s28  ;;  %v2048_v7 = vstv %s4415_s7  ;;  %s4514_s7 = sld [smem:[#allocation3 + $0x43]] }
 0x327   : > { %v1384_v4 = vpop.permute.xlu1 %1383  ;;  %v1338_v40 = vadd.f32 %v4272_v33, %v1330_v34  ;;  %v4377_v60 = vpop.permute.xlu2 %1579  ;;  %v1412_v33 = vstv %s4374_s8  ;;  %v2060_v34 = vstv %s4430_s0  ;;  %s4461_s8 = sld [smem:[#allocation3 + $0xa2]]  ;;  %v2049_v59 = vmul.f32 %v2048_v7, %v4358_v15 }
 0x328   : > { %v1344_v11 = vpop.permute.xlu0 %1343  ;;  %v1413_v16 = vmul.f32 %v4072_v22, %v1412_v33  ;;  %s4530_s0 = sld [smem:[#allocation3 + $0x5d]] }
 0x329   : > { %v4380_v26 = vadd.f32 %v1344_v11, %v1338_v40  ;;  %v1884_v40 = vstv %s4435_s25  ;;  %v1473_v11 = vmul.f32 %v4072_v22, %v1472_v0  ;;  %s4539_s25 = sld [smem:[#allocation3 + $0xb0]] }
 0x32a   : > { %v1414_v53 = vadd.f32 %v1413_v16, %v4194_v13  ;;  %v1920_v16 = vstv %s4454_s4  ;;  %s4550_s4 = sld [smem:[#allocation3 + $0x60]] }
 0x32c   : > { %v1422_v61 = vadd.f32 %v3823_v20, %v1414_v53  ;;  %v2029_v20 = vmul.f32 %v2028_v50, %v4339_v27 }
 0x32d   : > { %1963 = vrot.lane.b32.xlu1 %v1961_v63, %s3185_s23  ;;  %1971 = vrot.lane.b32.xlu2 %v1969_v41, %s3183_s28  ;;  %v2061_v63 = vmul.f32 %v2060_v34, %v4360_v10  ;;  %v1474_v41 = vadd.f32 %v1473_v11, %v4232_v42 }
 0x32e   : > { %1799 = vrot.lane.b32.xlu0 %v1797_v58, %s3185_s23  ;;  %v1430_v28 = vadd.f32 %v3789_v30, %v1422_v61  ;;  %v1452_v30 = vstv %s4426_s12  ;;  %v1885_v58 = vmul.f32 %v1884_v40, %v3918_v24  ;;  %s4521_s12 = sld [smem:[#allocation3 + $0xc6]] }
 0x32f   : > { %v4389_v44 = vpop.permute.xlu1 %1447  ;;  %v4391_v56 = vpop.permute.xlu2 %1639  ;;  %v1453_v5 = vmul.f32 %v1452_v30, %v3918_v24 }
 0x330   : > { %v1376_v52 = vpop.permute.xlu0 %1375  ;;  %v1434_v35 = vadd.f32 %v1433_v18, %v1430_v28  ;;  %v2108_v28 = vstv %s4474_s5  ;;  %v1948_v18 = vstv %s4495_s24  ;;  %s4577_s5 = sld [smem:[#allocation3 + $0x67]] }
 0x331   : > { %v1378_v25 = vadd.f32 %v1376_v52, %v4333_v17  ;;  %v1825_v17 = vmul.f32 %v1824_v23, %v3918_v24  ;;  %v4990_v24 = vld [vmem:[#allocation23_spill] sm:$0xff]  ;;  %v2109_v7 = vmul.f32 %v2108_v28, %v4358_v15  ;;  %v1949_v40 = vmul.f32 %v1948_v18, %v4360_v10  ;;  %s4597_s24 = sld [smem:[#allocation3 + $0x1b]] }
 0x332   : > { %v1482_v52 = vadd.f32 %v4990_v24, %v1474_v41  ;;  %v2148_v41 = vstv %s4518_s1  ;;  %v1552_v24 = vstv %s4530_s0  ;;  %s4619_s1 = sld [smem:[#allocation3 + $0x84]] }
 0x333   : > { %v1386_v29 = vadd.f32 %v1384_v4, %v1378_v25  ;;  %v2088_v25 = vstv %s4458_s26  ;;  %s4554_s26 = sld [smem:[#allocation3 + $0xb2]] }
 0x334   : > { %s4637_s0 = sld [smem:[#allocation3 + $0xd3]] }
 0x335   : > { %1991 = vrot.lane.b32.xlu1 %v1989_v9, %s3183_s28  ;;  %2003 = vrot.lane.b32.xlu2 %v2001_v2, %s3185_s23  ;;  %v1390_v21 = vadd.f32 %v1389_v57, %v1386_v29  ;;  %v1652_v57 = vstv %s4461_s8  ;;  %v1492_v29 = vstv %s4465_s15  ;;  %v2089_v9 = vmul.f32 %v2088_v25, %v4339_v27  ;;  %v4991_v2 = vld [vmem:[#allocation20_spill] sm:$0xff]  ;;  %s4560_s8 = sld [smem:[#allocation3 + $0x47]] }
 0x336   : > { %1827 = vrot.lane.b32.xlu0 %v1825_v17, %s3183_s28  ;;  %v1490_v53 = vadd.f32 %v4991_v2, %v1482_v52  ;;  %v1921_v17 = vmul.f32 %v1920_v16, %v4358_v15  ;;  %v2149_v52 = vmul.f32 %v2148_v41, %v4339_v27  ;;  %s4573_s15 = sld [smem:[#allocation3 + $0xd0]]  ;;  %v4995_v41 = vld [vmem:[#allocation22_spill] sm:$0xff] }
 0x337   : > { %v4420_v39 = vpop.permute.xlu1 %1507  ;;  %v1398_v43 = vadd.f32 %v4305_v46, %v1390_v21  ;;  %v4423_v13 = vpop.permute.xlu2 %1667  ;;  %v2021_v46 = vmul.f32 %v2020_v49, %v4339_v27  ;;  %v1653_v21 = vmul.f32 %v4072_v22, %v1652_v57  ;;  %v4570_v57 = vld [vmem:[#allocation2 + $0x21] sm:$0xff] }
 0x338   : > { %v1404_v51 = vpop.permute.xlu0 %1403 }
 0x339   : > { %v4432_v3 = vadd.f32 %v1404_v51, %v1398_v43  ;;  %v1493_v43 = vmul.f32 %v1492_v29, %v3916_v54  ;;  %v1654_v61 = vadd.f32 %v1653_v21, %v4397_v14  ;;  %v1532_v51 = vstv %s4477_s29  ;;  %s4583_s29 = sld [smem:[#allocation3 + $0xf4]] }
 0x33a   : > { %v1533_v14 = vmul.f32 %v4072_v22, %v1532_v51  ;;  %v1553_v29 = vmul.f32 %v4570_v57, %v1552_v24  ;;  %v1572_v21 = vstv %s4550_s4  ;;  %v2168_v51 = vstv %s4539_s25  ;;  %s4642_s25 = sld [smem:[#allocation3 + $0x8b]] }
 0x33b   : > { %v1494_v50 = vadd.f32 %v1493_v43, %v1490_v53  ;;  %s4654_s4 = sld [smem:[#allocation3 + $0x10e]] }
 0x33d   : > { %2023 = vrot.lane.b32.xlu1 %v2021_v46, %s3185_s23  ;;  %2031 = vrot.lane.b32.xlu2 %v2029_v20, %s3183_s28 }
 0x33e   : > { %1859 = vrot.lane.b32.xlu0 %v1857_v19, %s3185_s23  ;;  %v2120_v19 = vstv %s4489_s11  ;;  %s4591_s11 = sld [smem:[#allocation3 + $0x81]] }
 0x33f   : > { %v4449_v32 = vpop.permute.xlu1 %1567  ;;  %v4451_v45 = vpop.permute.xlu2 %1699  ;;  %v2121_v34 = vmul.f32 %v2120_v19, %v4360_v10  ;;  %v2169_v19 = vmul.f32 %v2168_v51, %v4358_v15 }
 0x340   : > { %v1440_v47 = vpop.permute.xlu0 %1439 }
 0x341   : > { %v1442_v4 = vadd.f32 %v1440_v47, %v1434_v35  ;;  %v4527_v35 = vld [vmem:[#allocation2 + $0x22] sm:$0xff] }
 0x342   : > { %v1513_v30 = vmul.f32 %v4527_v35, %v1512_v36  ;;  %v2008_v36 = vstv %s4560_s8  ;;  %s4662_s8 = sld [smem:[#allocation3 + $0x3f]] }
 0x343   : > { %v1450_v31 = vadd.f32 %v4389_v44, %v1442_v4  ;;  %v1534_v4 = vadd.f32 %v1533_v14, %v4265_v1  ;;  %v2009_v14 = vmul.f32 %v2008_v36, %v4360_v10 }
 0x345   : > { %2051 = vrot.lane.b32.xlu1 %v2049_v59, %s3183_s28  ;;  %2063 = vrot.lane.b32.xlu2 %v2061_v63, %s3185_s23  ;;  %v1454_v33 = vadd.f32 %v1453_v5, %v1450_v31  ;;  %v4992_v5 = vld [vmem:[#allocation24_spill] sm:$0xff]  ;;  %v2140_v63 = vstv %s4508_s9  ;;  %s4607_s9 = sld [smem:[#allocation3 + $0xd1]] }
 0x346   : > { %1887 = vrot.lane.b32.xlu0 %v1885_v58, %s3183_s28  ;;  %v1542_v31 = vadd.f32 %v4992_v5, %v1534_v4  ;;  %v2200_v4 = vstv %s4573_s15  ;;  %v1772_v5 = vstv %s4587_s10  ;;  %s4672_s15 = sld [smem:[#allocation3 + $0xd4]] }
 0x347   : > { %v4479_v44 = vpop.permute.xlu1 %1627  ;;  %v1462_v42 = vadd.f32 %v4335_v8, %v1454_v33  ;;  %v4482_v48 = vpop.permute.xlu2 %1727  ;;  %v2081_v8 = vmul.f32 %v2080_v6, %v4339_v27  ;;  %v1980_v33 = vstv %s4514_s7  ;;  %s4615_s7 = sld [smem:[#allocation3 + $0xf5]]  ;;  %v1773_v24 = vmul.f32 %v4072_v22, %v1772_v5 }
 0x348   : > { %v1468_v62 = vpop.permute.xlu0 %1467  ;;  %v1981_v25 = vmul.f32 %v1980_v33, %v4358_v15  ;;  %s4689_s10 = sld [smem:[#allocation3 + $0x8f]] }
 0x349   : > { %v4491_v23 = vadd.f32 %v1468_v62, %v1462_v42  ;;  %v1712_v42 = vstv %s4521_s12  ;;  %v4993_v62 = vld [vmem:[#allocation21_spill] sm:$0xff]  ;;  %s4625_s12 = sld [smem:[#allocation3 + $0x6b]] }
 0x34a   : > { %v1550_v6 = vadd.f32 %v4993_v62, %v1542_v31  ;;  %v1713_v16 = vmul.f32 %v4072_v22, %v1712_v42  ;;  %v1612_v31 = vstv %s4591_s11  ;;  %v1774_v62 = vadd.f32 %v1773_v24, %v4380_v26  ;;  %s4702_s11 = sld [smem:[#allocation3 + $0xd6]] }
 0x34c   : > { %v1554_v53 = vadd.f32 %v1553_v29, %v1550_v6 }
 0x34d   : > { %2083 = vrot.lane.b32.xlu1 %v2081_v8, %s3185_s23  ;;  %2091 = vrot.lane.b32.xlu2 %v2089_v9, %s3183_s28  ;;  %v1714_v8 = vadd.f32 %v1713_v16, %v4351_v55  ;;  %v1592_v9 = vstv %s4542_s27  ;;  %s4646_s27 = sld [smem:[#allocation3 + $0xf7]] }
 0x34e   : > { %1923 = vrot.lane.b32.xlu0 %v1921_v17, %s3185_s23  ;;  %v1593_v55 = vmul.f32 %v4072_v22, %v1592_v9  ;;  %v2208_v9 = vstv %s4607_s9  ;;  %s2819_s9 = sld [smem:[#allocation3 + $0xfa]] }
 0x34f   : > { %v1660_v49 = vpop.permute.xlu1 %1659  ;;  %v4511_v38 = vpop.permute.xlu2 %1759  ;;  %v2068_v26 = vstv %s4625_s12  ;;  %s4729_s12 = sld [smem:[#allocation3 + $0xd7]] }
 0x350   : > { %v1662_v46 = vadd.f32 %v1660_v49, %v1654_v61  ;;  %v1500_v20 = vpop.permute.xlu0 %1499  ;;  %v2180_v49 = vstv %s4554_s26  ;;  %v1594_v18 = vadd.f32 %v1593_v55, %v4298_v37  ;;  %s4657_s26 = sld [smem:[#allocation3 + $0xa5]] }
 0x351   : > { %v1502_v54 = vadd.f32 %v1500_v20, %v1494_v50  ;;  %v1573_v20 = vmul.f32 %v4527_v35, %v1572_v21 }
 0x352   : > { %v4525_v0 = vadd.f32 %v4423_v13, %v1662_v46 }
 0x353   : > { %v1510_v47 = vadd.f32 %v4420_v39, %v1502_v54  ;;  %v2181_v54 = vmul.f32 %v2180_v49, %v4360_v10 }
 0x355   : > { %2111 = vrot.lane.b32.xlu1 %v2109_v7, %s3183_s28  ;;  %2123 = vrot.lane.b32.xlu2 %v2121_v34, %s3185_s23  ;;  %v1514_v13 = vadd.f32 %v1513_v30, %v1510_v47  ;;  %v4994_v47 = vld [vmem:[#allocation25_spill] sm:$0xff] }
 0x356   : > { %1951 = vrot.lane.b32.xlu0 %v1949_v40, %s3183_s28  ;;  %v1602_v7 = vadd.f32 %v4994_v47, %v1594_v18  ;;  %v2260_v40 = vstv %s4583_s29  ;;  %s4683_s29 = sld [smem:[#allocation3 + $0xa8]]  ;;  %v2100_v18 = vstv %s4642_s25 }
 0x357   : > { %v4544_v39 = vpop.permute.xlu1 %1687  ;;  %v1522_v1 = vadd.f32 %v4354_v12, %v1514_v13  ;;  %v4547_v11 = vpop.permute.xlu2 %1787  ;;  %v2141_v12 = vmul.f32 %v2140_v63, %v4339_v27  ;;  %v2261_v63 = vmul.f32 %v2260_v40, %v4339_v27  ;;  %s4739_s25 = sld [smem:[#allocation3 + $0xcc]] }
 0x358   : > { %v1528_v59 = vpop.permute.xlu0 %1527  ;;  %v1610_v33 = vadd.f32 %v4995_v41, %v1602_v7  ;;  %v2101_v7 = vmul.f32 %v2100_v18, %v4358_v15 }
 0x359   : > { %v4556_v58 = vadd.f32 %v1528_v59, %v1522_v1  ;;  %v2040_v1 = vstv %s4577_s5  ;;  %v1896_v59 = vstv %s4597_s24  ;;  %s4679_s5 = sld [smem:[#allocation3 + $0xf8]] }
 0x35a   : > { %v2041_v42 = vmul.f32 %v2040_v1, %v4358_v15  ;;  %s4707_s24 = sld [smem:[#allocation3 + $0xaf]] }
 0x35d   : > { %2143 = vrot.lane.b32.xlu1 %v2141_v12, %s3185_s23  ;;  %2151 = vrot.lane.b32.xlu2 %v2149_v52, %s3183_s28  ;;  %v1613_v12 = vmul.f32 %v4570_v57, %v1612_v31  ;;  %v1897_v52 = vmul.f32 %v1896_v59, %v4339_v27 }
 0x35e   : > { %1983 = vrot.lane.b32.xlu0 %v1981_v25, %s3185_s23 }
 0x35f   : > { %v1720_v2 = vpop.permute.xlu1 %1719  ;;  %v4580_v17 = vpop.permute.xlu2 %1819  ;;  %v1614_v6 = vadd.f32 %v1613_v12, %v1610_v33  ;;  %v4649_v16 = vadd.f32 %v1897_v52, %v4491_v23  ;;  %v2288_v24 = vstv %s4679_s5  ;;  %v1692_v12 = vstv %s4683_s29  ;;  %s2746_s5 = sld [smem:[#allocation3 + $0xf0]] }
 0x360   : > { %v1722_v43 = vadd.f32 %v1720_v2, %v1714_v8  ;;  %v1560_v61 = vpop.permute.xlu0 %1559  ;;  %v2268_v2 = vstv %s4615_s7  ;;  %s4716_s7 = sld [smem:[#allocation3 + $0xc9]] }
 0x361   : > { %v1562_v50 = vadd.f32 %v1560_v61, %v1554_v53  ;;  %v1632_v53 = vstv %s4619_s1  ;;  %v2209_v61 = vmul.f32 %v2208_v9, %v4339_v27  ;;  %v2269_v51 = vmul.f32 %v2268_v2, %v4339_v27  ;;  %s2776_s1 = sld [smem:[#allocation3 + $0x63]] }
 0x362   : > { %v4594_v46 = vadd.f32 %v4482_v48, %v1722_v43  ;;  %v1633_v49 = vmul.f32 %v4527_v35, %v1632_v53  ;;  %v2240_v53 = vstv %s4702_s11  ;;  %s2823_s29 = sld [smem:[#allocation3 + $0x119]] }
 0x363   : > { %v1570_v28 = vadd.f32 %v4449_v32, %v1562_v50  ;;  %v2069_v50 = vmul.f32 %v2068_v26, %v4360_v10  ;;  %s2825_s11 = sld [smem:[#allocation3 + $0x11b]] }
 0x365   : > { %2171 = vrot.lane.b32.xlu1 %v2169_v19, %s3183_s28  ;;  %2183 = vrot.lane.b32.xlu2 %v2181_v54, %s3185_s23  ;;  %v1574_v48 = vadd.f32 %v1573_v20, %v1570_v28  ;;  %v2220_v28 = vstv %s4637_s0  ;;  %v2280_v19 = vstv %s4646_s27  ;;  %s4736_s0 = sld [smem:[#allocation3 + $0xfb]] }
 0x366   : > { %2011 = vrot.lane.b32.xlu0 %v2009_v14, %s3183_s28  ;;  %v1832_v14 = vstv %s4654_s4  ;;  %v2221_v47 = vmul.f32 %v2220_v28, %v4358_v15  ;;  %s2802_s27 = sld [smem:[#allocation3 + $0xb3]] }
 0x367   : > { %v4609_v32 = vpop.permute.xlu1 %1747  ;;  %v1582_v30 = vadd.f32 %v4377_v60, %v1574_v48  ;;  %v4612_v37 = vpop.permute.xlu2 %1847  ;;  %v2201_v60 = vmul.f32 %v2200_v4, %v4339_v27  ;;  %v1672_v48 = vstv %s4657_s26  ;;  %s2822_s4 = sld [smem:[#allocation3 + $0x118]] }
 0x368   : > { %v1588_v34 = vpop.permute.xlu0 %1587  ;;  %v1673_v40 = vmul.f32 %v4570_v57, %v1672_v48  ;;  %s2743_s26 = sld [smem:[#allocation3 + $0xed]] }
 0x369   : > { %v4621_v13 = vadd.f32 %v1588_v34, %v1582_v30  ;;  %v1956_v30 = vstv %s4662_s8  ;;  %v2982_v34 = vld [vmem:[#allocation2 + $0x20] sm:$0xff]  ;;  %s2785_s8 = sld [smem:[#allocation3 + $0x87]] }
 0x36a   : > { %v1833_v4 = vmul.f32 %v2982_v34, %v1832_v14  ;;  %v1957_v1 = vmul.f32 %v1956_v30, %v4339_v27  ;;  %v1674_v59 = vadd.f32 %v1673_v40, %v4525_v0  ;;  %v2248_v30 = vstv %s4729_s12  ;;  %s2826_s12 = sld [smem:[#allocation3 + $0x11c]] }
 0x36b   : > { %v2249_v40 = vmul.f32 %v2248_v30, %v4360_v10 }
 0x36c   : > { %v1834_v5 = vadd.f32 %v1833_v4, %v4432_v3  ;;  %v2128_v3 = vstv %s4689_s10  ;;  %v2188_v34 = vstv %s2802_s27  ;;  %s4783_s10 = sld [smem:[#allocation3 + $0xf3]] }
 0x36d   : > { %2203 = vrot.lane.b32.xlu1 %v2201_v60, %s3185_s23  ;;  %2263 = vrot.lane.b32.xlu2 %v2261_v63, %s3185_s23  ;;  %v4710_v63 = vadd.f32 %v1957_v1, %v4556_v58  ;;  %s2779_s27 = sld [smem:[#allocation3 + $0x66]] }
 0x36e   : > { %2043 = vrot.lane.b32.xlu0 %v2041_v42, %s3185_s23  ;;  %v2228_v42 = vstv %s4672_s15  ;;  %s2761_s15 = sld [smem:[#allocation3 + $0x1e]] }
 0x36f   : > { %v1780_v22 = vpop.permute.xlu1 %1779  ;;  %v4644_v25 = vpop.permute.xlu2 %1879  ;;  %v2229_v58 = vmul.f32 %v2228_v42, %v4358_v15  ;;  %v1792_v42 = vstv %s2743_s26  ;;  %s2829_s26 = sld [smem:[#allocation3 + $0x11f]] }
 0x370   : > { %v1782_v29 = vadd.f32 %v1780_v22, %v1774_v62  ;;  %v1620_v8 = vpop.permute.xlu0 %1619  ;;  %v2289_v22 = vmul.f32 %v2288_v24, %v4358_v15  ;;  %v2076_v24 = vstv %s2785_s8  ;;  %s2788_s8 = sld [smem:[#allocation3 + $0x8a]] }
 0x371   : > { %v1622_v21 = vadd.f32 %v1620_v8, %v1614_v6  ;;  %v1693_v6 = vmul.f32 %v4527_v35, %v1692_v12 }
 0x372   : > { %v4660_v43 = vadd.f32 %v4547_v11, %v1782_v29  ;;  %v2129_v29 = vmul.f32 %v2128_v3, %v4360_v10  ;;  %v2077_v3 = vmul.f32 %v2076_v24, %v4339_v27 }
 0x373   : > { %v1630_v23 = vadd.f32 %v4479_v44, %v1622_v21  ;;  %v2300_v21 = vstv %s2819_s9  ;;  %s2794_s9 = sld [smem:[#allocation3 + $0xab]] }
 0x375   : > { %2211 = vrot.lane.b32.xlu1 %v2209_v61, %s3183_s28  ;;  %2271 = vrot.lane.b32.xlu2 %v2269_v51, %s3183_s28  ;;  %v1634_v11 = vadd.f32 %v1633_v49, %v1630_v23  ;;  %v2160_v23 = vstv %s4707_s24  ;;  %v1732_v61 = vstv %s4716_s7  ;;  %v2241_v49 = vmul.f32 %v2240_v53, %v4360_v10  ;;  %s2752_s24 = sld [smem:[#allocation3 + $0x111]] }
 0x376   : > { %2071 = vrot.lane.b32.xlu0 %v2069_v50, %s3183_s28  ;;  %v2016_v51 = vstv %s2776_s1  ;;  %v2161_v50 = vmul.f32 %v2160_v23, %v4358_v15  ;;  %s2770_s7 = sld [smem:[#allocation3 + $0x42]] }
 0x377   : > { %v4674_v44 = vpop.permute.xlu1 %1807  ;;  %v1642_v36 = vadd.f32 %v4391_v56, %v1634_v11  ;;  %v4677_v55 = vpop.permute.xlu2 %1911  ;;  %v2281_v56 = vmul.f32 %v2280_v19, %v4358_v15  ;;  %v1733_v11 = vmul.f32 %v4570_v57, %v1732_v61  ;;  %s2755_s1 = sld [smem:[#allocation3 + $0x114]] }
 0x378   : > { %v1648_v20 = vpop.permute.xlu0 %1647 }
 0x379   : > { %v4685_v54 = vadd.f32 %v1648_v20, %v1642_v36  ;;  %v2017_v36 = vmul.f32 %v2016_v51, %v4339_v27  ;;  %v1734_v28 = vadd.f32 %v1733_v11, %v4594_v46 }
 0x37b   : > { %v4757_v18 = vadd.f32 %v2017_v36, %v4621_v13 }
 0x37d   : > { %2223 = vrot.lane.b32.xlu1 %v2221_v47, %s3185_s23  ;;  %2283 = vrot.lane.b32.xlu2 %v2281_v56, %s3185_s23  ;;  %v2308_v47 = vstv %s4736_s0  ;;  %v1752_v56 = vstv %s4739_s25  ;;  %s2828_s0 = sld [smem:[#allocation3 + $0x11e]] }
 0x37e   : > { %2103 = vrot.lane.b32.xlu0 %v2101_v7, %s3185_s23  ;;  %v2309_v13 = vmul.f32 %v2308_v47, %v4360_v10  ;;  %v1753_v1 = vmul.f32 %v4527_v35, %v1752_v56  ;;  %s2803_s25 = sld [smem:[#allocation3 + $0xcf]] }
 0x37f   : > { %v1840_v31 = vpop.permute.xlu1 %1839  ;;  %v4705_v60 = vpop.permute.xlu2 %1943 }
 0x380   : > { %v1842_v41 = vadd.f32 %v1840_v31, %v1834_v5  ;;  %v1680_v33 = vpop.permute.xlu0 %1679 }
 0x381   : > { %v1682_v52 = vadd.f32 %v1680_v33, %v1674_v59  ;;  %v2320_v33 = vstv %s2822_s4  ;;  %s2764_s4 = sld [smem:[#allocation3 + $0x21]] }
 0x382   : > { %v4719_v62 = vadd.f32 %v4612_v37, %v1842_v41  ;;  %v2321_v12 = vmul.f32 %v2320_v33, %v4339_v27 }
 0x383   : > { %v1690_v0 = vadd.f32 %v4544_v39, %v1682_v52  ;;  %v1793_v52 = vmul.f32 %v4570_v57, %v1792_v42 }
 0x385   : > { %2231 = vrot.lane.b32.xlu1 %v2229_v58, %s3183_s28  ;;  %2291 = vrot.lane.b32.xlu2 %v2289_v22, %s3183_s28  ;;  %v1694_v37 = vadd.f32 %v1693_v6, %v1690_v0  ;;  %v1916_v0 = vstv %s2761_s15  ;;  %v1794_v58 = vadd.f32 %v1793_v52, %v4660_v43  ;;  %v4789_v6 = vadd.f32 %v2077_v3, %v4685_v54 }
 0x386   : > { %2131 = vrot.lane.b32.xlu0 %v2129_v29, %s3183_s28  ;;  %v2360_v3 = vstv %s2828_s0  ;;  %s2800_s0 = sld [smem:[#allocation3 + $0xb1]] }
 0x387   : > { %v4731_v39 = vpop.permute.xlu1 %1867  ;;  %v1702_v8 = vadd.f32 %v4451_v45, %v1694_v37  ;;  %v4734_v9 = vpop.permute.xlu2 %1971  ;;  %v2301_v45 = vmul.f32 %v2300_v21, %v4360_v10  ;;  %v2328_v21 = vstv %s2823_s29  ;;  %s2773_s29 = sld [smem:[#allocation3 + $0x45]] }
 0x388   : > { %v1708_v2 = vpop.permute.xlu0 %1707 }
 0x389   : > { %v4741_v26 = vadd.f32 %v1708_v2, %v1702_v8  ;;  %v1812_v8 = vstv %s2746_s5  ;;  %v1917_v2 = vmul.f32 %v1916_v0, %v4358_v15  ;;  %v2361_v0 = vmul.f32 %v2360_v3, %v4360_v10  ;;  %s2815_s5 = sld [smem:[#allocation3 + $0xf6]] }
 0x38a   : > { %v1813_v54 = vmul.f32 %v4527_v35, %v1812_v8 }
 0x38d   : > { %2243 = vrot.lane.b32.xlu1 %v2241_v49, %s3185_s23  ;;  %2303 = vrot.lane.b32.xlu2 %v2301_v45, %s3185_s23  ;;  %v2256_v49 = vstv %s4783_s10 }
 0x38e   : > { %2163 = vrot.lane.b32.xlu0 %v2161_v50, %s3185_s23 }
 0x38f   : > { %v1904_v20 = vpop.permute.xlu1 %1903  ;;  %v4754_v19 = vpop.permute.xlu2 %2003 }
 0x390   : > { %v1906_v14 = vadd.f32 %v1904_v20, %v4649_v16  ;;  %v1740_v48 = vpop.permute.xlu0 %1739  ;;  %v2189_v16 = vmul.f32 %v2188_v34, %v4360_v10  ;;  %v2340_v20 = vstv %s2825_s11  ;;  %s2818_s11 = sld [smem:[#allocation3 + $0xf9]] }
 0x391   : > { %v1742_v7 = vadd.f32 %v1740_v48, %v1734_v28  ;;  %v1852_v28 = vstv %s2752_s24  ;;  %v2341_v30 = vmul.f32 %v2340_v20, %v4358_v15  ;;  %s2782_s24 = sld [smem:[#allocation3 + $0x69]] }
 0x392   : > { %v1914_v4 = vadd.f32 %v4677_v55, %v1906_v14  ;;  %v2136_v14 = vstv %s2794_s9  ;;  %v1853_v47 = vmul.f32 %v4570_v57, %v1852_v28  ;;  %s2806_s9 = sld [smem:[#allocation3 + $0xd2]] }
 0x393   : > { %v1750_v46 = vadd.f32 %v4609_v32, %v1742_v7  ;;  %v2137_v56 = vmul.f32 %v2136_v14, %v4339_v27  ;;  %v1976_v7 = vstv %s2770_s7  ;;  %v1996_v14 = vstv %s2773_s29  ;;  %s2821_s7 = sld [smem:[#allocation3 + $0x117]] }
 0x394   : > { %v4794_v61 = vadd.f32 %v1917_v2, %v1914_v4  ;;  %v1854_v34 = vadd.f32 %v1853_v47, %v4719_v62 }
 0x395   : > { %2251 = vrot.lane.b32.xlu1 %v2249_v40, %s3183_s28  ;;  %2311 = vrot.lane.b32.xlu2 %v2309_v13, %s3183_s28  ;;  %v1754_v5 = vadd.f32 %v1753_v1, %v1750_v46  ;;  %v4815_v46 = vadd.f32 %v2137_v56, %v4741_v26  ;;  %v1872_v1 = vstv %s2755_s1  ;;  %s2791_s1 = sld [smem:[#allocation3 + $0x8d]] }
 0x396   : > { %2191 = vrot.lane.b32.xlu0 %v2189_v16, %s3183_s28  ;;  %v1977_v16 = vmul.f32 %v1976_v7, %v4358_v15  ;;  %v1873_v33 = vmul.f32 %v4527_v35, %v1872_v1  ;;  %v2036_v35 = vstv %s2779_s27  ;;  %s2827_s27 = sld [smem:[#allocation3 + $0x11d]] }
 0x397   : > { %v4772_v55 = vpop.permute.xlu1 %1931  ;;  %v1762_v32 = vadd.f32 %v4511_v38, %v1754_v5  ;;  %v4775_v31 = vpop.permute.xlu2 %2031  ;;  %v2348_v5 = vstv %s2826_s12  ;;  %s2809_s12 = sld [smem:[#allocation3 + $0xd5]] }
 0x398   : > { %v1768_v59 = vpop.permute.xlu0 %1767  ;;  %v2349_v26 = vmul.f32 %v2348_v5, %v4358_v15 }
 0x399   : > { %v4777_v41 = vadd.f32 %v1768_v59, %v1762_v32 }
 0x39e   : > { %2323 = vrot.lane.b32.xlu0 %v2321_v12, %s3185_s23 }
 0x39f   : > { %v1964_v38 = vpop.permute.xlu1 %1963  ;;  %v4786_v22 = vpop.permute.xlu2 %2063 }
 0x3a0   : > { %v1966_v29 = vadd.f32 %v1964_v38, %v4710_v63  ;;  %v1800_v37 = vpop.permute.xlu0 %1799  ;;  %v2329_v63 = vmul.f32 %v2328_v21, %v4339_v27 }
 0x3a1   : > { %v1802_v53 = vadd.f32 %v1800_v37, %v1794_v58  ;;  %v2037_v58 = vmul.f32 %v2036_v35, %v4358_v15 }
 0x3a2   : > { %v1974_v23 = vadd.f32 %v4734_v9, %v1966_v29 }
 0x3a3   : > { %v1810_v43 = vadd.f32 %v4674_v44, %v1802_v53  ;;  %v2257_v44 = vmul.f32 %v2256_v49, %v4339_v27  ;;  %v1936_v53 = vstv %s2764_s4  ;;  %s2838_s4 = sshll.u32 %s3164_s19, 4 }
 0x3a4   : > { %v1978_v59 = vadd.f32 %v1977_v16, %v1974_v23 }
 0x3a5   : > { %v1814_v51 = vadd.f32 %v1813_v54, %v1810_v43 }
 0x3a6   : > { %2331 = vrot.lane.b32.xlu0 %v2329_v63, %s3183_s28  ;;  %v1937_v63 = vmul.f32 %v1936_v53, %v4360_v10 }
 0x3a7   : > { %v4801_v45 = vpop.permute.xlu1 %1991  ;;  %v1822_v50 = vadd.f32 %v4580_v17, %v1814_v51  ;;  %v2092_v11 = vpop.permute.xlu2 %2091 }
 0x3a8   : > { %v1828_v9 = vpop.permute.xlu0 %1827 }
 0x3a9   : > { %v1830_v36 = vadd.f32 %v1828_v9, %v1822_v50  ;;  %v2276_v9 = vstv %s2815_s5 }
 0x3aa   : > { %v2277_v56 = vmul.f32 %v2276_v9, %v4358_v15 }
 0x3ab   : > { %v4805_v48 = vadd.f32 %v2257_v44, %v1830_v36 }
 0x3ae   : > { %2343 = vrot.lane.b32.xlu0 %v2341_v30, %s3185_s23 }
 0x3af   : > { %v2024_v17 = vpop.permute.xlu1 %2023  ;;  %v4812_v4 = vpop.permute.xlu2 %2123 }
 0x3b0   : > { %v2026_v40 = vadd.f32 %v2024_v17, %v4757_v18  ;;  %v1860_v13 = vpop.permute.xlu0 %1859 }
 0x3b1   : > { %v1862_v57 = vadd.f32 %v1860_v13, %v1854_v34 }
 0x3b2   : > { %v2034_v32 = vadd.f32 %v4775_v31, %v2026_v40 }
 0x3b3   : > { %v1870_v62 = vadd.f32 %v4731_v39, %v1862_v57  ;;  %v2196_v39 = vstv %s2803_s25  ;;  %s2824_s25 = sld [smem:[#allocation3 + $0x11a]] }
 0x3b4   : > { %v2197_v38 = vmul.f32 %v2196_v39, %v4339_v27  ;;  %v4839_v21 = vadd.f32 %v2037_v58, %v2034_v32  ;;  %v2368_v27 = vstv %s2829_s26  ;;  %s2402_s26 = sadd.s32 %s3160_s18, %s2838_s4 }
 0x3b5   : > { %v1874_v42 = vadd.f32 %v1873_v33, %v1870_v62  ;;  %v2369_v51 = vmul.f32 %v2368_v27, %v4360_v10 }
 0x3b6   : > { %2351 = vrot.lane.b32.xlu0 %v2349_v26, %s3183_s28  ;;  %v4836_v37 = vadd.f32 %v2197_v38, %v4777_v41 }
 0x3b7   : > { %v4824_v18 = vpop.permute.xlu1 %2051  ;;  %v1882_v24 = vadd.f32 %v4644_v25, %v1874_v42  ;;  %v2152_v12 = vpop.permute.xlu2 %2151 }
 0x3b8   : > { %v1888_v52 = vpop.permute.xlu0 %1887 }
 0x3b9   : > { %v4827_v31 = vadd.f32 %v1888_v52, %v1882_v24 }
 0x3be   : > { %2363 = vrot.lane.b32.xlu0 %v2361_v0, %s3185_s23  ;;  %s229_s23 = sand.u32 1, %s3140_s13  }
 0x3bf   : > { %v2084_v25 = vpop.permute.xlu1 %2083  ;;  %v4833_v29 = vpop.permute.xlu2 %2183  ;;  %s2533_s15 = sshll.u32 %s229_s23, 6  ;;  %s2392_s19 = scalar_lea.sflag [#allocation5], %s229_s23 }
 0x3c0   : > { %v2086_v8 = vadd.f32 %v2084_v25, %v4789_v6  ;;  %v1924_v2 = vpop.permute.xlu0 %1923  ;;  %s4852_s10 = scalar_lea.vmem [#allocation10], %s2533_s15  ;;  %v2216_v25 = vstv %s2806_s9 }
 0x3c1   : > { %v1926_v23 = vadd.f32 %v1924_v2, %v4794_v61 }
 0x3c2   : > { %v2094_v43 = vadd.f32 %v2092_v11, %v2086_v8  ;;  %v2096_v11 = vstv %s2788_s8  ;;  %s2839_s8 = sshll.u32 %s2402_s26, 3 }
 0x3c3   : > { %v1934_v54 = vadd.f32 %v4772_v55, %v1926_v23  ;;  %v2097_v20 = vmul.f32 %v2096_v11, %v4358_v15  ;;  %s2404_s29 = scalar_lea.hbm %s4959_s3, %s2839_s8 }
 0x3c5   : > { %v1938_v41 = vadd.f32 %v1937_v63, %v1934_v54  ;;  %v2098_v7 = vadd.f32 %v2097_v20, %v2094_v43 }
 0x3c6   : > { %2371 = vrot.lane.b32.xlu0 %v2369_v51, %s3183_s28  ;;  %s2797_s28 = sld [smem:[#allocation3 + $0xae]] }
 0x3c7   : > { %v4849_v6 = vpop.permute.xlu1 %2111  ;;  %v1946_v61 = vadd.f32 %v4705_v60, %v1938_v41  ;;  %v2264_v49 = vpop.permute.xlu2 %2263  ;;  %v2985_v41 = vld [vmem:[#allocation2 + $0x30] sm:$0xff] }
 0x3c8   : > { %v1952_v50 = vpop.permute.xlu0 %1951  ;;  %v2266_v36 = vadd.f32 %v2264_v49, %v4805_v48  ;;  %v1997_v48 = vmul.f32 %v1996_v14, %v4360_v10 }
 0x3c9   : > { %v1954_v55 = vadd.f32 %v1952_v50, %v1946_v61 }
 0x3cb   : > { %2376 = vst.msk [vmem:[%s4852_s10] sm:$0xff] %vm2375_vm6, %v1954_v55  ;;  %v2116_v55 = vstv %s2791_s1  ;;  %s3066_s1 = scalar_lea.hbm %s4959_s3, 256 }
 0x3cc   : > { %v2156_v32 = vstv %s2797_s28  ;;  %s2405_s28 = sshll.u32 %s4852_s10, 4  ;;  %s2406_s28 = int_to_ptr.vmem [resolvable:$true] %s2405_s28 }
 0x3cf   : > { %v2144_v44 = vpop.permute.xlu1 %2143  ;;  %v2272_v28 = vpop.permute.xlu2 %2271 }
 0x3d0   : > { %v2146_v60 = vadd.f32 %v2144_v44, %v4815_v46  ;;  %v1984_v30 = vpop.permute.xlu0 %1983  ;;  %v2274_v47 = vadd.f32 %v2272_v28, %v2266_v36  ;;  %v2236_v28 = vstv %s2809_s12 }
 0x3d1   : > { %v1986_v17 = vadd.f32 %v1984_v30, %v1978_v59  ;;  %v2296_v59 = vstv %s2818_s11  ;;  %s2407_s11 = sshll.u32 %s2404_s29, 4  ;;  %s2408_s11 = int_to_ptr.hbm [resolvable:$true] %s2407_s11 }
 0x3d2   : > { %v2154_v34 = vadd.f32 %v2152_v12, %v2146_v60  ;;  %v2278_v40 = vadd.f32 %v2277_v56, %v2274_v47  ;;  %v2056_v12 = vstv %s2782_s24  ;;  %s3060_s24 = sshra.s32 %s2408_s11, 4  ;;  %s3061_s24 = int_to_ptr.hbm [resolvable:$true] %s3060_s24 }
 0x3d3   : > { %v1994_v13 = vadd.f32 %v4801_v45, %v1986_v17  ;;  %v4867_v45 = vld [vmem:[#allocation2 + $0x31] sm:$0xff]  ;;  %s3062_s18 = scalar_lea.hbm %s3061_s24, 64  ;;  %p3067_p2 = scmp.lt.s32.totalorder %s3061_s24, %s4959_s3 }
 0x3d4   : > { %v2157_v10 = vmul.f32 %v4867_v45, %v2156_v32  ;;  %v2217_v54 = vmul.f32 %v4867_v45, %v2216_v25  ;;  %p3063_p6 = scmp.ne.s32.totalorder %s3061_s24, %s3062_s18  ;;  %p3068_p5 = scmp.lt.s32.totalorder %s3066_s1, %s3062_s18 }
 0x3d5   : > { %v1998_v1 = vadd.f32 %v1997_v48, %v1994_v13 }
 0x3d6   : > { %v2158_v3 = vadd.f32 %v2157_v10, %v2154_v34  ;;  %v2336_v10 = vstv %s2824_s25  ;;  %p3064_p0 = pnand %p3063_p6, %p3288_p10  ;;  %p3069_p7 = por %p3068_p5, %p3067_p2 }
 0x3d7   : > { %v4862_v16 = vpop.permute.xlu1 %2171  ;;  %v2006_v46 = vadd.f32 %v4754_v19, %v1998_v1  ;;  %v2284_v57 = vpop.permute.xlu2 %2283  ;;  %v4870_v19 = vld [vmem:[#allocation2 + $0x32] sm:$0xff] }
 0x3d8   : > { %v2012_v5 = vpop.permute.xlu0 %2011  ;;  %v2286_v62 = vadd.f32 %v2284_v57, %v2278_v40  ;;  %v2297_v52 = vmul.f32 %v4870_v19, %v2296_v59  ;;  %v2057_v38 = vmul.f32 %v4870_v19, %v2056_v12  ;;  %v2117_v20 = vmul.f32 %v4870_v19, %v2116_v55  ;;  %p3065_p1 = pneg %p3064_p0 }
 0x3d9   : > { %v2014_v15 = vadd.f32 %v2012_v5, %v2006_v46  ;;  %v2237_v17 = vmul.f32 %v4870_v19, %v2236_v28  ;;  %v2176_v40 = vstv %s2800_s0  ;;  %v2356_v12 = vstv %s2827_s27 }
 0x3da   : > { %v2177_v1 = vmul.f32 %v4870_v19, %v2176_v40  ;;  %p3070_p8 = pnand %p3069_p7, %p3065_p1 }
 0x3db   : > { %2830 = vst.msk [vmem:[%s4852_s10 + $0x8] sm:$0xff] %vm2375_vm6, %v2014_v15 }
 0x3df   : > { %v2204_v33 = vpop.permute.xlu1 %2203  ;;  %v2292_v26 = vpop.permute.xlu2 %2291 }
 0x3e0   : > { %v2044_v42 = vpop.permute.xlu0 %2043  ;;  %v2294_v24 = vadd.f32 %v2292_v26, %v2286_v62  ;;  %v2206_v8 = vadd.f32 %v2204_v33, %v4836_v37 }
 0x3e1   : > { %v2046_v39 = vadd.f32 %v2044_v42, %v4839_v21  ;;  %v2337_v42 = vmul.f32 %v4867_v45, %v2336_v10 }
 0x3e2   : > { %v2298_v35 = vadd.f32 %v2297_v52, %v2294_v24 }
 0x3e3   : > { %v2054_v0 = vadd.f32 %v4824_v18, %v2046_v39  ;;  %v2316_v18 = vstv %s2821_s7 }
 0x3e4   : > { %v2317_v61 = vmul.f32 %v2985_v41, %v2316_v18 }
 0x3e5   : > { %v2058_v58 = vadd.f32 %v2057_v38, %v2054_v0 }
 0x3e6   : > { %v2318_v11 = vadd.f32 %v2317_v61, %v4827_v31 }
 0x3e7   : > { %v2212_v2 = vpop.permute.xlu1 %2211  ;;  %v2066_v53 = vadd.f32 %v4786_v22, %v2058_v58  ;;  %v2304_v23 = vpop.permute.xlu2 %2303 }
 0x3e8   : > { %v2214_v27 = vadd.f32 %v2212_v2, %v2206_v8  ;;  %v2072_v43 = vpop.permute.xlu0 %2071  ;;  %v2306_v51 = vadd.f32 %v2304_v23, %v2298_v35  ;;  %v2357_v35 = vmul.f32 %v4870_v19, %v2356_v12 }
 0x3e9   : > { %v2074_v21 = vadd.f32 %v2072_v43, %v2066_v53 }
 0x3ea   : > { %v2218_v63 = vadd.f32 %v2217_v54, %v2214_v27 }
 0x3eb   : > { %2831 = vst.msk [vmem:[%s4852_s10 + $0x10] sm:$0xff] %vm2375_vm6, %v2074_v21 }
 0x3ef   : > { %v2224_v37 = vpop.permute.xlu1 %2223  ;;  %v2312_v49 = vpop.permute.xlu2 %2311 }
 0x3f0   : > { %v2104_v50 = vpop.permute.xlu0 %2103  ;;  %v2314_v22 = vadd.f32 %v2312_v49, %v2306_v51  ;;  %v2226_v14 = vadd.f32 %v2224_v37, %v2218_v63 }
 0x3f1   : > { %v2106_v9 = vadd.f32 %v2104_v50, %v2098_v7 }
 0x3f2   : > { %2835 = vst.msk [vmem:[%s4852_s10 + $0x30] sm:$0xff] %vm2375_vm6, %v2314_v22 }
 0x3f3   : > { %v2114_v36 = vadd.f32 %v4849_v6, %v2106_v9 }
 0x3f5   : > { %v2118_v44 = vadd.f32 %v2117_v20, %v2114_v36 }
 0x3f7   : > { %v2232_v60 = vpop.permute.xlu1 %2231  ;;  %v2126_v30 = vadd.f32 %v4812_v4, %v2118_v44 }
 0x3f8   : > { %v2234_v47 = vadd.f32 %v2232_v60, %v2226_v14  ;;  %v2132_v56 = vpop.permute.xlu0 %2131 }
 0x3f9   : > { %v2134_v31 = vadd.f32 %v2132_v56, %v2126_v30 }
 0x3fa   : > { %v2238_v7 = vadd.f32 %v2237_v17, %v2234_v47 }
 0x3fb   : > { %2832 = vst.msk [vmem:[%s4852_s10 + $0x18] sm:$0xff] %vm2375_vm6, %v2134_v31 }
 0x3ff   : > { %v2244_v6 = vpop.permute.xlu1 %2243 }
 0x400   : > { %v2164_v34 = vpop.permute.xlu0 %2163  ;;  %v2246_v46 = vadd.f32 %v2244_v6, %v2238_v7 }
 0x401   : > { %v2166_v13 = vadd.f32 %v2164_v34, %v2158_v3 }
 0x403   : > { %v2174_v48 = vadd.f32 %v4862_v16, %v2166_v13 }
 0x405   : > { %v2178_v4 = vadd.f32 %v2177_v1, %v2174_v48 }
 0x407   : > { %v2252_v57 = vpop.permute.xlu1 %2251  ;;  %v2186_v5 = vadd.f32 %v4833_v29, %v2178_v4 }
 0x408   : > { %v2254_v15 = vadd.f32 %v2252_v57, %v2246_v46  ;;  %v2192_v32 = vpop.permute.xlu0 %2191 }
 0x409   : > { %v2194_v59 = vadd.f32 %v2192_v32, %v2186_v5 }
 0x40a   : > { %2834 = vst.msk [vmem:[%s4852_s10 + $0x28] sm:$0xff] %vm2375_vm6, %v2254_v15 }
 0x40b   : > { %2833 = vst.msk [vmem:[%s4852_s10 + $0x20] sm:$0xff] %vm2375_vm6, %v2194_v59 }
 0x410   : > { %v2324_v62 = vpop.permute.xlu0 %2323 }
 0x411   : > { %v2326_v16 = vadd.f32 %v2324_v62, %v2318_v11 }
 0x418   : > { %v2332_v33 = vpop.permute.xlu0 %2331 }
 0x419   : > { %v2334_v26 = vadd.f32 %v2332_v33, %v2326_v16 }
 0x41b   : > { %v2338_v24 = vadd.f32 %v2337_v42, %v2334_v26 }
 0x420   : > { %v2344_v29 = vpop.permute.xlu0 %2343 }
 0x421   : > { %v2346_v52 = vadd.f32 %v2344_v29, %v2338_v24 }
 0x428   : > { %v2352_v3 = vpop.permute.xlu0 %2351 }
 0x429   : > { %v2354_v39 = vadd.f32 %v2352_v3, %v2346_v52 }
 0x42b   : > { %v2358_v0 = vadd.f32 %v2357_v35, %v2354_v39 }
 0x430   : > { %v2364_v38 = vpop.permute.xlu0 %2363 }
 0x431   : > { %v2366_v45 = vadd.f32 %v2364_v38, %v2358_v0 }
 0x438   : > { %v2372_v58 = vpop.permute.xlu0 %2371 }
 0x439   : > { %v2374_v25 = vadd.f32 %v2372_v58, %v2366_v45 }
 0x43b   : > { %2836 = vst.msk [vmem:[%s4852_s10 + $0x38] sm:$0xff] %vm2375_vm6, %v2374_v25 }
 0x43c   : > { %3073 = shalt.err (!%p3070_p8)
}
 0x43d   : > { %s3186_s23 = smov 128   ;;  %s3187_s10 = smov 256  }
 0x43e   : > { %s3188_s25 = smov 8  }
 0x43f   : > { %2853 = dma.vmem_to_hbm [thread:$0]  (%p3288_p10), %s2406_s28, 1024, %s2408_s11, %s2392_s19, %s3186_s23, %s3187_s10, %s3188_s25  }
 0x440 PF: > { %s4996_s27 = sld [smem:[#allocation17_spill]] }
 0x441   : > { %s4997_s4 = sld [smem:[#allocation15_spill]] }
 0x446   : > { %p2875_p4 = scmp.ge.s32.totalorder %s4996_s27, 2 }
 0x447   : > { %s2422_s8 = sand.u32 1, %s4997_s4  }
 0x448   : > { %p2867_p9 = pnand %p2875_p4, %p3293_p12  ;;  %s2423_s15 = scalar_lea.sflag [#allocation5], %s2422_s8 }
 0x44a   : > { %p2868_p11 = pneg %p2867_p9 }
 0x44c   : > { %3131 = dma.done.wait (%p2868_p11), %s2423_s15, 1024  }
 0x44d   : > { %3133 = vsyncadd (%p2868_p11), %s2423_s15, 4294966272  ;;  %s21_s5 = sadd.s32 1, %s4996_s27   ;;  %s4999_s18 = sld [smem:[#allocation16_spill]] }
 0x44e   : > { %p18_p13 = scmp.ge.s32.totalorder %s21_s5, 6   ;;  %s5000_s30 = sld [smem:[#allocation19_spill]] }
 0x44f   : > { %s5001_s12 = smov %s3140_s13  ;;  %s5002_s13 = smov %s3144_s14 }
 0x450   : > { %s5003_s14 = smov %s3343_s22  ;;  %s5004_s15 = smov %s3152_s16 }
 0x451   : > { %s5005_s16 = smov %s3156_s17  ;;  %s5006_s17 = smov %s3338_s20 }
 0x452   : > { %s5007_s19 = smov %s3172_s21  ;;  %s5009_s21 = smov %s5016_s6 }
 0x453   : > { %s5010_s22 = smov %s21_s5  ;;  %20 = sbr.rel (!%p18_p13) target bundleno = 14 (0xe), region = 99 }
 0x454   : > { %s5008_s20 = smov %s5000_s30 }
 0x458   :  { %2429 = vsyncpa [#allocation4], 1 }
 0x459   :  { %2431 = vsyncpa [#allocation4 + $0x1], 1 }
 0x45a   :  { %2432 = vsyncpa [#allocation5], 1 }
 0x45b   :  { %2434 = vsyncpa [#allocation5 + $0x1], 1 }
 0x45c   :  { %2435 = vsyncpa [#allocation6], 1 }
 0x45d   :  { %2437 = vsyncpa [#allocation6 + $0x1], 1 }
 0x45e   :  { %2438 = vsyncpa [#allocation8], 1 }

</bundles_post_ra>
